<compile_context>
chip_gen: v7x
topology: tpu7x:2x2x1
jax: 0.10.0
libtpu: 0.0.40
codegen_flags: <defaults>
</compile_context>

<pallas_src>
import jax
import jax.numpy as jnp
from jax.experimental import pallas as pl
from jax.experimental.pallas import tpu as pltpu

BN_EPS = 1e-5  # PyTorch BatchNorm1d default


def _affine_matmul(h, w_ref, a_ref):
    """h @ W on the MXU, then per-feature scale*y + bias on the VPU.

    The (scale, bias) row-pair carries the Linear bias and (when present)
    the folded eval-mode BatchNorm.
    """
    y = jnp.dot(h, w_ref[...], preferred_element_type=jnp.float32)
    a = a_ref[...]                     # (2, F): row 0 = scale, row 1 = bias
    return y * a[0:1, :] + a[1:2, :]


def encdec_kernel(x_ref,
                  ew1, ea1, ew2, ea2, ew3, ea3, ew4, ea4,
                  dw1, da1, dw2, da2, dw3, da3, dw4, da4,
                  pw1, pa1, pw2, pa2,
                  layer4_ref, player4_ref, layer8_ref):
    x = x_ref[...]                                       # (b_tile, D_in)

    # ---- encoder: Linear -> BN(eval, folded) -> tanh (x3), then Linear ----
    h = jnp.tanh(_affine_matmul(x, ew1, ea1))
    h = jnp.tanh(_affine_matmul(h, ew2, ea2))
    h = jnp.tanh(_affine_matmul(h, ew3, ea3))
    l4 = _affine_matmul(h, ew4, ea4)                     # latent: no BN / no tanh
    layer4_ref[...] = l4.astype(layer4_ref.dtype)

    # ---- decoder ----
    h = jnp.tanh(_affine_matmul(l4, dw1, da1))
    h = jnp.tanh(_affine_matmul(h, dw2, da2))
    h = jnp.tanh(_affine_matmul(h, dw3, da3))
    layer8_ref[...] = _affine_matmul(h, dw4, da4).astype(layer8_ref.dtype)

    # ---- projection head: Linear -> tanh -> Linear ----
    p = jnp.tanh(_affine_matmul(l4, pw1, pa1))
    player4_ref[...] = _affine_matmul(p, pw2, pa2).astype(player4_ref.dtype)


def mask_gene_forward(x, folded_layers, *, b_tile=64):
    """x: (B, D_in) float32.

    folded_layers: 10 (W[in,out], affine[2,out]) pairs in order
    enc1..enc4, dec1..dec4, proj1, proj2 (BatchNorm already folded, eval mode).
    Returns (layer4, player4, layer8) to match the PyTorch forward.
    """
    B, d_in = x.shape
    assert B % b_tile == 0, (B, b_tile)
    grid = (B // b_tile,)

    def full_block(shape):
        return pl.BlockSpec(shape, lambda i: (0, 0))

    in_specs = [pl.BlockSpec((b_tile, d_in), lambda i: (i, 0))]
    args = [x]
    for w, a in folded_layers:
        in_specs.append(full_block(w.shape))
        in_specs.append(full_block(a.shape))
        args.append(w)
        args.append(a)

    d_lat = folded_layers[3][0].shape[1]   # encoder_layer4 out (latent)
    d_rec = folded_layers[7][0].shape[1]   # decoder_layer4 out (reconstruction)
    d_prj = folded_layers[9][0].shape[1]   # projection head out

    out_shape = (
        jax.ShapeDtypeStruct((B, d_lat), x.dtype),
        jax.ShapeDtypeStruct((B, d_prj), x.dtype),
        jax.ShapeDtypeStruct((B, d_rec), x.dtype),
    )
    out_specs = (
        pl.BlockSpec((b_tile, d_lat), lambda i: (i, 0)),
        pl.BlockSpec((b_tile, d_prj), lambda i: (i, 0)),
        pl.BlockSpec((b_tile, d_rec), lambda i: (i, 0)),
    )

    return pl.pallas_call(
        encdec_kernel,
        out_shape=out_shape,
        grid_spec=pltpu.PrefetchScalarGridSpec(
            num_scalar_prefetch=0,
            grid=grid,
            in_specs=in_specs,
            out_specs=out_specs,
        ),
        compiler_params=pltpu.CompilerParams(
            dimension_semantics=("parallel",),
        ),
    )(*args)


# ----------------------------- test harness ------------------------------ #

def make_params(key, inputs, outputs, proj_hidden=64, proj_out=128):
    """Raw parameters mirroring the PyTorch module (eval mode).

    Weights are stored as (in, out) so y = x @ W + b. Layers followed by
    BatchNorm1d also carry (gamma, beta, running_mean, running_var).
    """
    bn_layers = {0, 1, 2, 4, 5, 6}
    dims = list(zip(inputs, outputs)) + [(outputs[3], proj_hidden),
                                         (proj_hidden, proj_out)]
    params = []
    for i, (din, dout) in enumerate(dims):
        key, kw, kb, kg, kbe, km, kv = jax.random.split(key, 7)
        # Quantize weights to bf16-representable values so the MXU's bf16
        # passes stay tight against the pure-JAX reference.
        w = jax.random.normal(kw, (din, dout), jnp.float32) / jnp.sqrt(din)
        w = w.astype(jnp.bfloat16).astype(jnp.float32)
        b = 0.01 * jax.random.normal(kb, (dout,), jnp.float32)
        layer = {"w": w, "b": b}
        if i in bn_layers:
            layer["gamma"] = 1.0 + 0.1 * jax.random.normal(kg, (dout,), jnp.float32)
            layer["beta"] = 0.1 * jax.random.normal(kbe, (dout,), jnp.float32)
            layer["mean"] = 0.1 * jax.random.normal(km, (dout,), jnp.float32)
            layer["var"] = jax.random.uniform(kv, (dout,), jnp.float32,
                                              minval=0.5, maxval=1.5)
        params.append(layer)
    return params


def fold_params(params):
    """Fold eval-mode BatchNorm1d + Linear bias into (scale, bias) rows."""
    folded = []
    for p in params:
        if "gamma" in p:
            scale = p["gamma"] / jnp.sqrt(p["var"] + BN_EPS)
            bias = (p["b"] - p["mean"]) * scale + p["beta"]
        else:
            scale = jnp.ones_like(p["b"])
            bias = p["b"]
        folded.append((p["w"], jnp.stack([scale, bias], axis=0)))
    return folded


def reference_forward(x, params):
    """Pure-JAX mirror of the PyTorch forward (module.eval())."""
    def lin(h, p):
        return h @ p["w"] + p["b"]

    def lin_bn_tanh(h, p):
        z = lin(h, p)
        z = (z - p["mean"]) / jnp.sqrt(p["var"] + BN_EPS) * p["gamma"] + p["beta"]
        return jnp.tanh(z)

    l1 = lin_bn_tanh(x, params[0])
    l2 = lin_bn_tanh(l1, params[1])
    l3 = lin_bn_tanh(l2, params[2])
    l4 = lin(l3, params[3])
    l5 = lin_bn_tanh(l4, params[4])
    l6 = lin_bn_tanh(l5, params[5])
    l7 = lin_bn_tanh(l6, params[6])
    l8 = lin(l7, params[7])
    p4 = lin(jnp.tanh(lin(l4, params[8])), params[9])
    return l4, p4, l8


if __name__ == "__main__":
    # Shapes consistent with the module: encoder 256->256->128->128->128(latent),
    # mirrored decoder back to 256, plus the fixed (latent->64->128) projection head.
    inputs = [256, 256, 128, 128, 128, 128, 128, 256]
    outputs = [256, 128, 128, 128, 128, 128, 256, 256]
    B = 128

    key = jax.random.PRNGKey(0)
    kx, kp = jax.random.split(key)
    x = jax.random.normal(kx, (B, inputs[0]), dtype=jnp.float32)
    x = x.astype(jnp.bfloat16).astype(jnp.float32)   # bf16-exact input values

    params = make_params(kp, inputs, outputs)
    folded = fold_params(params)

    layer4, player4, layer8 = jax.block_until_ready(
        mask_gene_forward(x, folded, b_tile=64))

    r4, rp4, r8 = reference_forward(x, params)

    # Tolerance covers TPU default (bf16-pass) matmul precision on either side.
    for name, got, want in (("layer4", layer4, r4),
                            ("player4", player4, rp4),
                            ("layer8", layer8, r8)):
        assert got.shape == want.shape, (name, got.shape, want.shape)
        max_err = float(jnp.max(jnp.abs(got - want)))
        assert jnp.allclose(got, want, atol=3e-2, rtol=3e-2), (name, max_err)

    print("KERNEL_OK")
</pallas_src>

<mosaic_0001>
module attributes {stable_mosaic.version = 11 : i64} {
  func.func @encdec_kernel(%arg0: i32, %arg1: memref<64x256xf32, #tpu.memory_space<vmem>>, %arg2: memref<256x256xf32, #tpu.memory_space<vmem>>, %arg3: memref<2x256xf32, #tpu.memory_space<vmem>>, %arg4: memref<256x128xf32, #tpu.memory_space<vmem>>, %arg5: memref<2x128xf32, #tpu.memory_space<vmem>>, %arg6: memref<128x128xf32, #tpu.memory_space<vmem>>, %arg7: memref<2x128xf32, #tpu.memory_space<vmem>>, %arg8: memref<128x128xf32, #tpu.memory_space<vmem>>, %arg9: memref<2x128xf32, #tpu.memory_space<vmem>>, %arg10: memref<128x128xf32, #tpu.memory_space<vmem>>, %arg11: memref<2x128xf32, #tpu.memory_space<vmem>>, %arg12: memref<128x128xf32, #tpu.memory_space<vmem>>, %arg13: memref<2x128xf32, #tpu.memory_space<vmem>>, %arg14: memref<128x256xf32, #tpu.memory_space<vmem>>, %arg15: memref<2x256xf32, #tpu.memory_space<vmem>>, %arg16: memref<256x256xf32, #tpu.memory_space<vmem>>, %arg17: memref<2x256xf32, #tpu.memory_space<vmem>>, %arg18: memref<128x64xf32, #tpu.memory_space<vmem>>, %arg19: memref<2x64xf32, #tpu.memory_space<vmem>>, %arg20: memref<64x128xf32, #tpu.memory_space<vmem>>, %arg21: memref<2x128xf32, #tpu.memory_space<vmem>>, %arg22: memref<64x128xf32, #tpu.memory_space<vmem>>, %arg23: memref<64x128xf32, #tpu.memory_space<vmem>>, %arg24: memref<64x256xf32, #tpu.memory_space<vmem>>) attributes {dimension_semantics = [#tpu.dimension_semantics<parallel>], iteration_bounds = array<i64: 2>, scalar_prefetch = 0 : i64, scratch_operands = 0 : i64, tpu.core_type = #tpu.core_type<tc>, window_params = [{transform_indices = @transform_0, window_bounds = array<i64: 64, 256>}, {pipeline_mode = #tpu.pipeline_mode<synchronous>, transform_indices = @transform_1, window_bounds = array<i64: 256, 256>}, {pipeline_mode = #tpu.pipeline_mode<synchronous>, transform_indices = @transform_2, window_bounds = array<i64: 2, 256>}, {pipeline_mode = #tpu.pipeline_mode<synchronous>, transform_indices = @transform_3, window_bounds = array<i64: 256, 128>}, {pipeline_mode = #tpu.pipeline_mode<synchronous>, transform_indices = @transform_4, window_bounds = array<i64: 2, 128>}, {pipeline_mode = #tpu.pipeline_mode<synchronous>, transform_indices = @transform_5, window_bounds = array<i64: 128, 128>}, {pipeline_mode = #tpu.pipeline_mode<synchronous>, transform_indices = @transform_6, window_bounds = array<i64: 2, 128>}, {pipeline_mode = #tpu.pipeline_mode<synchronous>, transform_indices = @transform_7, window_bounds = array<i64: 128, 128>}, {pipeline_mode = #tpu.pipeline_mode<synchronous>, transform_indices = @transform_8, window_bounds = array<i64: 2, 128>}, {pipeline_mode = #tpu.pipeline_mode<synchronous>, transform_indices = @transform_9, window_bounds = array<i64: 128, 128>}, {pipeline_mode = #tpu.pipeline_mode<synchronous>, transform_indices = @transform_10, window_bounds = array<i64: 2, 128>}, {pipeline_mode = #tpu.pipeline_mode<synchronous>, transform_indices = @transform_11, window_bounds = array<i64: 128, 128>}, {pipeline_mode = #tpu.pipeline_mode<synchronous>, transform_indices = @transform_12, window_bounds = array<i64: 2, 128>}, {pipeline_mode = #tpu.pipeline_mode<synchronous>, transform_indices = @transform_13, window_bounds = array<i64: 128, 256>}, {pipeline_mode = #tpu.pipeline_mode<synchronous>, transform_indices = @transform_14, window_bounds = array<i64: 2, 256>}, {pipeline_mode = #tpu.pipeline_mode<synchronous>, transform_indices = @transform_15, window_bounds = array<i64: 256, 256>}, {pipeline_mode = #tpu.pipeline_mode<synchronous>, transform_indices = @transform_16, window_bounds = array<i64: 2, 256>}, {pipeline_mode = #tpu.pipeline_mode<synchronous>, transform_indices = @transform_17, window_bounds = array<i64: 128, 64>}, {pipeline_mode = #tpu.pipeline_mode<synchronous>, transform_indices = @transform_18, window_bounds = array<i64: 2, 64>}, {pipeline_mode = #tpu.pipeline_mode<synchronous>, transform_indices = @transform_19, window_bounds = array<i64: 64, 128>}, {pipeline_mode = #tpu.pipeline_mode<synchronous>, transform_indices = @transform_20, window_bounds = array<i64: 2, 128>}, {transform_indices = @transform_21, window_bounds = array<i64: 64, 128>}, {transform_indices = @transform_22, window_bounds = array<i64: 64, 128>}, {transform_indices = @transform_23, window_bounds = array<i64: 64, 256>}]} {
    %c0 = arith.constant 0 : index
    %c0_0 = arith.constant 0 : index
    %0 = vector.load %arg1[%c0, %c0_0] : memref<64x256xf32, #tpu.memory_space<vmem>>, vector<64x256xf32>
    %c0_1 = arith.constant 0 : index
    %c0_2 = arith.constant 0 : index
    %1 = vector.load %arg2[%c0_1, %c0_2] : memref<256x256xf32, #tpu.memory_space<vmem>>, vector<256x256xf32>
    %cst = arith.constant dense<0.000000e+00> : vector<64x256xf32>
    %2 = tpu.matmul %0, %1, %cst {dimension_numbers = #tpu.dot_dimension_numbers<[1], [0], [0], [1], [0, 0, 1, 1], [], []>} : vector<64x256xf32>, vector<256x256xf32>, vector<64x256xf32> -> vector<64x256xf32>
    %c0_3 = arith.constant 0 : index
    %c0_4 = arith.constant 0 : index
    %3 = vector.load %arg3[%c0_3, %c0_4] : memref<2x256xf32, #tpu.memory_space<vmem>>, vector<2x256xf32>
    %4 = vector.extract_strided_slice %3 {offsets = [0, 0], sizes = [1, 256], strides = [1, 1]} : vector<2x256xf32> to vector<1x256xf32>
    %5 = vector.broadcast %4 : vector<1x256xf32> to vector<64x256xf32>
    %6 = arith.mulf %2, %5 : vector<64x256xf32>
    %7 = vector.extract_strided_slice %3 {offsets = [1, 0], sizes = [1, 256], strides = [1, 1]} : vector<2x256xf32> to vector<1x256xf32>
    %8 = vector.broadcast %7 : vector<1x256xf32> to vector<64x256xf32>
    %9 = arith.addf %6, %8 : vector<64x256xf32>
    %10 = math.tanh %9 : vector<64x256xf32>
    %c0_5 = arith.constant 0 : index
    %c0_6 = arith.constant 0 : index
    %11 = vector.load %arg4[%c0_5, %c0_6] : memref<256x128xf32, #tpu.memory_space<vmem>>, vector<256x128xf32>
    %cst_7 = arith.constant dense<0.000000e+00> : vector<64x128xf32>
    %12 = tpu.matmul %10, %11, %cst_7 {dimension_numbers = #tpu.dot_dimension_numbers<[1], [0], [0], [1], [0, 0, 1, 1], [], []>} : vector<64x256xf32>, vector<256x128xf32>, vector<64x128xf32> -> vector<64x128xf32>
    %c0_8 = arith.constant 0 : index
    %c0_9 = arith.constant 0 : index
    %13 = vector.load %arg5[%c0_8, %c0_9] : memref<2x128xf32, #tpu.memory_space<vmem>>, vector<2x128xf32>
    %14 = vector.extract_strided_slice %13 {offsets = [0, 0], sizes = [1, 128], strides = [1, 1]} : vector<2x128xf32> to vector<1x128xf32>
    %15 = vector.broadcast %14 : vector<1x128xf32> to vector<64x128xf32>
    %16 = arith.mulf %12, %15 : vector<64x128xf32>
    %17 = vector.extract_strided_slice %13 {offsets = [1, 0], sizes = [1, 128], strides = [1, 1]} : vector<2x128xf32> to vector<1x128xf32>
    %18 = vector.broadcast %17 : vector<1x128xf32> to vector<64x128xf32>
    %19 = arith.addf %16, %18 : vector<64x128xf32>
    %20 = math.tanh %19 : vector<64x128xf32>
    %c0_10 = arith.constant 0 : index
    %c0_11 = arith.constant 0 : index
    %21 = vector.load %arg6[%c0_10, %c0_11] : memref<128x128xf32, #tpu.memory_space<vmem>>, vector<128x128xf32>
    %cst_12 = arith.constant dense<0.000000e+00> : vector<64x128xf32>
    %22 = tpu.matmul %20, %21, %cst_12 {dimension_numbers = #tpu.dot_dimension_numbers<[1], [0], [0], [1], [0, 0, 1, 1], [], []>} : vector<64x128xf32>, vector<128x128xf32>, vector<64x128xf32> -> vector<64x128xf32>
    %c0_13 = arith.constant 0 : index
    %c0_14 = arith.constant 0 : index
    %23 = vector.load %arg7[%c0_13, %c0_14] : memref<2x128xf32, #tpu.memory_space<vmem>>, vector<2x128xf32>
    %24 = vector.extract_strided_slice %23 {offsets = [0, 0], sizes = [1, 128], strides = [1, 1]} : vector<2x128xf32> to vector<1x128xf32>
    %25 = vector.broadcast %24 : vector<1x128xf32> to vector<64x128xf32>
    %26 = arith.mulf %22, %25 : vector<64x128xf32>
    %27 = vector.extract_strided_slice %23 {offsets = [1, 0], sizes = [1, 128], strides = [1, 1]} : vector<2x128xf32> to vector<1x128xf32>
    %28 = vector.broadcast %27 : vector<1x128xf32> to vector<64x128xf32>
    %29 = arith.addf %26, %28 : vector<64x128xf32>
    %30 = math.tanh %29 : vector<64x128xf32>
    %c0_15 = arith.constant 0 : index
    %c0_16 = arith.constant 0 : index
    %31 = vector.load %arg8[%c0_15, %c0_16] : memref<128x128xf32, #tpu.memory_space<vmem>>, vector<128x128xf32>
    %cst_17 = arith.constant dense<0.000000e+00> : vector<64x128xf32>
    %32 = tpu.matmul %30, %31, %cst_17 {dimension_numbers = #tpu.dot_dimension_numbers<[1], [0], [0], [1], [0, 0, 1, 1], [], []>} : vector<64x128xf32>, vector<128x128xf32>, vector<64x128xf32> -> vector<64x128xf32>
    %c0_18 = arith.constant 0 : index
    %c0_19 = arith.constant 0 : index
    %33 = vector.load %arg9[%c0_18, %c0_19] : memref<2x128xf32, #tpu.memory_space<vmem>>, vector<2x128xf32>
    %34 = vector.extract_strided_slice %33 {offsets = [0, 0], sizes = [1, 128], strides = [1, 1]} : vector<2x128xf32> to vector<1x128xf32>
    %35 = vector.broadcast %34 : vector<1x128xf32> to vector<64x128xf32>
    %36 = arith.mulf %32, %35 : vector<64x128xf32>
    %37 = vector.extract_strided_slice %33 {offsets = [1, 0], sizes = [1, 128], strides = [1, 1]} : vector<2x128xf32> to vector<1x128xf32>
    %38 = vector.broadcast %37 : vector<1x128xf32> to vector<64x128xf32>
    %39 = arith.addf %36, %38 : vector<64x128xf32>
    %c0_20 = arith.constant 0 : index
    %c0_21 = arith.constant 0 : index
    %40 = vector.load %arg22[%c0_20, %c0_21] : memref<64x128xf32, #tpu.memory_space<vmem>>, vector<64x128xf32>
    tpu.vector_store %arg22[%c0_20, %c0_21], %39 {strides = array<i32>} : memref<64x128xf32, #tpu.memory_space<vmem>>, vector<64x128xf32>,
    %c0_22 = arith.constant 0 : index
    %c0_23 = arith.constant 0 : index
    %41 = vector.load %arg10[%c0_22, %c0_23] : memref<128x128xf32, #tpu.memory_space<vmem>>, vector<128x128xf32>
    %cst_24 = arith.constant dense<0.000000e+00> : vector<64x128xf32>
    %42 = tpu.matmul %39, %41, %cst_24 {dimension_numbers = #tpu.dot_dimension_numbers<[1], [0], [0], [1], [0, 0, 1, 1], [], []>} : vector<64x128xf32>, vector<128x128xf32>, vector<64x128xf32> -> vector<64x128xf32>
    %c0_25 = arith.constant 0 : index
    %c0_26 = arith.constant 0 : index
    %43 = vector.load %arg11[%c0_25, %c0_26] : memref<2x128xf32, #tpu.memory_space<vmem>>, vector<2x128xf32>
    %44 = vector.extract_strided_slice %43 {offsets = [0, 0], sizes = [1, 128], strides = [1, 1]} : vector<2x128xf32> to vector<1x128xf32>
    %45 = vector.broadcast %44 : vector<1x128xf32> to vector<64x128xf32>
    %46 = arith.mulf %42, %45 : vector<64x128xf32>
    %47 = vector.extract_strided_slice %43 {offsets = [1, 0], sizes = [1, 128], strides = [1, 1]} : vector<2x128xf32> to vector<1x128xf32>
    %48 = vector.broadcast %47 : vector<1x128xf32> to vector<64x128xf32>
    %49 = arith.addf %46, %48 : vector<64x128xf32>
    %50 = math.tanh %49 : vector<64x128xf32>
    %c0_27 = arith.constant 0 : index
    %c0_28 = arith.constant 0 : index
    %51 = vector.load %arg12[%c0_27, %c0_28] : memref<128x128xf32, #tpu.memory_space<vmem>>, vector<128x128xf32>
    %cst_29 = arith.constant dense<0.000000e+00> : vector<64x128xf32>
    %52 = tpu.matmul %50, %51, %cst_29 {dimension_numbers = #tpu.dot_dimension_numbers<[1], [0], [0], [1], [0, 0, 1, 1], [], []>} : vector<64x128xf32>, vector<128x128xf32>, vector<64x128xf32> -> vector<64x128xf32>
    %c0_30 = arith.constant 0 : index
    %c0_31 = arith.constant 0 : index
    %53 = vector.load %arg13[%c0_30, %c0_31] : memref<2x128xf32, #tpu.memory_space<vmem>>, vector<2x128xf32>
    %54 = vector.extract_strided_slice %53 {offsets = [0, 0], sizes = [1, 128], strides = [1, 1]} : vector<2x128xf32> to vector<1x128xf32>
    %55 = vector.broadcast %54 : vector<1x128xf32> to vector<64x128xf32>
    %56 = arith.mulf %52, %55 : vector<64x128xf32>
    %57 = vector.extract_strided_slice %53 {offsets = [1, 0], sizes = [1, 128], strides = [1, 1]} : vector<2x128xf32> to vector<1x128xf32>
    %58 = vector.broadcast %57 : vector<1x128xf32> to vector<64x128xf32>
    %59 = arith.addf %56, %58 : vector<64x128xf32>
    %60 = math.tanh %59 : vector<64x128xf32>
    %c0_32 = arith.constant 0 : index
    %c0_33 = arith.constant 0 : index
    %61 = vector.load %arg14[%c0_32, %c0_33] : memref<128x256xf32, #tpu.memory_space<vmem>>, vector<128x256xf32>
    %cst_34 = arith.constant dense<0.000000e+00> : vector<64x256xf32>
    %62 = tpu.matmul %60, %61, %cst_34 {dimension_numbers = #tpu.dot_dimension_numbers<[1], [0], [0], [1], [0, 0, 1, 1], [], []>} : vector<64x128xf32>, vector<128x256xf32>, vector<64x256xf32> -> vector<64x256xf32>
    %c0_35 = arith.constant 0 : index
    %c0_36 = arith.constant 0 : index
    %63 = vector.load %arg15[%c0_35, %c0_36] : memref<2x256xf32, #tpu.memory_space<vmem>>, vector<2x256xf32>
    %64 = vector.extract_strided_slice %63 {offsets = [0, 0], sizes = [1, 256], strides = [1, 1]} : vector<2x256xf32> to vector<1x256xf32>
    %65 = vector.broadcast %64 : vector<1x256xf32> to vector<64x256xf32>
    %66 = arith.mulf %62, %65 : vector<64x256xf32>
    %67 = vector.extract_strided_slice %63 {offsets = [1, 0], sizes = [1, 256], strides = [1, 1]} : vector<2x256xf32> to vector<1x256xf32>
    %68 = vector.broadcast %67 : vector<1x256xf32> to vector<64x256xf32>
    %69 = arith.addf %66, %68 : vector<64x256xf32>
    %70 = math.tanh %69 : vector<64x256xf32>
    %c0_37 = arith.constant 0 : index
    %c0_38 = arith.constant 0 : index
    %71 = vector.load %arg16[%c0_37, %c0_38] : memref<256x256xf32, #tpu.memory_space<vmem>>, vector<256x256xf32>
    %cst_39 = arith.constant dense<0.000000e+00> : vector<64x256xf32>
    %72 = tpu.matmul %70, %71, %cst_39 {dimension_numbers = #tpu.dot_dimension_numbers<[1], [0], [0], [1], [0, 0, 1, 1], [], []>} : vector<64x256xf32>, vector<256x256xf32>, vector<64x256xf32> -> vector<64x256xf32>
    %c0_40 = arith.constant 0 : index
    %c0_41 = arith.constant 0 : index
    %73 = vector.load %arg17[%c0_40, %c0_41] : memref<2x256xf32, #tpu.memory_space<vmem>>, vector<2x256xf32>
    %74 = vector.extract_strided_slice %73 {offsets = [0, 0], sizes = [1, 256], strides = [1, 1]} : vector<2x256xf32> to vector<1x256xf32>
    %75 = vector.broadcast %74 : vector<1x256xf32> to vector<64x256xf32>
    %76 = arith.mulf %72, %75 : vector<64x256xf32>
    %77 = vector.extract_strided_slice %73 {offsets = [1, 0], sizes = [1, 256], strides = [1, 1]} : vector<2x256xf32> to vector<1x256xf32>
    %78 = vector.broadcast %77 : vector<1x256xf32> to vector<64x256xf32>
    %79 = arith.addf %76, %78 : vector<64x256xf32>
    %c0_42 = arith.constant 0 : index
    %c0_43 = arith.constant 0 : index
    %80 = vector.load %arg24[%c0_42, %c0_43] : memref<64x256xf32, #tpu.memory_space<vmem>>, vector<64x256xf32>
    tpu.vector_store %arg24[%c0_42, %c0_43], %79 {strides = array<i32>} : memref<64x256xf32, #tpu.memory_space<vmem>>, vector<64x256xf32>,
    %c0_44 = arith.constant 0 : index
    %c0_45 = arith.constant 0 : index
    %81 = vector.load %arg18[%c0_44, %c0_45] : memref<128x64xf32, #tpu.memory_space<vmem>>, vector<128x64xf32>
    %cst_46 = arith.constant dense<0.000000e+00> : vector<64x64xf32>
    %82 = tpu.matmul %39, %81, %cst_46 {dimension_numbers = #tpu.dot_dimension_numbers<[1], [0], [0], [1], [0, 0, 1, 1], [], []>} : vector<64x128xf32>, vector<128x64xf32>, vector<64x64xf32> -> vector<64x64xf32>
    %c0_47 = arith.constant 0 : index
    %c0_48 = arith.constant 0 : index
    %83 = vector.load %arg19[%c0_47, %c0_48] : memref<2x64xf32, #tpu.memory_space<vmem>>, vector<2x64xf32>
    %84 = vector.extract_strided_slice %83 {offsets = [0, 0], sizes = [1, 64], strides = [1, 1]} : vector<2x64xf32> to vector<1x64xf32>
    %85 = vector.broadcast %84 : vector<1x64xf32> to vector<64x64xf32>
    %86 = arith.mulf %82, %85 : vector<64x64xf32>
    %87 = vector.extract_strided_slice %83 {offsets = [1, 0], sizes = [1, 64], strides = [1, 1]} : vector<2x64xf32> to vector<1x64xf32>
    %88 = vector.broadcast %87 : vector<1x64xf32> to vector<64x64xf32>
    %89 = arith.addf %86, %88 : vector<64x64xf32>
    %90 = math.tanh %89 : vector<64x64xf32>
    %c0_49 = arith.constant 0 : index
    %c0_50 = arith.constant 0 : index
    %91 = vector.load %arg20[%c0_49, %c0_50] : memref<64x128xf32, #tpu.memory_space<vmem>>, vector<64x128xf32>
    %cst_51 = arith.constant dense<0.000000e+00> : vector<64x128xf32>
    %92 = tpu.matmul %90, %91, %cst_51 {dimension_numbers = #tpu.dot_dimension_numbers<[1], [0], [0], [1], [0, 0, 1, 1], [], []>} : vector<64x64xf32>, vector<64x128xf32>, vector<64x128xf32> -> vector<64x128xf32>
    %c0_52 = arith.constant 0 : index
    %c0_53 = arith.constant 0 : index
    %93 = vector.load %arg21[%c0_52, %c0_53] : memref<2x128xf32, #tpu.memory_space<vmem>>, vector<2x128xf32>
    %94 = vector.extract_strided_slice %93 {offsets = [0, 0], sizes = [1, 128], strides = [1, 1]} : vector<2x128xf32> to vector<1x128xf32>
    %95 = vector.broadcast %94 : vector<1x128xf32> to vector<64x128xf32>
    %96 = arith.mulf %92, %95 : vector<64x128xf32>
    %97 = vector.extract_strided_slice %93 {offsets = [1, 0], sizes = [1, 128], strides = [1, 1]} : vector<2x128xf32> to vector<1x128xf32>
    %98 = vector.broadcast %97 : vector<1x128xf32> to vector<64x128xf32>
    %99 = arith.addf %96, %98 : vector<64x128xf32>
    %c0_54 = arith.constant 0 : index
    %c0_55 = arith.constant 0 : index
    %100 = vector.load %arg23[%c0_54, %c0_55] : memref<64x128xf32, #tpu.memory_space<vmem>>, vector<64x128xf32>
    tpu.vector_store %arg23[%c0_54, %c0_55], %99 {strides = array<i32>} : memref<64x128xf32, #tpu.memory_space<vmem>>, vector<64x128xf32>,
    return
  }
  func.func @transform_0(%arg0: i32) -> (i32, i32) {
    %c0_i32 = arith.constant 0 : i32
    %c0_i32_0 = arith.constant 0 : i32
    return %arg0, %c0_i32 : i32, i32
  }
  func.func @transform_1(%arg0: i32) -> (i32, i32) {
    %c0_i32 = arith.constant 0 : i32
    %c0_i32_0 = arith.constant 0 : i32
    %c0_i32_1 = arith.constant 0 : i32
    return %c0_i32, %c0_i32_0 : i32, i32
  }
  func.func @transform_2(%arg0: i32) -> (i32, i32) {
    %c0_i32 = arith.constant 0 : i32
    %c0_i32_0 = arith.constant 0 : i32
    %c0_i32_1 = arith.constant 0 : i32
    return %c0_i32, %c0_i32_0 : i32, i32
  }
  func.func @transform_3(%arg0: i32) -> (i32, i32) {
    %c0_i32 = arith.constant 0 : i32
    %c0_i32_0 = arith.constant 0 : i32
    %c0_i32_1 = arith.constant 0 : i32
    return %c0_i32, %c0_i32_0 : i32, i32
  }
  func.func @transform_4(%arg0: i32) -> (i32, i32) {
    %c0_i32 = arith.constant 0 : i32
    %c0_i32_0 = arith.constant 0 : i32
    %c0_i32_1 = arith.constant 0 : i32
    return %c0_i32, %c0_i32_0 : i32, i32
  }
  func.func @transform_5(%arg0: i32) -> (i32, i32) {
    %c0_i32 = arith.constant 0 : i32
    %c0_i32_0 = arith.constant 0 : i32
    %c0_i32_1 = arith.constant 0 : i32
    return %c0_i32, %c0_i32_0 : i32, i32
  }
  func.func @transform_6(%arg0: i32) -> (i32, i32) {
    %c0_i32 = arith.constant 0 : i32
    %c0_i32_0 = arith.constant 0 : i32
    %c0_i32_1 = arith.constant 0 : i32
    return %c0_i32, %c0_i32_0 : i32, i32
  }
  func.func @transform_7(%arg0: i32) -> (i32, i32) {
    %c0_i32 = arith.constant 0 : i32
    %c0_i32_0 = arith.constant 0 : i32
    %c0_i32_1 = arith.constant 0 : i32
    return %c0_i32, %c0_i32_0 : i32, i32
  }
  func.func @transform_8(%arg0: i32) -> (i32, i32) {
    %c0_i32 = arith.constant 0 : i32
    %c0_i32_0 = arith.constant 0 : i32
    %c0_i32_1 = arith.constant 0 : i32
    return %c0_i32, %c0_i32_0 : i32, i32
  }
  func.func @transform_9(%arg0: i32) -> (i32, i32) {
    %c0_i32 = arith.constant 0 : i32
    %c0_i32_0 = arith.constant 0 : i32
    %c0_i32_1 = arith.constant 0 : i32
    return %c0_i32, %c0_i32_0 : i32, i32
  }
  func.func @transform_10(%arg0: i32) -> (i32, i32) {
    %c0_i32 = arith.constant 0 : i32
    %c0_i32_0 = arith.constant 0 : i32
    %c0_i32_1 = arith.constant 0 : i32
    return %c0_i32, %c0_i32_0 : i32, i32
  }
  func.func @transform_11(%arg0: i32) -> (i32, i32) {
    %c0_i32 = arith.constant 0 : i32
    %c0_i32_0 = arith.constant 0 : i32
    %c0_i32_1 = arith.constant 0 : i32
    return %c0_i32, %c0_i32_0 : i32, i32
  }
  func.func @transform_12(%arg0: i32) -> (i32, i32) {
    %c0_i32 = arith.constant 0 : i32
    %c0_i32_0 = arith.constant 0 : i32
    %c0_i32_1 = arith.constant 0 : i32
    return %c0_i32, %c0_i32_0 : i32, i32
  }
  func.func @transform_13(%arg0: i32) -> (i32, i32) {
    %c0_i32 = arith.constant 0 : i32
    %c0_i32_0 = arith.constant 0 : i32
    %c0_i32_1 = arith.constant 0 : i32
    return %c0_i32, %c0_i32_0 : i32, i32
  }
  func.func @transform_14(%arg0: i32) -> (i32, i32) {
    %c0_i32 = arith.constant 0 : i32
    %c0_i32_0 = arith.constant 0 : i32
    %c0_i32_1 = arith.constant 0 : i32
    return %c0_i32, %c0_i32_0 : i32, i32
  }
  func.func @transform_15(%arg0: i32) -> (i32, i32) {
    %c0_i32 = arith.constant 0 : i32
    %c0_i32_0 = arith.constant 0 : i32
    %c0_i32_1 = arith.constant 0 : i32
    return %c0_i32, %c0_i32_0 : i32, i32
  }
  func.func @transform_16(%arg0: i32) -> (i32, i32) {
    %c0_i32 = arith.constant 0 : i32
    %c0_i32_0 = arith.constant 0 : i32
    %c0_i32_1 = arith.constant 0 : i32
    return %c0_i32, %c0_i32_0 : i32, i32
  }
  func.func @transform_17(%arg0: i32) -> (i32, i32) {
    %c0_i32 = arith.constant 0 : i32
    %c0_i32_0 = arith.constant 0 : i32
    %c0_i32_1 = arith.constant 0 : i32
    return %c0_i32, %c0_i32_0 : i32, i32
  }
  func.func @transform_18(%arg0: i32) -> (i32, i32) {
    %c0_i32 = arith.constant 0 : i32
    %c0_i32_0 = arith.constant 0 : i32
    %c0_i32_1 = arith.constant 0 : i32
    return %c0_i32, %c0_i32_0 : i32, i32
  }
  func.func @transform_19(%arg0: i32) -> (i32, i32) {
    %c0_i32 = arith.constant 0 : i32
    %c0_i32_0 = arith.constant 0 : i32
    %c0_i32_1 = arith.constant 0 : i32
    return %c0_i32, %c0_i32_0 : i32, i32
  }
  func.func @transform_20(%arg0: i32) -> (i32, i32) {
    %c0_i32 = arith.constant 0 : i32
    %c0_i32_0 = arith.constant 0 : i32
    %c0_i32_1 = arith.constant 0 : i32
    return %c0_i32, %c0_i32_0 : i32, i32
  }
  func.func @transform_21(%arg0: i32) -> (i32, i32) {
    %c0_i32 = arith.constant 0 : i32
    %c0_i32_0 = arith.constant 0 : i32
    return %arg0, %c0_i32 : i32, i32
  }
  func.func @transform_22(%arg0: i32) -> (i32, i32) {
    %c0_i32 = arith.constant 0 : i32
    %c0_i32_0 = arith.constant 0 : i32
    return %arg0, %c0_i32 : i32, i32
  }
  func.func @transform_23(%arg0: i32) -> (i32, i32) {
    %c0_i32 = arith.constant 0 : i32
    %c0_i32_0 = arith.constant 0 : i32
    return %arg0, %c0_i32 : i32, i32
  }
}

</mosaic_0001>

<bundles_post_ra>
// kernel: tpu_custom_call.1
= control target key start
LH: loop header
LB: loop body
LE: loop exit
PB: predicated region body
PF: predicated region fallthrough
CT: control target
= control target key end

     0   :  { %s6177_s0 = inlined_call_operand.hbm [shape: f32[128,256], index: 0, kind: input, shape index: {}]   ;;  %s6178_s1 = inlined_call_operand.hbm [shape: f32[256,256], index: 1, kind: input, shape index: {}]   ;;  %s6179_s2 = inlined_call_operand.hbm [shape: f32[2,256], index: 2, kind: input, shape index: {}]   ;;  %s6180_s3 = inlined_call_operand.hbm [shape: f32[256,128], index: 3, kind: input, shape index: {}]   ;;  %s6181_s4 = inlined_call_operand.hbm [shape: f32[2,128], index: 4, kind: input, shape index: {}]   ;;  %s6182_s5 = inlined_call_operand.vmem [shape: f32[128,128], index: 5, kind: input, shape index: {}]   ;;  %s6183_s6 = inlined_call_operand.hbm [shape: f32[2,128], index: 6, kind: input, shape index: {}]   ;;  %s6184_s7 = inlined_call_operand.hbm [shape: f32[128,128], index: 7, kind: input, shape index: {}]   ;;  %s6185_s8 = inlined_call_operand.hbm [shape: f32[2,128], index: 8, kind: input, shape index: {}]   ;;  %s6186_s9 = inlined_call_operand.hbm [shape: f32[128,128], index: 9, kind: input, shape index: {}]   ;;  %s6187_s10 = inlined_call_operand.hbm [shape: f32[2,128], index: 10, kind: input, shape index: {}]   ;;  %s6188_s11 = inlined_call_operand.hbm [shape: f32[128,128], index: 11, kind: input, shape index: {}]   ;;  %s6189_s12 = inlined_call_operand.hbm [shape: f32[2,128], index: 12, kind: input, shape index: {}]   ;;  %s6190_s13 = inlined_call_operand.hbm [shape: f32[128,256], index: 13, kind: input, shape index: {}]   ;;  %s6191_s14 = inlined_call_operand.hbm [shape: f32[2,256], index: 14, kind: input, shape index: {}]   ;;  %s6192_s15 = inlined_call_operand.hbm [shape: f32[256,256], index: 15, kind: input, shape index: {}]   ;;  %s6193_s16 = inlined_call_operand.hbm [shape: f32[2,256], index: 16, kind: input, shape index: {}]   ;;  %s6194_s17 = inlined_call_operand.vmem [shape: f32[128,64], index: 17, kind: input, shape index: {}]   ;;  %s6195_s18 = inlined_call_operand.vmem [shape: f32[2,64], index: 18, kind: input, shape index: {}]   ;;  %s6196_s19 = inlined_call_operand.vmem [shape: f32[64,128], index: 19, kind: input, shape index: {}]   ;;  %s6197_s20 = inlined_call_operand.vmem [shape: f32[2,128], index: 20, kind: input, shape index: {}]   ;;  %s6198_s21 = inlined_call_operand.hbm [shape: f32[128,128], index: 21, kind: output, shape index: {0}]   ;;  %s6199_s22 = inlined_call_operand.hbm [shape: f32[128,128], index: 22, kind: output, shape index: {1}]   ;;  %s6200_s23 = inlined_call_operand.hbm [shape: f32[128,256], index: 23, kind: output, shape index: {2}]  }
   0x1   :  { %6242 = sst [smem:[#allocation45_spill]] %s6177_s0 }
   0x2   :  { %6243 = sst [smem:[#allocation46_spill]] %s6178_s1 }
   0x3   :  { %6244 = sst [smem:[#allocation47_spill]] %s6179_s2 }
   0x4   :  { %6245 = sst [smem:[#allocation48_spill]] %s6180_s3 }
   0x5   :  { %6246 = sst [smem:[#allocation49_spill]] %s6181_s4 }
   0x6   :  { %6247 = sst [smem:[#allocation50_spill]] %s6182_s5 }
   0x7   :  { %6248 = sst [smem:[#allocation51_spill]] %s6183_s6 }
   0x8   :  { %6249 = sst [smem:[#allocation52_spill]] %s6184_s7 }
   0x9   :  { %6250 = sst [smem:[#allocation53_spill]] %s6185_s8 }
   0xa   :  { %6251 = sst [smem:[#allocation54_spill]] %s6186_s9 }
   0xb   :  { %6252 = sst [smem:[#allocation55_spill]] %s6187_s10 }
   0xc   :  { %6253 = sst [smem:[#allocation56_spill]] %s6188_s11 }
   0xd   :  { %6254 = sst [smem:[#allocation57_spill]] %s6189_s12 }
   0xe   :  { %6255 = sst [smem:[#allocation58_spill]] %s6190_s13 }
   0xf   :  { %6256 = sst [smem:[#allocation59_spill]] %s6191_s14 }
  0x10   :  { %6257 = sst [smem:[#allocation60_spill]] %s6194_s17 }
  0x11   :  { %6258 = sst [smem:[#allocation61_spill]] %s6195_s18 }
  0x12   :  { %6259 = sst [smem:[#allocation62_spill]] %s6196_s19 }
  0x13   :  { %6260 = sst [smem:[#allocation63_spill]] %s6197_s20 }
  0x14   :  { %6261 = sst [smem:[#allocation64_spill]] %s6198_s21 }
  0x15   :  { %6262 = sst [smem:[#allocation65_spill]] %s6199_s22 }
  0x16   :  { %6263 = sst [smem:[#allocation66_spill]] %s6200_s23 }
  0x17   :  { %29 = vsyncpa [#allocation3], 0 }
  0x18   :  { %31 = vsyncpa [#allocation3 + $0x1], 0 }
  0x19   :  { %32 = vsyncpa [#allocation6], 0 }
  0x1a   :  { %33 = vsyncpa [#allocation9], 0 }
  0x1b   :  { %34 = vsyncpa [#allocation12], 0 }
  0x1c   :  { %35 = vsyncpa [#allocation15], 0 }
  0x1d   :  { %36 = vsyncpa [#allocation18], 0 }
  0x1e   :  { %37 = vsyncpa [#allocation21], 0 }
  0x1f   :  { %38 = vsyncpa [#allocation24], 0 }
  0x20   :  { %39 = vsyncpa [#allocation27], 0 }
  0x21   :  { %40 = vsyncpa [#allocation4], 0 }
  0x22   :  { %42 = vsyncpa [#allocation4 + $0x1], 0 }
  0x23   :  { %43 = vsyncpa [#allocation30], 0 }
  0x24   :  { %45 = vsyncpa [#allocation30 + $0x1], 0  ;;  %s5166_s4 = smov 0   ;;  %s5168_s30 = smov 0  }
  0x25   :  { %s5170_s24 = smov 0   ;;  %s5172_s25 = smov 0  }
  0x26 LB: > { %s5018_s5 = smov [#allocation5]   ;;  %s5187_s26 = sadd.s32 4294967295, %s5016_s25   ;;  %s5016_s25 = sphi %s5172_s25, %s6333_s25   ;;  %s5012_s24 = sphi %s5170_s24, %s6332_s24   ;;  %s5008_s30 = sphi %s5168_s30, %s6331_s30   ;;  %s5004_s4 = sphi %s5166_s4, %s6330_s4  }
  0x27   : > { %s592_s1 = sshll.u32 %s5018_s5, 4  ;;  %6264 = sst [smem:[#allocation43_spill]] %s5187_s26  ;;  %s5192_s1 = int_to_ptr.vmem [resolvable:$true] %s592_s1 }
  0x28   : > { %p3173_p0 = scmp.ge.s32.totalorder %s5016_s25, 1  ;;  %p6222_p1 = scmp.eq.s32.totalorder %s5187_s26, 0 }
  0x29   : > { %p580_p2 = scmp.lt.s32.totalorder %s5016_s25, 3  ;;  %s5019_s6 = smov [#allocation8]  }
  0x2a   : > { %s616_s27 = sshll.u32 %s5019_s6, 4  ;;  %s5020_s28 = smov [#allocation11]   ;;  %s5207_s27 = int_to_ptr.vmem [resolvable:$true] %s616_s27 }
  0x2b   : > { %p5194_p3 = pnand %p3173_p0, %p580_p2  ;;  %s5209_s29 = sshll.u32 %s5020_s28, 4  ;;  %s645_s29 = int_to_ptr.vmem [resolvable:$true] %s5209_s29 }
  0x2c   : > { %s6268_s5 = sld [smem:[#allocation46_spill]] }
  0x2d   : > { %s6265_s2 = scalar_select %p5194_p3, 1, 0 }
  0x2e   : > { %p4116_p5 = pneg %p5194_p3 }
  0x2f   : > { %6266 = sst [smem:[#allocation44_spill]] %s6265_s2 }
  0x30   : > { %p5203_p6 = pnand %p4116_p5, %p6222_p1 }
  0x32   : > { %s4408_s23 = scalar_lea.hbm %s6268_s5, 8192  ;;  %p5219_p8 = pneg %p5203_p6 }
  0x33   : > { %p4409_p7 = scmp.ne.s32.totalorder %s6268_s5, %s4408_s23  ;;  %p4415_p11 = scmp.lt.u32.totalorder %s4408_s23, %s6268_s5 }
  0x35   : > { %p4411_p9 = pnand %p5219_p8, %p4409_p7 }
  0x37   : > { %p4412_p10 = pneg %p4411_p9 }
  0x39   : > { %p4417_p12 = pnand %p4415_p11, %p4412_p10 }
  0x3b   : > { %4420 = shalt.err (!%p4417_p12)
}
  0x3c   : > { %s4421_s20 = scalar_lea.vmem %s5192_s1, 8192  ;;  %p4429_p5 = scmp.lt.s32.totalorder %s5192_s1, %s5192_s1 }
  0x3d   : > { %p4422_p13 = scmp.ne.s32.totalorder %s5192_s1, %s4421_s20  ;;  %p4430_p4 = scmp.lt.s32.totalorder %s4421_s20, %s4421_s20 }
  0x3f   : > { %p4424_p0 = pnand %p4422_p13, %p5219_p8  ;;  %p4431_p7 = por %p4430_p4, %p4429_p5 }
  0x41   : > { %p4425_p2 = pneg %p4424_p0 }
  0x43   : > { %p4432_p9 = pnand %p4431_p7, %p4425_p2 }
  0x45   : > { %4435 = shalt.err (!%p4432_p9)
}
  0x46   : > { %s6218_s22 = smov 256   ;;  %s6220_s21 = smov 16  }
  0x47   : > { %4119 = dma.hbm_to_vmem [thread:$0]  (!%p5203_p6), %s6268_s5, 8192, %s5192_s1, [#allocation6], %s6218_s22, %s6218_s22, %s6220_s21  }
  0x48   : > { %s6270_s18 = sld [smem:[#allocation48_spill]] }
  0x4e   : > { %s4436_s20 = scalar_lea.hbm %s6270_s18, 4096 }
  0x4f   : > { %p4437_p4 = scmp.ne.s32.totalorder %s6270_s18, %s4436_s20  ;;  %p4443_p12 = scmp.lt.u32.totalorder %s4436_s20, %s6270_s18 }
  0x51   : > { %p4439_p10 = pnand %p4437_p4, %p5219_p8 }
  0x53   : > { %p4440_p11 = pneg %p4439_p10 }
  0x55   : > { %p4445_p13 = pnand %p4443_p12, %p4440_p11 }
  0x57   : > { %4448 = shalt.err (!%p4445_p13)
}
  0x58   : > { %s4449_s1 = scalar_lea.vmem %s5207_s27, 4096  ;;  %p4457_p7 = scmp.lt.s32.totalorder %s5207_s27, %s5207_s27 }
  0x59   : > { %p4450_p0 = scmp.ne.s32.totalorder %s5207_s27, %s4449_s1  ;;  %p4458_p9 = scmp.lt.s32.totalorder %s4449_s1, %s4449_s1 }
  0x5b   : > { %p4452_p2 = pnand %p4450_p0, %p5219_p8  ;;  %p4459_p4 = por %p4458_p9, %p4457_p7 }
  0x5d   : > { %p4453_p5 = pneg %p4452_p2 }
  0x5f   : > { %p4460_p10 = pnand %p4459_p4, %p4453_p5 }
  0x61   : > { %4463 = shalt.err (!%p4460_p10)
}
  0x62   : > { %s6224_s17 = smov 128   ;;  %s6226_s19 = smov 8  }
  0x63   : > { %4125 = dma.hbm_to_vmem [thread:$0]  (!%p5203_p6), %s6270_s18, 4096, %s5207_s27, [#allocation9], %s6224_s17, %s6224_s17, %s6226_s19  }
  0x64   : > { %s6271_s0 = sld [smem:[#allocation51_spill]] }
  0x6a   : > { %s4464_s28 = scalar_lea.hbm %s6271_s0, 32 }
  0x6b   : > { %p4465_p11 = scmp.ne.s32.totalorder %s6271_s0, %s4464_s28  ;;  %p4471_p0 = scmp.lt.u32.totalorder %s4464_s28, %s6271_s0 }
  0x6d   : > { %p4467_p12 = pnand %p4465_p11, %p5219_p8 }
  0x6f   : > { %p4468_p13 = pneg %p4467_p12 }
  0x71   : > { %p4473_p2 = pnand %p4471_p0, %p4468_p13 }
  0x73   : > { %4476 = shalt.err (!%p4473_p2)
}
  0x74   : > { %s4477_s26 = scalar_lea.vmem %s645_s29, 32  ;;  %p4485_p4 = scmp.lt.s32.totalorder %s645_s29, %s645_s29 }
  0x75   : > { %p4478_p5 = scmp.ne.s32.totalorder %s645_s29, %s4477_s26  ;;  %p4486_p10 = scmp.lt.s32.totalorder %s4477_s26, %s4477_s26 }
  0x77   : > { %p4480_p7 = pnand %p4478_p5, %p5219_p8  ;;  %p4487_p1 = por %p4486_p10, %p4485_p4 }
  0x79   : > { %p4481_p9 = pneg %p4480_p7 }
  0x7b   : > { %p4488_p3 = pnand %p4487_p1, %p4481_p9 }
  0x7d   : > { %4491 = shalt.err (!%p4488_p3)
}
  0x7e   : > { %4131 = dma.hbm_to_vmem [thread:$0]  (!%p5203_p6), %s6271_s0, 32, %s645_s29, [#allocation12]  }
  0x7f   : > { %s5025_s22 = smov [#allocation14]   ;;  %s5026_s23 = smov [#allocation17]  }
  0x80   : > { %s668_s21 = sshll.u32 %s5025_s22, 4  ;;  %s692_s3 = sshll.u32 %s5026_s23, 4  ;;  %s669_s21 = int_to_ptr.vmem [resolvable:$true] %s668_s21  ;;  %s693_s3 = int_to_ptr.vmem [resolvable:$true] %s692_s3 }
  0x81   : > { %s6272_s8 = sld [smem:[#allocation53_spill]] }
  0x87   : > { %s4492_s1 = scalar_lea.hbm %s6272_s8, 32 }
  0x88   : > { %p4493_p1 = scmp.ne.s32.totalorder %s6272_s8, %s4492_s1  ;;  %p4499_p12 = scmp.lt.u32.totalorder %s4492_s1, %s6272_s8 }
  0x8a   : > { %p4495_p3 = pnand %p4493_p1, %p5219_p8 }
  0x8c   : > { %p4496_p11 = pneg %p4495_p3 }
  0x8e   : > { %p4501_p13 = pnand %p4499_p12, %p4496_p11 }
  0x90   : > { %4504 = shalt.err (!%p4501_p13)
}
  0x91   : > { %s4505_s29 = scalar_lea.vmem %s669_s21, 32  ;;  %p4513_p7 = scmp.lt.s32.totalorder %s669_s21, %s669_s21 }
  0x92   : > { %p4506_p0 = scmp.ne.s32.totalorder %s669_s21, %s4505_s29  ;;  %p4514_p9 = scmp.lt.s32.totalorder %s4505_s29, %s4505_s29 }
  0x94   : > { %p4508_p2 = pnand %p4506_p0, %p5219_p8  ;;  %p4515_p4 = por %p4514_p9, %p4513_p7 }
  0x96   : > { %p4509_p5 = pneg %p4508_p2 }
  0x98   : > { %p4516_p10 = pnand %p4515_p4, %p4509_p5 }
  0x9a   : > { %4519 = shalt.err (!%p4516_p10)
}
  0x9b   : > { %4137 = dma.hbm_to_vmem [thread:$0]  (!%p5203_p6), %s6272_s8, 32, %s669_s21, [#allocation15]  }
  0x9c   : > { %s6273_s10 = sld [smem:[#allocation55_spill]] }
  0xa2   : > { %s4520_s23 = scalar_lea.hbm %s6273_s10, 32 }
  0xa3   : > { %p4521_p1 = scmp.ne.s32.totalorder %s6273_s10, %s4520_s23  ;;  %p4527_p12 = scmp.lt.u32.totalorder %s4520_s23, %s6273_s10 }
  0xa5   : > { %p4523_p3 = pnand %p4521_p1, %p5219_p8 }
  0xa7   : > { %p4524_p11 = pneg %p4523_p3 }
  0xa9   : > { %p4529_p13 = pnand %p4527_p12, %p4524_p11 }
  0xab   : > { %4532 = shalt.err (!%p4529_p13)
}
  0xac   : > { %s4533_s27 = scalar_lea.vmem %s693_s3, 32  ;;  %p4541_p7 = scmp.lt.s32.totalorder %s693_s3, %s693_s3 }
  0xad   : > { %p4534_p0 = scmp.ne.s32.totalorder %s693_s3, %s4533_s27  ;;  %p4542_p9 = scmp.lt.s32.totalorder %s4533_s27, %s4533_s27 }
  0xaf   : > { %p4536_p2 = pnand %p4534_p0, %p5219_p8  ;;  %p4543_p4 = por %p4542_p9, %p4541_p7 }
  0xb1   : > { %p4537_p5 = pneg %p4536_p2 }
  0xb3   : > { %p4544_p10 = pnand %p4543_p4, %p4537_p5 }
  0xb5   : > { %4547 = shalt.err (!%p4544_p10)
}
  0xb6   : > { %4143 = dma.hbm_to_vmem [thread:$0]  (!%p5203_p6), %s6273_s10, 32, %s693_s3, [#allocation18]  }
  0xb7   : > { %s5027_s17 = smov [#allocation20]   ;;  %s5028_s19 = smov [#allocation23]  }
  0xb8   : > { %s716_s2 = sshll.u32 %s5027_s17, 4  ;;  %s740_s22 = sshll.u32 %s5028_s19, 4  ;;  %s717_s2 = int_to_ptr.vmem [resolvable:$true] %s716_s2  ;;  %s741_s22 = int_to_ptr.vmem [resolvable:$true] %s740_s22 }
  0xb9   : > { %s6274_s12 = sld [smem:[#allocation57_spill]] }
  0xbf   : > { %s4548_s20 = scalar_lea.hbm %s6274_s12, 32 }
  0xc0   : > { %p4549_p1 = scmp.ne.s32.totalorder %s6274_s12, %s4548_s20  ;;  %p4555_p12 = scmp.lt.u32.totalorder %s4548_s20, %s6274_s12 }
  0xc2   : > { %p4551_p3 = pnand %p4549_p1, %p5219_p8 }
  0xc4   : > { %p4552_p11 = pneg %p4551_p3 }
  0xc6   : > { %p4557_p13 = pnand %p4555_p12, %p4552_p11 }
  0xc8   : > { %4560 = shalt.err (!%p4557_p13)
}
  0xc9   : > { %s4561_s3 = scalar_lea.vmem %s717_s2, 32  ;;  %p4569_p7 = scmp.lt.s32.totalorder %s717_s2, %s717_s2 }
  0xca   : > { %p4562_p0 = scmp.ne.s32.totalorder %s717_s2, %s4561_s3  ;;  %p4570_p9 = scmp.lt.s32.totalorder %s4561_s3, %s4561_s3 }
  0xcc   : > { %p4564_p2 = pnand %p4562_p0, %p5219_p8  ;;  %p4571_p4 = por %p4570_p9, %p4569_p7 }
  0xce   : > { %p4565_p5 = pneg %p4564_p2 }
  0xd0   : > { %p4572_p10 = pnand %p4571_p4, %p4565_p5 }
  0xd2   : > { %4575 = shalt.err (!%p4572_p10)
}
  0xd3   : > { %4149 = dma.hbm_to_vmem [thread:$0]  (!%p5203_p6), %s6274_s12, 32, %s717_s2, [#allocation21]  }
  0xd4   : > { %s6275_s14 = sld [smem:[#allocation59_spill]] }
  0xda   : > { %s4576_s28 = scalar_lea.hbm %s6275_s14, 64 }
  0xdb   : > { %p4577_p1 = scmp.ne.s32.totalorder %s6275_s14, %s4576_s28  ;;  %p4583_p12 = scmp.lt.u32.totalorder %s4576_s28, %s6275_s14 }
  0xdd   : > { %p4579_p3 = pnand %p4577_p1, %p5219_p8 }
  0xdf   : > { %p4580_p11 = pneg %p4579_p3 }
  0xe1   : > { %p4585_p13 = pnand %p4583_p12, %p4580_p11 }
  0xe3   : > { %4588 = shalt.err (!%p4585_p13)
}
  0xe4   : > { %s4589_s21 = scalar_lea.vmem %s741_s22, 64  ;;  %p4597_p7 = scmp.lt.s32.totalorder %s741_s22, %s741_s22 }
  0xe5   : > { %p4590_p0 = scmp.ne.s32.totalorder %s741_s22, %s4589_s21  ;;  %p4598_p9 = scmp.lt.s32.totalorder %s4589_s21, %s4589_s21 }
  0xe7   : > { %p4592_p2 = pnand %p4590_p0, %p5219_p8  ;;  %p4599_p4 = por %p4598_p9, %p4597_p7 }
  0xe9   : > { %p4593_p5 = pneg %p4592_p2 }
  0xeb   : > { %p4600_p10 = pnand %p4599_p4, %p4593_p5 }
  0xed   : > { %4603 = shalt.err (!%p4600_p10)
}
  0xee   : > { %4155 = dma.hbm_to_vmem [thread:$0]  (!%p5203_p6), %s6275_s14, 64, %s741_s22, [#allocation24]  }
  0xef   : > { %s5029_s29 = smov [#allocation7]   ;;  %s5030_s19 = smov [#allocation10]  }
  0xf0   : > { %s606_s17 = sshll.u32 %s5029_s29, 4  ;;  %s630_s23 = sshll.u32 %s5030_s19, 4  ;;  %s607_s17 = int_to_ptr.vmem [resolvable:$true] %s606_s17  ;;  %s631_s23 = int_to_ptr.vmem [resolvable:$true] %s630_s23 }
  0xf1   : > { %s6276_s1 = sld [smem:[#allocation47_spill]] }
  0xf7   : > { %s4604_s26 = scalar_lea.hbm %s6276_s1, 64 }
  0xf8   : > { %p4605_p1 = scmp.ne.s32.totalorder %s6276_s1, %s4604_s26  ;;  %p4611_p12 = scmp.lt.u32.totalorder %s4604_s26, %s6276_s1 }
  0xfa   : > { %p4607_p3 = pnand %p4605_p1, %p5219_p8 }
  0xfc   : > { %p4608_p11 = pneg %p4607_p3 }
  0xfe   : > { %p4613_p13 = pnand %p4611_p12, %p4608_p11 }
 0x100   : > { %4616 = shalt.err (!%p4613_p13)
}
 0x101   : > { %s4617_s22 = scalar_lea.vmem %s607_s17, 64  ;;  %p4625_p7 = scmp.lt.s32.totalorder %s607_s17, %s607_s17 }
 0x102   : > { %p4618_p0 = scmp.ne.s32.totalorder %s607_s17, %s4617_s22  ;;  %p4626_p9 = scmp.lt.s32.totalorder %s4617_s22, %s4617_s22 }
 0x104   : > { %p4620_p2 = pnand %p4618_p0, %p5219_p8  ;;  %p4627_p4 = por %p4626_p9, %p4625_p7 }
 0x106   : > { %p4621_p5 = pneg %p4620_p2 }
 0x108   : > { %p4628_p10 = pnand %p4627_p4, %p4621_p5 }
 0x10a   : > { %4631 = shalt.err (!%p4628_p10)
}
 0x10b   : > { %4122 = dma.hbm_to_vmem [thread:$0]  (!%p5203_p6), %s6276_s1, 64, %s607_s17, [#allocation6]  }
 0x10c   : > { %s6277_s28 = sld [smem:[#allocation49_spill]] }
 0x112   : > { %s4632_s20 = scalar_lea.hbm %s6277_s28, 32 }
 0x113   : > { %p4633_p1 = scmp.ne.s32.totalorder %s6277_s28, %s4632_s20  ;;  %p4639_p12 = scmp.lt.u32.totalorder %s4632_s20, %s6277_s28 }
 0x115   : > { %p4635_p3 = pnand %p4633_p1, %p5219_p8 }
 0x117   : > { %p4636_p11 = pneg %p4635_p3 }
 0x119   : > { %p4641_p13 = pnand %p4639_p12, %p4636_p11 }
 0x11b   : > { %4644 = shalt.err (!%p4641_p13)
}
 0x11c   : > { %s4645_s22 = scalar_lea.vmem %s631_s23, 32  ;;  %p4653_p7 = scmp.lt.s32.totalorder %s631_s23, %s631_s23 }
 0x11d   : > { %p4646_p0 = scmp.ne.s32.totalorder %s631_s23, %s4645_s22  ;;  %p4654_p9 = scmp.lt.s32.totalorder %s4645_s22, %s4645_s22 }
 0x11f   : > { %p4648_p2 = pnand %p4646_p0, %p5219_p8  ;;  %p4655_p4 = por %p4654_p9, %p4653_p7 }
 0x121   : > { %p4649_p5 = pneg %p4648_p2 }
 0x123   : > { %p4656_p10 = pnand %p4655_p4, %p4649_p5 }
 0x125   : > { %4659 = shalt.err (!%p4656_p10)
}
 0x126   : > { %4128 = dma.hbm_to_vmem [thread:$0]  (!%p5203_p6), %s6277_s28, 32, %s631_s23, [#allocation9]  }
 0x127   : > { %s5031_s29 = smov [#allocation13]   ;;  %s5032_s19 = smov [#allocation16]  }
 0x128   : > { %s654_s0 = sshll.u32 %s5031_s29, 4  ;;  %s678_s20 = sshll.u32 %s5032_s19, 4  ;;  %s655_s0 = int_to_ptr.vmem [resolvable:$true] %s654_s0  ;;  %s679_s20 = int_to_ptr.vmem [resolvable:$true] %s678_s20 }
 0x129   : > { %s6278_s21 = sld [smem:[#allocation52_spill]] }
 0x12f   : > { %s4660_s2 = scalar_lea.hbm %s6278_s21, 2048 }
 0x130   : > { %p4661_p1 = scmp.ne.s32.totalorder %s6278_s21, %s4660_s2  ;;  %p4667_p12 = scmp.lt.u32.totalorder %s4660_s2, %s6278_s21 }
 0x132   : > { %p4663_p3 = pnand %p4661_p1, %p5219_p8 }
 0x134   : > { %p4664_p11 = pneg %p4663_p3 }
 0x136   : > { %p4669_p13 = pnand %p4667_p12, %p4664_p11 }
 0x138   : > { %4672 = shalt.err (!%p4669_p13)
}
 0x139   : > { %s4673_s23 = scalar_lea.vmem %s655_s0, 2048  ;;  %p4681_p7 = scmp.lt.s32.totalorder %s655_s0, %s655_s0 }
 0x13a   : > { %p4674_p0 = scmp.ne.s32.totalorder %s655_s0, %s4673_s23  ;;  %p4682_p9 = scmp.lt.s32.totalorder %s4673_s23, %s4673_s23 }
 0x13c   : > { %p4676_p2 = pnand %p4674_p0, %p5219_p8  ;;  %p4683_p4 = por %p4682_p9, %p4681_p7 }
 0x13e   : > { %p4677_p5 = pneg %p4676_p2 }
 0x140   : > { %p4684_p10 = pnand %p4683_p4, %p4677_p5 }
 0x142   : > { %4687 = shalt.err (!%p4684_p10)
}
 0x143   : > { %s6279_s1 = smov 8   ;;  %s6280_s3 = smov 128  }
 0x144   : > { %4134 = dma.hbm_to_vmem [thread:$0]  (!%p5203_p6), %s6278_s21, 2048, %s655_s0, [#allocation12], %s6280_s3, %s6280_s3, %s6279_s1  }
 0x145   : > { %s6281_s9 = sld [smem:[#allocation54_spill]] }
 0x14b   : > { %s4688_s27 = scalar_lea.hbm %s6281_s9, 2048 }
 0x14c   : > { %p4689_p1 = scmp.ne.s32.totalorder %s6281_s9, %s4688_s27  ;;  %p4695_p12 = scmp.lt.u32.totalorder %s4688_s27, %s6281_s9 }
 0x14e   : > { %p4691_p3 = pnand %p4689_p1, %p5219_p8 }
 0x150   : > { %p4692_p11 = pneg %p4691_p3 }
 0x152   : > { %p4697_p13 = pnand %p4695_p12, %p4692_p11 }
 0x154   : > { %4700 = shalt.err (!%p4697_p13)
}
 0x155   : > { %s4701_s5 = scalar_lea.vmem %s679_s20, 2048  ;;  %p4709_p7 = scmp.lt.s32.totalorder %s679_s20, %s679_s20 }
 0x156   : > { %p4702_p0 = scmp.ne.s32.totalorder %s679_s20, %s4701_s5  ;;  %p4710_p9 = scmp.lt.s32.totalorder %s4701_s5, %s4701_s5 }
 0x158   : > { %p4704_p2 = pnand %p4702_p0, %p5219_p8  ;;  %p4711_p4 = por %p4710_p9, %p4709_p7 }
 0x15a   : > { %p4705_p5 = pneg %p4704_p2 }
 0x15c   : > { %p4712_p10 = pnand %p4711_p4, %p4705_p5 }
 0x15e   : > { %4715 = shalt.err (!%p4712_p10)
}
 0x15f   : > { %4140 = dma.hbm_to_vmem [thread:$0]  (!%p5203_p6), %s6281_s9, 2048, %s679_s20, [#allocation15], %s6280_s3, %s6280_s3, %s6279_s1  }
 0x160   : > { %s5033_s19 = smov [#allocation19]   ;;  %s5034_s27 = smov [#allocation22]  }
 0x161   : > { %s702_s26 = sshll.u32 %s5033_s19, 4  ;;  %s726_s2 = sshll.u32 %s5034_s27, 4  ;;  %s703_s26 = int_to_ptr.vmem [resolvable:$true] %s702_s26  ;;  %s727_s2 = int_to_ptr.vmem [resolvable:$true] %s726_s2 }
 0x162   : > { %s6282_s11 = sld [smem:[#allocation56_spill]] }
 0x168   : > { %s4716_s23 = scalar_lea.hbm %s6282_s11, 2048 }
 0x169   : > { %p4717_p1 = scmp.ne.s32.totalorder %s6282_s11, %s4716_s23  ;;  %p4723_p12 = scmp.lt.u32.totalorder %s4716_s23, %s6282_s11 }
 0x16b   : > { %p4719_p3 = pnand %p4717_p1, %p5219_p8 }
 0x16d   : > { %p4720_p11 = pneg %p4719_p3 }
 0x16f   : > { %p4725_p13 = pnand %p4723_p12, %p4720_p11 }
 0x171   : > { %4728 = shalt.err (!%p4725_p13)
}
 0x172   : > { %s4729_s20 = scalar_lea.vmem %s703_s26, 2048  ;;  %p4737_p7 = scmp.lt.s32.totalorder %s703_s26, %s703_s26 }
 0x173   : > { %p4730_p0 = scmp.ne.s32.totalorder %s703_s26, %s4729_s20  ;;  %p4738_p9 = scmp.lt.s32.totalorder %s4729_s20, %s4729_s20 }
 0x175   : > { %p4732_p2 = pnand %p4730_p0, %p5219_p8  ;;  %p4739_p4 = por %p4738_p9, %p4737_p7 }
 0x177   : > { %p4733_p5 = pneg %p4732_p2 }
 0x179   : > { %p4740_p10 = pnand %p4739_p4, %p4733_p5 }
 0x17b   : > { %4743 = shalt.err (!%p4740_p10)
}
 0x17c   : > { %4146 = dma.hbm_to_vmem [thread:$0]  (!%p5203_p6), %s6282_s11, 2048, %s703_s26, [#allocation18], %s6280_s3, %s6280_s3, %s6279_s1  }
 0x17d   : > { %s6283_s13 = sld [smem:[#allocation58_spill]] }
 0x183   : > { %s4744_s27 = scalar_lea.hbm %s6283_s13, 4096 }
 0x184   : > { %p4745_p1 = scmp.ne.s32.totalorder %s6283_s13, %s4744_s27  ;;  %p4751_p12 = scmp.lt.u32.totalorder %s4744_s27, %s6283_s13 }
 0x186   : > { %p4747_p3 = pnand %p4745_p1, %p5219_p8 }
 0x188   : > { %p4748_p11 = pneg %p4747_p3 }
 0x18a   : > { %p4753_p13 = pnand %p4751_p12, %p4748_p11 }
 0x18c   : > { %4756 = shalt.err (!%p4753_p13)
}
 0x18d   : > { %s4757_s0 = scalar_lea.vmem %s727_s2, 4096  ;;  %p4765_p7 = scmp.lt.s32.totalorder %s727_s2, %s727_s2 }
 0x18e   : > { %p4758_p0 = scmp.ne.s32.totalorder %s727_s2, %s4757_s0  ;;  %p4766_p9 = scmp.lt.s32.totalorder %s4757_s0, %s4757_s0 }
 0x190   : > { %p4760_p2 = pnand %p4758_p0, %p5219_p8  ;;  %p4767_p4 = por %p4766_p9, %p4765_p7 }
 0x192   : > { %p4761_p5 = pneg %p4760_p2 }
 0x194   : > { %p4768_p10 = pnand %p4767_p4, %p4761_p5 }
 0x196   : > { %4771 = shalt.err (!%p4768_p10)
}
 0x197   : > { %s6284_s1 = smov 16   ;;  %s6285_s3 = smov 256  }
 0x198   : > { %4152 = dma.hbm_to_vmem [thread:$0]  (!%p5203_p6), %s6283_s13, 4096, %s727_s2, [#allocation21], %s6285_s3, %s6285_s3, %s6284_s1  }
 0x199   : > { %s5035_s8 = smov [#allocation25]   ;;  %s5036_s29 = smov [#allocation26]  }
 0x19a   : > { %s750_s10 = sshll.u32 %s5035_s8, 4  ;;  %s764_s19 = sshll.u32 %s5036_s29, 4  ;;  %s751_s10 = int_to_ptr.vmem [resolvable:$true] %s750_s10  ;;  %s765_s19 = int_to_ptr.vmem [resolvable:$true] %s764_s19 }
 0x19b   : > { %s4772_s17 = scalar_lea.hbm %s6192_s15, 8192 }
 0x19c   : > { %p4773_p1 = scmp.ne.s32.totalorder %s6192_s15, %s4772_s17  ;;  %p4779_p12 = scmp.lt.u32.totalorder %s4772_s17, %s6192_s15 }
 0x19e   : > { %p4775_p3 = pnand %p4773_p1, %p5219_p8 }
 0x1a0   : > { %p4776_p11 = pneg %p4775_p3 }
 0x1a2   : > { %p4781_p13 = pnand %p4779_p12, %p4776_p11 }
 0x1a4   : > { %4784 = shalt.err (!%p4781_p13)
}
 0x1a5   : > { %s4785_s2 = scalar_lea.vmem %s751_s10, 8192  ;;  %p4793_p7 = scmp.lt.s32.totalorder %s751_s10, %s751_s10 }
 0x1a6   : > { %p4786_p0 = scmp.ne.s32.totalorder %s751_s10, %s4785_s2  ;;  %p4794_p9 = scmp.lt.s32.totalorder %s4785_s2, %s4785_s2 }
 0x1a8   : > { %p4788_p2 = pnand %p4786_p0, %p5219_p8  ;;  %p4795_p4 = por %p4794_p9, %p4793_p7 }
 0x1aa   : > { %p4789_p5 = pneg %p4788_p2 }
 0x1ac   : > { %p4796_p10 = pnand %p4795_p4, %p4789_p5 }
 0x1ae   : > { %4799 = shalt.err (!%p4796_p10)
}
 0x1af   : > { %4158 = dma.hbm_to_vmem [thread:$0]  (!%p5203_p6), %s6192_s15, 8192, %s751_s10, [#allocation24], %s6285_s3, %s6285_s3, %s6284_s1  }
 0x1b0   : > { %s4800_s22 = scalar_lea.hbm %s6193_s16, 64 }
 0x1b1   : > { %p4801_p1 = scmp.ne.s32.totalorder %s6193_s16, %s4800_s22  ;;  %p4807_p12 = scmp.lt.u32.totalorder %s4800_s22, %s6193_s16 }
 0x1b3   : > { %p4803_p3 = pnand %p4801_p1, %p5219_p8 }
 0x1b5   : > { %p4804_p11 = pneg %p4803_p3 }
 0x1b7   : > { %p4809_p13 = pnand %p4807_p12, %p4804_p11 }
 0x1b9   : > { %4812 = shalt.err (!%p4809_p13)
}
 0x1ba   : > { %s4813_s26 = scalar_lea.vmem %s765_s19, 64  ;;  %p4821_p7 = scmp.lt.s32.totalorder %s765_s19, %s765_s19 }
 0x1bb   : > { %p4814_p0 = scmp.ne.s32.totalorder %s765_s19, %s4813_s26  ;;  %p4822_p9 = scmp.lt.s32.totalorder %s4813_s26, %s4813_s26 }
 0x1bd   : > { %p4816_p2 = pnand %p4814_p0, %p5219_p8  ;;  %p4823_p4 = por %p4822_p9, %p4821_p7 }
 0x1bf   : > { %p4817_p5 = pneg %p4816_p2 }
 0x1c1   : > { %p4824_p10 = pnand %p4823_p4, %p4817_p5 }
 0x1c3   : > { %4827 = shalt.err (!%p4824_p10)
}
 0x1c4   : > { %s6286_s6 = sld [smem:[#allocation43_spill]]  ;;  %s6231_s7 = sadd.s32 4294967294, %s5016_s25  }
 0x1c5   : > { %4161 = dma.hbm_to_vmem [thread:$0]  (!%p5203_p6), %s6193_s16, 64, %s765_s19, [#allocation27]  }
 0x1c6   : > { %s5521_s20 = sadd.s32 1, %s5016_s25   ;;  %s58_s8 = sadd.s32 1, %s5012_s24 }
 0x1c7   : > { %s55_s29 = ssub.s32 %s5016_s25, %s5521_s20  ;;  %p65_p8 = scmp.ne.s32.totalorder %s5012_s24, %s5008_s30 }
 0x1c8   : > { %p56_p1 = scmp.eq.s32.totalorder %s55_s29, 0  ;;  %p66_p3 = scmp.eq.s32.totalorder %s5016_s25, 0 }
 0x1c9   : > { %p71_p11 = scmp.ne.s32.totalorder %s5008_s30, %s5004_s4  ;;  %p521_p5 = scmp.eq.s32.totalorder %s6231_s7, 1 }
 0x1ca   : > { %p515_p12 = scmp.eq.s32.totalorder %s6286_s6, 1  ;;  %p67_p13 = por %p66_p3, %p65_p8 }
 0x1cb   : > { %s5533_s27 = scalar_select %p56_p1, %s5012_s24, %s58_s8  }
 0x1cc   : > { %p6287_p0 = scmp.eq.s32.totalorder %s6286_s6, 0  ;;  %p5541_p6 = por %p515_p12, %p65_p8 }
 0x1cd   : > { %p4191_p7 = scmp.lt.s32.totalorder %s5016_s25, 2  ;;  %s787_s17 = sand.u32 1, %s5012_s24  }
 0x1ce   : > { %p5537_p2 = por %p6287_p0, %p71_p11  ;;  %p5549_p9 = por %p521_p5, %p71_p11 }
 0x1cf   : > { %s6289_s19 = scalar_select %p5541_p6, 1, 0 }
 0x1d0   : > { %s6290_s23 = scalar_select %p5549_p9, 1, 0 }
 0x1d1   : > { %s3190_s5 = sshll.u32 %s787_s17, 7  ;;  %s3235_s0 = sshll.u32 %s5016_s25, 11 }
 0x1d2   : > { %s6291_s2 = sld [smem:[#allocation45_spill]]  ;;  %s791_s8 = scalar_lea.vmem [#allocation2], %s3190_s5 }
 0x1d3   : > { %s799_s29 = sshll.u32 %s791_s8, 4  ;;  %p5559_p4 = pnand %p4191_p7, %p67_p13  ;;  %s5563_s29 = int_to_ptr.vmem [resolvable:$true] %s799_s29 }
 0x1d4   : > { %s5565_s9 = scalar_lea.sflag [#allocation3], %s787_s17 }
 0x1d5   : > { %p4830_p8 = pneg %p5559_p4 }
 0x1d8   : > { %s5557_s6 = scalar_lea.hbm %s6291_s2, %s3235_s0  ;;  %s4833_s26 = scalar_lea.hbm %s6291_s2, 4096 }
 0x1d9   : > { %s4828_s11 = scalar_lea.hbm %s5557_s6, 2048  ;;  %p4834_p11 = scmp.lt.u32.totalorder %s5557_s6, %s6291_s2 }
 0x1da   : > { %p4829_p10 = scmp.ne.s32.totalorder %s5557_s6, %s4828_s11  ;;  %p4835_p12 = scmp.lt.u32.totalorder %s4833_s26, %s4828_s11 }
 0x1db   : > { %p4837_p0 = scmp.lt.u32.totalorder %s4828_s11, %s5557_s6 }
 0x1dc   : > { %p4831_p1 = pnand %p4830_p8, %p4829_p10  ;;  %p4836_p13 = por %p4835_p12, %p4834_p11 }
 0x1de   : > { %p4832_p3 = pneg %p4831_p1  ;;  %p4838_p5 = por %p4837_p0, %p4836_p13 }
 0x1e0   : > { %p4839_p7 = pnand %p4838_p5, %p4832_p3 }
 0x1e2   : > { %4842 = shalt.err (!%p4839_p7)
}
 0x1e3   : > { %s4843_s17 = scalar_lea.vmem %s5563_s29, 2048  ;;  %s5037_s5 = smov [#allocation2]  }
 0x1e4   : > { %p4844_p10 = scmp.ne.s32.totalorder %s5563_s29, %s4843_s17  ;;  %s4848_s0 = sshll.u32 %s5037_s5, 4  ;;  %s4849_s0 = int_to_ptr.vmem [resolvable:$false] %s4848_s0 }
 0x1e5   : > { %s4850_s10 = scalar_lea.vmem %s4849_s0, 4096  ;;  %p4851_p6 = scmp.lt.s32.totalorder %s5563_s29, %s4849_s0 }
 0x1e6   : > { %p4846_p1 = pnand %p4844_p10, %p4830_p8  ;;  %p4852_p11 = scmp.lt.s32.totalorder %s4850_s10, %s4843_s17 }
 0x1e8   : > { %p4847_p9 = pneg %p4846_p1  ;;  %p4853_p12 = por %p4852_p11, %p4851_p6 }
 0x1ea   : > { %p4854_p13 = pnand %p4853_p12, %p4847_p9 }
 0x1ec   : > { %4857 = shalt.err (!%p4854_p13)
}
 0x1ed   : > { %4165 = dma.hbm_to_vmem [thread:$0]  (!%p5559_p4), %s5557_s6, 2048, %s5563_s29, %s5565_s9, %s6285_s3, %s6285_s3, %s6284_s1  }
 0x1ee   : > { %s6293_s11 = sld [smem:[#allocation44_spill]] }
 0x1f4   : > { %p6294_p8 = scmp.ne.s32.totalorder %s6293_s11, 0 }
 0x1f5   : > { %s5599_s26 = sand.u32 (!%p6294_p8), 1, %s5008_s30  }
 0x1f6   : > { %811 = sbr.rel (%p6294_p8) target bundleno = 2503 (0x9c7), region = 104  ;;  %s6234_s8 = sshll.u32 (!%p6294_p8), %s5599_s26, 7 }
 0x1f7   : > { %s814_s17 = scalar_lea.sflag (!%p6294_p8), [#allocation3], %s5599_s26  ;;  %s5605_s7 = scalar_lea.vmem (!%p6294_p8), [#allocation2], %s6234_s8 }
 0x1fd   : > { %4959 = dma.done.wait (%p5537_p2), %s814_s17, 2048  }
 0x1fe   : > { %4961 = vsyncadd (%p5537_p2), %s814_s17, 4294965248  ;;  %s6295_s9 = sld [smem:[#allocation43_spill]] }
 0x204   : > { %p6296_p6 = scmp.eq.s32.totalorder %s6295_s9, 0 }
 0x206   : > { %4963 = dma.done.wait (%p6296_p6), [#allocation6], 8256   ;;  %p6297_p9 = pmov %p6296_p6 }
 0x207   : > { %p6298_p4 = pmov %p6296_p6 }
 0x208   : > { %4965 = vsyncadd (%p6297_p9), [#allocation6], 4294959040 }
 0x209   : > { %4967 = dma.done.wait (%p6298_p4), [#allocation9], 4128   ;;  %p6299_p3 = pmov %p6298_p4 }
 0x20b   : > { %4969 = vsyncadd (%p6299_p3), [#allocation9], 4294963168  ;;  %p6300_p0 = pmov %p6299_p3 }
 0x20d   : > { %4971 = dma.done.wait (%p6300_p0), [#allocation12], 2080   ;;  %p6301_p5 = pmov %p6300_p0 }
 0x20e   : > { %p6302_p2 = pmov %p6300_p0 }
 0x20f   : > { %4973 = vsyncadd (%p6301_p5), [#allocation12], 4294965216 }
 0x210   : > { %4975 = dma.done.wait (%p6302_p2), [#allocation15], 2080   ;;  %p6303_p7 = pmov %p6300_p0 }
 0x211   : > { %p6304_p10 = pmov %p6300_p0 }
 0x212   : > { %4977 = vsyncadd (%p6303_p7), [#allocation15], 4294965216 }
 0x213   : > { %4979 = dma.done.wait (%p6304_p10), [#allocation18], 2080   ;;  %p6305_p1 = pmov %p6300_p0 }
 0x214   : > { %p6306_p11 = pmov %p6300_p0 }
 0x215   : > { %4981 = vsyncadd (%p6305_p1), [#allocation18], 4294965216 }
 0x216   : > { %4983 = dma.done.wait (%p6306_p11), [#allocation21], 4128   ;;  %p6307_p12 = pmov %p6300_p0 }
 0x217   : > { %p6308_p13 = pmov %p6300_p0 }
 0x218   : > { %4985 = vsyncadd (%p6307_p12), [#allocation21], 4294963168 }
 0x219   : > { %4987 = dma.done.wait (%p6308_p13), [#allocation24], 8256   ;;  %p6309_p8 = pmov %p6300_p0 }
 0x21a   : > { %p6310_p6 = pmov %p6300_p0 }
 0x21b   : > { %4989 = vsyncadd (%p6309_p8), [#allocation24], 4294959040 }
 0x21c   : > { %4991 = dma.done.wait (%p6310_p6), [#allocation27], 64   ;;  %p6311_p9 = pmov %p6300_p0 }
 0x21d   : > { %v971_v0 = vld [vmem:[#allocation5 + $0x8] sm:$0xff]  ;;  %v973_v1 = vld [vmem:[#allocation5 + $0x18] sm:$0xff]  ;;  %v970_v2 = vld [vmem:[#allocation5] sm:$0xff]  ;;  %s6312_s22 = sld [smem:[#allocation50_spill]]  ;;  %s6233_s6 = sshll.u32 %s5599_s26, 6  ;;  %vm2675_vm0 = vcmask 523264  }
 0x21e   : > { %4993 = vsyncadd (%p6311_p9), [#allocation27], 4294967232  ;;  %v3680_v3 = vpack.c.bf16 %v973_v1, %v971_v0  ;;  %v972_v4 = vld [vmem:[#allocation5 + $0x10] sm:$0xff]  ;;  %v975_v5 = vld [vmem:[#allocation5 + $0x28] sm:$0xff]  ;;  %s5780_s29 = scalar_lea.vmem [#allocation28], %s6233_s6  ;;  %s6313_s10 = sld [smem:[#allocation60_spill]] }
 0x21f   : > { %v977_v6 = vld [vmem:[#allocation5 + $0x38] sm:$0xff]  ;;  %v3682_v7 = vpack.c.bf16 %v972_v4, %v970_v2  ;;  %v974_v9 = vld [vmem:[#allocation5 + $0x20] sm:$0xff]  ;;  %v976_v10 = vld [vmem:[#allocation5 + $0x30] sm:$0xff]  ;;  %s6314_s11 = sld [smem:[#allocation62_spill]]  ;;  %s6315_s17 = sld [smem:[#allocation61_spill]] }
 0x220   : > { %v3684_v8 = vpack.c.bf16 %v977_v6, %v975_v5  ;;  %v979_v11 = vld [vmem:[#allocation5 + $0x48] sm:$0xff]  ;;  %3681 = vmatprep.subr.bf16.mxu0 %v3680_v3  ;;  %v981_v12 = vld [vmem:[#allocation5 + $0x58] sm:$0xff]  ;;  %v3686_v13 = vpack.c.bf16 %v976_v10, %v974_v9  ;;  %v978_v15 = vld [vmem:[#allocation5 + $0x40] sm:$0xff]  ;;  %s6237_s1 = sshll.u32 %s6295_s9, 10  ;;  %s6316_s6 = sld [smem:[#allocation64_spill]] }
 0x221   : > { %3683 = vmatpush1.bf16.msra.mxu0 %v3682_v7  ;;  %v3688_v14 = vpack.c.bf16 %v981_v12, %v979_v11  ;;  %v980_v16 = vld [vmem:[#allocation5 + $0x50] sm:$0xff]  ;;  %v983_v17 = vld [vmem:[#allocation5 + $0x68] sm:$0xff]  ;;  %v985_v18 = vld [vmem:[#allocation5 + $0x78] sm:$0xff]  ;;  %p6317_p3 = scmp.ne.s32.totalorder %s6289_s19, 0  ;;  %s5039_s2 = smov [#allocation28]  }
 0x222   : > { %3685 = vmatprep.subr.bf16.mxu0 %v3684_v8  ;;  %v3690_v19 = vpack.c.bf16 %v980_v16, %v978_v15  ;;  %v3692_v20 = vpack.c.bf16 %v985_v18, %v983_v17  ;;  %v982_v21 = vld [vmem:[#allocation5 + $0x60] sm:$0xff]  ;;  %v984_v22 = vld [vmem:[#allocation5 + $0x70] sm:$0xff]  ;;  %v987_v23 = vld [vmem:[#allocation5 + $0x88] sm:$0xff] }
 0x223   : > { %v989_v24 = vld [vmem:[#allocation5 + $0x98] sm:$0xff]  ;;  %v3694_v25 = vpack.c.bf16 %v984_v22, %v982_v21  ;;  %v986_v27 = vld [vmem:[#allocation5 + $0x80] sm:$0xff]  ;;  %v988_v28 = vld [vmem:[#allocation5 + $0x90] sm:$0xff] }
 0x224   : > { %v3696_v26 = vpack.c.bf16 %v989_v24, %v987_v23  ;;  %v991_v29 = vld [vmem:[#allocation5 + $0xa8] sm:$0xff]  ;;  %v993_v30 = vld [vmem:[#allocation5 + $0xb8] sm:$0xff]  ;;  %v3698_v31 = vpack.c.bf16 %v988_v28, %v986_v27  ;;  %v990_v33 = vld [vmem:[#allocation5 + $0xa0] sm:$0xff] }
 0x225   : > { %3687 = vmatpush1.bf16.msra.mxu0 %v3686_v13  ;;  %v3700_v32 = vpack.c.bf16 %v993_v30, %v991_v29  ;;  %v992_v34 = vld [vmem:[#allocation5 + $0xb0] sm:$0xff]  ;;  %v995_v35 = vld [vmem:[#allocation5 + $0xc8] sm:$0xff]  ;;  %v997_v36 = vld [vmem:[#allocation5 + $0xd8] sm:$0xff] }
 0x226   : > { %3689 = vmatprep.subr.bf16.mxu0 %v3688_v14  ;;  %v3702_v37 = vpack.c.bf16 %v992_v34, %v990_v33  ;;  %v3704_v38 = vpack.c.bf16 %v997_v36, %v995_v35  ;;  %v994_v39 = vld [vmem:[#allocation5 + $0xc0] sm:$0xff]  ;;  %v996_v40 = vld [vmem:[#allocation5 + $0xd0] sm:$0xff]  ;;  %v955_v41 = vld [vmem:[%s5605_s7 + $0x8] sm:$0xff]  ;;  %s5984_s5 = scalar_lea.hbm %s6316_s6, %s6237_s1 }
 0x227   : > { %v999_v42 = vld [vmem:[#allocation5 + $0xe8] sm:$0xff]  ;;  %v1001_v43 = vld [vmem:[#allocation5 + $0xf8] sm:$0xff]  ;;  %1098 = vmatprep.mubr.f32.mxu0 %v955_v41  ;;  %v3706_v44 = vpack.c.bf16 %v996_v40, %v994_v39  ;;  %v998_v46 = vld [vmem:[#allocation5 + $0xe0] sm:$0xff] }
 0x228   : > { %v3708_v45 = vpack.c.bf16 %v1001_v43, %v999_v42  ;;  %v1000_v47 = vld [vmem:[#allocation5 + $0xf0] sm:$0xff]  ;;  %v1003_v48 = vld [vmem:[#allocation5 + $0x108] sm:$0xff]  ;;  %v1005_v49 = vld [vmem:[#allocation5 + $0x118] sm:$0xff] }
 0x229   : > { %3691 = vmatpush1.bf16.msra.mxu0 %v3690_v19  ;;  %v1249_v50 = vld [vmem:[#allocation8 + $0x80] sm:$0xff]  ;;  %v1004_v52 = vld [vmem:[#allocation5 + $0x110] sm:$0xff]  ;;  %v3710_v56 = vpack.c.bf16 %v1000_v47, %v998_v46  ;;  %v1252_v60 = vld [vmem:[#allocation8 + $0x98] sm:$0xff]  ;;  %v3712_v62 = vpack.c.bf16 %v1005_v49, %v1003_v48 }
 0x22a   : > { %3693 = vmatprep.subr.bf16.mxu0 %v3692_v20  ;;  %v1002_v51 = vld [vmem:[#allocation5 + $0x100] sm:$0xff]  ;;  %v1250_v53 = vld [vmem:[#allocation8 + $0x88] sm:$0xff]  ;;  %v1251_v59 = vld [vmem:[#allocation8 + $0x90] sm:$0xff] }
 0x22b   : > { %v1233_v54 = vld [vmem:[#allocation8] sm:$0xff]  ;;  %v1234_v55 = vld [vmem:[#allocation8 + $0x8] sm:$0xff]  ;;  %v3744_v57 = vpack.c.bf16 %v1250_v53, %v1249_v50  ;;  %v1235_v61 = vld [vmem:[#allocation8 + $0x10] sm:$0xff]  ;;  %v3748_v63 = vpack.c.bf16 %v1252_v60, %v1251_v59  ;;  %v3714_v6 = vpack.c.bf16 %v1004_v52, %v1002_v51 }
 0x22c   : > { %v3746_v58 = vpack.c.bf16 %v1234_v55, %v1233_v54  ;;  %v1236_v0 = vld [vmem:[#allocation8 + $0x18] sm:$0xff]  ;;  %v1253_v1 = vld [vmem:[#allocation8 + $0xa0] sm:$0xff]  ;;  %v1254_v2 = vld [vmem:[#allocation8 + $0xa8] sm:$0xff] }
 0x22d   : > { %3695 = vmatpush1.bf16.msra.mxu0 %v3694_v25  ;;  %v1007_v3 = vld [vmem:[#allocation5 + $0x128] sm:$0xff]  ;;  %v1009_v4 = vld [vmem:[#allocation5 + $0x138] sm:$0xff]  ;;  %3745 = vmatprep.subr.bf16.mxu1 %v3744_v57  ;;  %v3750_v5 = vpack.c.bf16 %v1236_v0, %v1235_v61  ;;  %v1006_v7 = vld [vmem:[#allocation5 + $0x120] sm:$0xff]  ;;  %v3752_v8 = vpack.c.bf16 %v1254_v2, %v1253_v1 }
 0x22e   : > { %3697 = vmatprep.subr.bf16.mxu0 %v3696_v26  ;;  %3747 = vmatpush3.bf16.msra.mxu1 %v3746_v58  ;;  %v1237_v9 = vld [vmem:[#allocation8 + $0x20] sm:$0xff]  ;;  %v1238_v10 = vld [vmem:[#allocation8 + $0x28] sm:$0xff]  ;;  %v3716_v11 = vpack.c.bf16 %v1009_v4, %v1007_v3  ;;  %v1255_v13 = vld [vmem:[#allocation8 + $0xb0] sm:$0xff] }
 0x22f   : > { %3749 = vmatprep.subr.bf16.mxu1 %v3748_v63  ;;  %v1008_v12 = vld [vmem:[#allocation5 + $0x130] sm:$0xff]  ;;  %v1256_v14 = vld [vmem:[#allocation8 + $0xb8] sm:$0xff]  ;;  %v1011_v15 = vld [vmem:[#allocation5 + $0x148] sm:$0xff]  ;;  %v3754_v17 = vpack.c.bf16 %v1238_v10, %v1237_v9 }
 0x230   : > { %v1013_v16 = vld [vmem:[#allocation5 + $0x158] sm:$0xff]  ;;  %v3718_v18 = vpack.c.bf16 %v1008_v12, %v1006_v7  ;;  %v3756_v19 = vpack.c.bf16 %v1256_v14, %v1255_v13  ;;  %v1010_v23 = vld [vmem:[#allocation5 + $0x140] sm:$0xff]  ;;  %v1012_v24 = vld [vmem:[#allocation5 + $0x150] sm:$0xff] }
 0x231   : > { %3699 = vmatpush1.bf16.msra.mxu0 %v3698_v31  ;;  %v1239_v20 = vld [vmem:[#allocation8 + $0x30] sm:$0xff]  ;;  %v1240_v21 = vld [vmem:[#allocation8 + $0x38] sm:$0xff]  ;;  %v3720_v22 = vpack.c.bf16 %v1013_v16, %v1011_v15  ;;  %v1015_v25 = vld [vmem:[#allocation5 + $0x168] sm:$0xff]  ;;  %v3722_v28 = vpack.c.bf16 %v1012_v24, %v1010_v23 }
 0x232   : > { %3701 = vmatprep.subr.bf16.mxu0 %v3700_v32  ;;  %3751 = vmatpush3.bf16.msra.mxu1 %v3750_v5  ;;  %v1017_v26 = vld [vmem:[#allocation5 + $0x178] sm:$0xff]  ;;  %v3758_v27 = vpack.c.bf16 %v1240_v21, %v1239_v20  ;;  %v1014_v30 = vld [vmem:[#allocation5 + $0x160] sm:$0xff]  ;;  %v1016_v31 = vld [vmem:[#allocation5 + $0x170] sm:$0xff] }
 0x233   : > { %3753 = vmatprep.subr.bf16.mxu1 %v3752_v8  ;;  %v3724_v29 = vpack.c.bf16 %v1017_v26, %v1015_v25  ;;  %v1019_v32 = vld [vmem:[#allocation5 + $0x188] sm:$0xff]  ;;  %v1021_v33 = vld [vmem:[#allocation5 + $0x198] sm:$0xff]  ;;  %v3726_v34 = vpack.c.bf16 %v1016_v31, %v1014_v30  ;;  %v1018_v36 = vld [vmem:[#allocation5 + $0x180] sm:$0xff] }
 0x234   : > { %v3728_v35 = vpack.c.bf16 %v1021_v33, %v1019_v32  ;;  %v1025_v39 = vld [vmem:[#allocation5 + $0x1b8] sm:$0xff]  ;;  %v1022_v42 = vld [vmem:[#allocation5 + $0x1a0] sm:$0xff]  ;;  %v1024_v43 = vld [vmem:[#allocation5 + $0x1b0] sm:$0xff] }
 0x235   : > { %3703 = vmatpush1.bf16.msra.mxu0 %v3702_v37  ;;  %v1020_v37 = vld [vmem:[#allocation5 + $0x190] sm:$0xff]  ;;  %v3734_v46 = vpack.c.bf16 %v1024_v43, %v1022_v42  ;;  %v1026_v48 = vld [vmem:[#allocation5 + $0x1c0] sm:$0xff]  ;;  %v1031_v50 = vld [vmem:[#allocation5 + $0x1e8] sm:$0xff] }
 0x236   : > { %3705 = vmatprep.subr.bf16.mxu0 %v3704_v38  ;;  %3755 = vmatpush3.bf16.msra.mxu1 %v3754_v17  ;;  %v1023_v38 = vld [vmem:[#allocation5 + $0x1a8] sm:$0xff]  ;;  %v3730_v40 = vpack.c.bf16 %v1020_v37, %v1018_v36  ;;  %v1028_v49 = vld [vmem:[#allocation5 + $0x1d0] sm:$0xff]  ;;  %v1033_v51 = vld [vmem:[#allocation5 + $0x1f8] sm:$0xff] }
 0x237   : > { %3757 = vmatprep.subr.bf16.mxu1 %v3756_v19  ;;  %v3732_v41 = vpack.c.bf16 %v1025_v39, %v1023_v38  ;;  %v3738_v52 = vpack.c.bf16 %v1028_v49, %v1026_v48  ;;  %v3740_v53 = vpack.c.bf16 %v1033_v51, %v1031_v50  ;;  %v1030_v54 = vld [vmem:[#allocation5 + $0x1e0] sm:$0xff]  ;;  %v1032_v55 = vld [vmem:[#allocation5 + $0x1f0] sm:$0xff]  ;;  %v957_v58 = vld [vmem:[%s5605_s7 + $0x18] sm:$0xff] }
 0x238   : > { %v954_v57 = vld [vmem:[%s5605_s7] sm:$0xff]  ;;  %v956_v59 = vld [vmem:[%s5605_s7 + $0x10] sm:$0xff]  ;;  %v959_v60 = vld [vmem:[%s5605_s7 + $0x28] sm:$0xff] }
 0x239   : > { %3707 = vmatpush1.bf16.msra.mxu0 %v3706_v44  ;;  %v1027_v44 = vld [vmem:[#allocation5 + $0x1c8] sm:$0xff]  ;;  %v958_v61 = vld [vmem:[%s5605_s7 + $0x20] sm:$0xff]  ;;  %v960_v63 = vld [vmem:[%s5605_s7 + $0x30] sm:$0xff] }
 0x23a   : > { %3709 = vmatprep.subr.bf16.mxu0 %v3708_v45  ;;  %3759 = vmatpush3.bf16.msra.mxu1 %v3758_v27  ;;  %v1029_v45 = vld [vmem:[#allocation5 + $0x1d8] sm:$0xff]  ;;  %v963_v0 = vld [vmem:[%s5605_s7 + $0x48] sm:$0xff]  ;;  %v962_v1 = vld [vmem:[%s5605_s7 + $0x40] sm:$0xff] }
 0x23b   : > { %v3736_v47 = vpack.c.bf16 %v1029_v45, %v1027_v44  ;;  %v965_v2 = vld [vmem:[%s5605_s7 + $0x58] sm:$0xff]  ;;  %v964_v3 = vld [vmem:[%s5605_s7 + $0x50] sm:$0xff]  ;;  %v967_v4 = vld [vmem:[%s5605_s7 + $0x68] sm:$0xff] }
 0x23c   : > { %v966_v5 = vld [vmem:[%s5605_s7 + $0x60] sm:$0xff]  ;;  %v968_v7 = vld [vmem:[%s5605_s7 + $0x70] sm:$0xff]  ;;  %v1404_v33 = vld [vmem:[%s6312_s22 + $0x8] sm:$0xff] }
 0x23d   : > { %3711 = vmatpush1.bf16.msra.mxu0 %v3710_v56  ;;  %v3742_v56 = vpack.c.bf16 %v1032_v55, %v1030_v54  ;;  %v1257_v8 = vld [vmem:[#allocation8 + $0xc0] sm:$0xff]  ;;  %v1258_v9 = vld [vmem:[#allocation8 + $0xc8] sm:$0xff]  ;;  %v1259_v14 = vld [vmem:[#allocation8 + $0xd0] sm:$0xff] }
 0x23e   : > { %3713 = vmatprep.subr.bf16.mxu0 %v3712_v62  ;;  %v961_v62 = vld [vmem:[%s5605_s7 + $0x38] sm:$0xff]  ;;  %v3760_v10 = vpack.c.bf16 %v1258_v9, %v1257_v8  ;;  %v1242_v12 = vld [vmem:[#allocation8 + $0x48] sm:$0xff]  ;;  %v1261_v20 = vld [vmem:[#allocation8 + $0xe0] sm:$0xff] }
 0x23f   : > { %v1260_v15 = vld [vmem:[#allocation8 + $0xd8] sm:$0xff]  ;;  %v1243_v17 = vld [vmem:[#allocation8 + $0x50] sm:$0xff]  ;;  %v1262_v21 = vld [vmem:[#allocation8 + $0xe8] sm:$0xff] }
 0x240   : > { %3761 = vmatprep.subr.bf16.mxu1 %v3760_v10  ;;  %v3764_v16 = vpack.c.bf16 %v1260_v15, %v1259_v14  ;;  %v1245_v23 = vld [vmem:[#allocation8 + $0x60] sm:$0xff]  ;;  %v1246_v24 = vld [vmem:[#allocation8 + $0x68] sm:$0xff]  ;;  %v1263_v26 = vld [vmem:[#allocation8 + $0xf0] sm:$0xff] }
 0x241   : > { %3715 = vmatpush1.bf16.msra.mxu0 %v3714_v6  ;;  %v969_v6 = vld [vmem:[%s5605_s7 + $0x78] sm:$0xff]  ;;  %v3770_v25 = vpack.c.bf16 %v1246_v24, %v1245_v23  ;;  %v1403_v32 = vld [vmem:[%s6312_s22] sm:$0xff]  ;;  %s2862_s7 = sshll.u32 %s5780_s29, 4  ;;  %s5977_s7 = int_to_ptr.vmem [resolvable:$true] %s2862_s7 }
 0x242   : > { %3717 = vmatprep.subr.bf16.mxu0 %v3716_v11  ;;  %v1241_v11 = vld [vmem:[#allocation8 + $0x40] sm:$0xff]  ;;  %v1264_v27 = vld [vmem:[#allocation8 + $0xf8] sm:$0xff] }
 0x243   : > { %v3762_v13 = vpack.c.bf16 %v1242_v12, %v1241_v11  ;;  %v1248_v30 = vld [vmem:[#allocation8 + $0x78] sm:$0xff] }
 0x244   : > { %v1147_v38 = vld [vmem:[#allocation7] sm:$0xf]  ;;  %v1406_v8 = vld [vmem:[%s6312_s22 + $0x18] sm:$0xff] }
 0x245   : > { %3719 = vmatpush1.bf16.msra.mxu0 %v3718_v18  ;;  %3763 = vmatpush3.bf16.msra.mxu1 %v3762_v13  ;;  %v1244_v18 = vld [vmem:[#allocation8 + $0x58] sm:$0xff] }
 0x246   : > { %3721 = vmatprep.subr.bf16.mxu0 %v3720_v22  ;;  %v3766_v19 = vpack.c.bf16 %v1244_v18, %v1243_v17  ;;  %3765 = vmatprep.subr.bf16.mxu1 %v3764_v16  ;;  %v3768_v22 = vpack.c.bf16 %v1262_v21, %v1261_v20  ;;  %v1407_v18 = vld [vmem:[%s6312_s22 + $0x20] sm:$0xff] }
 0x249   : > { %3723 = vmatpush1.bf16.msra.mxu0 %v3722_v28  ;;  %3767 = vmatpush3.bf16.msra.mxu1 %v3766_v19  ;;  %v3772_v28 = vpack.c.bf16 %v1264_v27, %v1263_v26  ;;  %v1408_v19 = vld [vmem:[%s6312_s22 + $0x28] sm:$0xff] }
 0x24a   : > { %3725 = vmatprep.subr.bf16.mxu0 %v3724_v29  ;;  %3769 = vmatprep.subr.bf16.mxu1 %v3768_v22  ;;  %v1247_v29 = vld [vmem:[#allocation8 + $0x70] sm:$0xff] }
 0x24b   : > { %v3774_v31 = vpack.c.bf16 %v1248_v30, %v1247_v29 }
 0x24d   : > { %3727 = vmatpush1.bf16.msra.mxu0 %v3726_v34  ;;  %3771 = vmatpush3.bf16.msra.mxu1 %v3770_v25  ;;  %v5665_v34 = vpack.c.bf16 %v1404_v33, %v1403_v32  ;;  %v3784_v25 = vpack.c.bf16 %v1408_v19, %v1407_v18  ;;  %v1562_v18 = vld [vmem:[#allocation13 + $0x28] sm:$0xff] }
 0x24e   : > { %3729 = vmatprep.subr.bf16.mxu0 %v3728_v35  ;;  %3773 = vmatprep.subr.bf16.mxu1 %v3772_v28  ;;  %v1149_v35 = vlaneseq }
 0x250   : > { %v1150_v36 = vshrl.u32 %v1149_v35, 7 }
 0x251   : > { %3731 = vmatpush1.bf16.msra.mxu0 %v3730_v40  ;;  %3775 = vmatpush3.bf16.msra.mxu1 %v3774_v31 }
 0x252   : > { %3733 = vmatprep.subr.bf16.mxu0 %v3732_v41  ;;  %3777 = vmatprep.subr.bf16.mxu1 %v5665_v34  ;;  %v5668_v37 = vsub.s32 0, %v1150_v36  ;;  %v5670_v39 = vsub.s32 2, %v1150_v36  ;;  %v5672_v40 = vsub.s32 1, %v1150_v36  ;;  %v5674_v41 = vsub.s32 3, %v1150_v36 }
 0x254   : > { %v1152_v42 = vrot.slane %v1147_v38, %v5668_v37  ;;  %v1156_v43 = vrot.slane %v1147_v38, %v5670_v39  ;;  %v1186_v44 = vrot.slane %v1147_v38, %v5672_v40  ;;  %v1190_v45 = vrot.slane %v1147_v38, %v5674_v41 }
 0x255   : > { %3735 = vmatpush1.bf16.msra.mxu0 %v3734_v46 }
 0x256   : > { %3737 = vmatprep.subr.bf16.mxu0 %v3736_v47  ;;  %v5681_v46 = vrot.slane %v1152_v42, %v5668_v37  ;;  %v5684_v47 = vrot.slane %v1156_v43, %v5668_v37  ;;  %v5687_v48 = vrot.slane %v1186_v44, %v5672_v40  ;;  %v5690_v50 = vrot.slane %v1190_v45, %v5672_v40 }
 0x259   : > { %3739 = vmatpush1.bf16.msra.mxu0 %v3738_v52 }
 0x25a   : > { %3741 = vmatprep.subr.bf16.mxu0 %v3740_v53 }
 0x25d   : > { %3743 = vmatpush1.bf16.msra.mxu0 %v3742_v56 }
 0x260   : > { %1099 = vmatmul.mubr.f32.vlgmr.msra.gmra.mrb[0].mxu0 %v954_v57 }
 0x261   : > { %1104 = vmatprep.mubr.f32.mxu0 %v957_v58 }
 0x264   : > { %1105 = vmatmul.mubr.f32.gmra.mrb[2].mxu0 %v956_v59 }
 0x265   : > { %1110 = vmatprep.mubr.f32.mxu0 %v959_v60 }
 0x268   : > { %1111 = vmatmul.mubr.f32.gmra.mrb[4].mxu0 %v958_v61 }
 0x269   : > { %1116 = vmatprep.mubr.f32.mxu0 %v961_v62 }
 0x26c   : > { %1117 = vmatmul.mubr.f32.gmra.mrb[6].mxu0 %v960_v63 }
 0x26d   : > { %1122 = vmatprep.mubr.f32.mxu0 %v963_v0 }
 0x270   : > { %1123 = vmatmul.mubr.f32.gmra.mrb[8].mxu0 %v962_v1 }
 0x271   : > { %1128 = vmatprep.mubr.f32.mxu0 %v965_v2 }
 0x274   : > { %1129 = vmatmul.mubr.f32.gmra.mrb[10].mxu0 %v964_v3 }
 0x275   : > { %1134 = vmatprep.mubr.f32.mxu0 %v967_v4 }
 0x278   : > { %1135 = vmatmul.mubr.f32.gmra.mrb[12].mxu0 %v966_v5 }
 0x279   : > { %1140 = vmatprep.mubr.f32.mxu0 %v969_v6 }
 0x27c   : > { %1141 = vmatmul.mubr.f32.gmra.mrb[14].mxu0 %v968_v7  ;;  %v1405_v7 = vld [vmem:[%s6312_s22 + $0x10] sm:$0xff] }
 0x27d   : > { %v3780_v14 = vpack.c.bf16 %v1406_v8, %v1405_v7  ;;  %v1417_v8 = vld [vmem:[%s6312_s22 + $0x70] sm:$0xff] }
 0x333   : > { %v1100_v49 = vpop.f32.mrb[0].mxu0 }
 0x334   : > { %v1167_v51 = vmul.f32 %v5681_v46, %v1100_v49  ;;  %v1102_v52 = vpop.f32.mrb[1].mxu0 }
 0x335   : > { %v1168_v53 = vmul.f32 %v5684_v47, %v1102_v52 }
 0x336   : > { %v1201_v54 = vadd.f32 %v5687_v48, %v1167_v51 }
 0x337   : > { %v1202_v55 = vadd.f32 %v5690_v50, %v1168_v53  ;;  %v1106_v56 = vpop.f32.mrb[2].mxu0 }
 0x338   : > { %v1169_v57 = vmul.f32 %v5681_v46, %v1106_v56  ;;  %v1108_v58 = vpop.f32.mrb[3].mxu0 }
 0x339   : > { %v1170_v59 = vmul.f32 %v5684_v47, %v1108_v58  ;;  %4264 = vtanh.f32 %v1202_v55 }
 0x33a   : > { %4266 = vtanh.f32 %v1201_v54  ;;  %v1203_v60 = vadd.f32 %v5687_v48, %v1169_v57 }
 0x33b   : > { %v1204_v61 = vadd.f32 %v5690_v50, %v1170_v59  ;;  %v1112_v62 = vpop.f32.mrb[4].mxu0 }
 0x33c   : > { %v1171_v63 = vmul.f32 %v5681_v46, %v1112_v62  ;;  %v1114_v0 = vpop.f32.mrb[5].mxu0 }
 0x33d   : > { %4268 = vtanh.f32 %v1204_v61  ;;  %v1172_v1 = vmul.f32 %v5684_v47, %v1114_v0  ;;  %v1412_v0 = vld [vmem:[%s6312_s22 + $0x48] sm:$0xff] }
 0x33e   : > { %4270 = vtanh.f32 %v1203_v60  ;;  %v1205_v2 = vadd.f32 %v5687_v48, %v1171_v63  ;;  %v1411_v63 = vld [vmem:[%s6312_s22 + $0x40] sm:$0xff] }
 0x33f   : > { %v1206_v3 = vadd.f32 %v5690_v50, %v1172_v1  ;;  %v1118_v4 = vpop.f32.mrb[6].mxu0  ;;  %v3792_v1 = vpack.c.bf16 %v1412_v0, %v1411_v63 }
 0x340   : > { %v1173_v5 = vmul.f32 %v5681_v46, %v1118_v4  ;;  %v1120_v6 = vpop.f32.mrb[7].mxu0 }
 0x341   : > { %4272 = vtanh.f32 %v1206_v3  ;;  %v1174_v9 = vmul.f32 %v5684_v47, %v1120_v6  ;;  %v1414_v3 = vld [vmem:[%s6312_s22 + $0x58] sm:$0xff]  ;;  %v1416_v6 = vld [vmem:[%s6312_s22 + $0x68] sm:$0xff] }
 0x342   : > { %4274 = vtanh.f32 %v1205_v2  ;;  %v1207_v10 = vadd.f32 %v5687_v48, %v1173_v5  ;;  %v1413_v2 = vld [vmem:[%s6312_s22 + $0x50] sm:$0xff]  ;;  %v1415_v5 = vld [vmem:[%s6312_s22 + $0x60] sm:$0xff] }
 0x343   : > { %v4265_v11 = vpop.eup %4264  ;;  %v1208_v12 = vadd.f32 %v5690_v50, %v1174_v9  ;;  %v1124_v13 = vpop.f32.mrb[8].mxu0  ;;  %v3796_v4 = vpack.c.bf16 %v1414_v3, %v1413_v2  ;;  %v3800_v7 = vpack.c.bf16 %v1416_v6, %v1415_v5  ;;  %v1418_v9 = vld [vmem:[%s6312_s22 + $0x78] sm:$0xff] }
 0x344   : > { %v4267_v15 = vpop.eup %4266  ;;  %v1175_v16 = vmul.f32 %v5681_v46, %v1124_v13  ;;  %v1126_v17 = vpop.f32.mrb[9].mxu0  ;;  %1329 = vmatprep.mubr.f32.mxu1 %v4265_v11  ;;  %v1557_v11 = vld [vmem:[#allocation13] sm:$0xff]  ;;  %v1559_v13 = vld [vmem:[#allocation13 + $0x10] sm:$0xff] }
 0x345   : > { %4276 = vtanh.f32 %v1208_v12  ;;  %v1176_v20 = vmul.f32 %v5684_v47, %v1126_v17  ;;  %1330 = vmatmul.mubr.f32.vlgmr.msra.gmra.mrb[0].mxu1 %v4267_v15  ;;  %v1558_v12 = vld [vmem:[#allocation13 + $0x8] sm:$0xff]  ;;  %v1560_v15 = vld [vmem:[#allocation13 + $0x18] sm:$0xff]  ;;  %v1561_v17 = vld [vmem:[#allocation13 + $0x20] sm:$0xff] }
 0x346   : > { %4278 = vtanh.f32 %v1207_v10  ;;  %v1209_v21 = vadd.f32 %v5687_v48, %v1175_v16  ;;  %3779 = vmatpush3.bf16.msra.mxu1 %v5665_v34  ;;  %v3804_v10 = vpack.c.bf16 %v1418_v9, %v1417_v8  ;;  %v3812_v16 = vpack.c.bf16 %v1560_v15, %v1559_v13  ;;  %v1566_v15 = vld [vmem:[#allocation13 + $0x48] sm:$0xff] }
 0x347   : > { %v4269_v22 = vpop.eup %4268  ;;  %v1210_v23 = vadd.f32 %v5690_v50, %v1176_v20  ;;  %v1130_v24 = vpop.f32.mrb[10].mxu0  ;;  %3781 = vmatprep.subr.bf16.mxu1 %v3780_v14  ;;  %v3816_v19 = vpack.c.bf16 %v1562_v18, %v1561_v17  ;;  %v1563_v20 = vld [vmem:[#allocation13 + $0x30] sm:$0xff]  ;;  %v1568_v18 = vld [vmem:[#allocation13 + $0x58] sm:$0xff] }
 0x348   : > { %v4271_v26 = vpop.eup %4270  ;;  %v1177_v27 = vmul.f32 %v5681_v46, %v1130_v24  ;;  %v1132_v28 = vpop.f32.mrb[11].mxu0  ;;  %1334 = vmatprep.mubr.f32.mxu1 %v4269_v22  ;;  %v1567_v17 = vld [vmem:[#allocation13 + $0x50] sm:$0xff] }
 0x349   : > { %4280 = vtanh.f32 %v1210_v23  ;;  %v1178_v29 = vmul.f32 %v5684_v47, %v1132_v28  ;;  %1335 = vmatmul.mubr.f32.gmra.mrb[2].mxu1 %v4271_v26  ;;  %v1370_v23 = vld [vmem:[#allocation10] sm:$0x3] }
 0x34a   : > { %4282 = vtanh.f32 %v1209_v21  ;;  %v1211_v30 = vadd.f32 %v5687_v48, %v1177_v27  ;;  %3783 = vmatpush3.bf16.msra.mxu1 %v3780_v14  ;;  %v3808_v14 = vpack.c.bf16 %v1558_v12, %v1557_v11  ;;  %v1564_v21 = vld [vmem:[#allocation13 + $0x38] sm:$0xff]  ;;  %v1386_v28 = vrot.slane %v1370_v23, %v5672_v40 }
 0x34b   : > { %v4273_v31 = vpop.eup %4272  ;;  %v1212_v32 = vadd.f32 %v5690_v50, %v1178_v29  ;;  %v1136_v33 = vpop.f32.mrb[12].mxu0  ;;  %3785 = vmatprep.subr.bf16.mxu1 %v3784_v25  ;;  %v3820_v22 = vpack.c.bf16 %v1564_v21, %v1563_v20  ;;  %v1569_v20 = vld [vmem:[#allocation13 + $0x60] sm:$0xff]  ;;  %v1570_v21 = vld [vmem:[#allocation13 + $0x68] sm:$0xff] }
 0x34c   : > { %v4275_v34 = vpop.eup %4274  ;;  %v1179_v35 = vmul.f32 %v5681_v46, %v1136_v33  ;;  %v1138_v36 = vpop.f32.mrb[13].mxu0  ;;  %1339 = vmatprep.mubr.f32.mxu1 %v4273_v31  ;;  %3809 = vmatprep.subr.bf16.mxu0 %v3808_v14 }
 0x34d   : > { %4284 = vtanh.f32 %v1212_v32  ;;  %v1180_v38 = vmul.f32 %v5684_v47, %v1138_v36  ;;  %1340 = vmatmul.mubr.f32.gmra.mrb[4].mxu1 %v4275_v34  ;;  %3811 = vmatpush3.bf16.msra.mxu0 %v3808_v14  ;;  %v1565_v14 = vld [vmem:[#allocation13 + $0x40] sm:$0xff] }
 0x34e   : > { %4286 = vtanh.f32 %v1211_v30  ;;  %v1213_v42 = vadd.f32 %v5687_v48, %v1179_v35  ;;  %3787 = vmatpush3.bf16.msra.mxu1 %v3784_v25  ;;  %3813 = vmatprep.subr.bf16.mxu0 %v3812_v16  ;;  %v1374_v25 = vrot.slane %v1370_v23, %v5668_v37  ;;  %v1571_v23 = vld [vmem:[#allocation13 + $0x70] sm:$0xff] }
 0x34f   : > { %v4277_v43 = vpop.eup %4276  ;;  %v1214_v44 = vadd.f32 %v5690_v50, %v1180_v38  ;;  %v1142_v45 = vpop.f32.mrb[14].mxu0 }
 0x350   : > { %v4279_v49 = vpop.eup %4278  ;;  %v1181_v51 = vmul.f32 %v5681_v46, %v1142_v45  ;;  %v1144_v52 = vpop.f32.mrb[15].mxu0  ;;  %1344 = vmatprep.mubr.f32.mxu1 %v4277_v43 }
 0x351   : > { %4288 = vtanh.f32 %v1214_v44  ;;  %v1182_v53 = vmul.f32 %v5684_v47, %v1144_v52  ;;  %1345 = vmatmul.mubr.f32.gmra.mrb[6].mxu1 %v4279_v49  ;;  %3815 = vmatpush3.bf16.msra.mxu0 %v3812_v16  ;;  %v3824_v16 = vpack.c.bf16 %v1566_v15, %v1565_v14 }
 0x352   : > { %4290 = vtanh.f32 %v1213_v42  ;;  %v1215_v54 = vadd.f32 %v5687_v48, %v1181_v51  ;;  %v1409_v48 = vld [vmem:[%s6312_s22 + $0x30] sm:$0xff]  ;;  %3817 = vmatprep.subr.bf16.mxu0 %v3816_v19 }
 0x353   : > { %v4281_v55 = vpop.eup %4280  ;;  %v1216_v56 = vadd.f32 %v5690_v50, %v1182_v53  ;;  %v1410_v50 = vld [vmem:[%s6312_s22 + $0x38] sm:$0xff] }
 0x354   : > { %v4283_v57 = vpop.eup %4282  ;;  %1349 = vmatprep.mubr.f32.mxu1 %v4281_v55  ;;  %v3788_v62 = vpack.c.bf16 %v1410_v50, %v1409_v48 }
 0x355   : > { %4292 = vtanh.f32 %v1216_v56  ;;  %1350 = vmatmul.mubr.f32.gmra.mrb[8].mxu1 %v4283_v57  ;;  %3819 = vmatpush3.bf16.msra.mxu0 %v3816_v19  ;;  %v3828_v19 = vpack.c.bf16 %v1568_v18, %v1567_v17 }
 0x356   : > { %4294 = vtanh.f32 %v1215_v54  ;;  %3789 = vmatprep.subr.bf16.mxu1 %v3788_v62  ;;  %3821 = vmatprep.subr.bf16.mxu0 %v3820_v22 }
 0x357   : > { %v4285_v58 = vpop.eup %4284  ;;  %3791 = vmatpush3.bf16.msra.mxu1 %v3788_v62 }
 0x358   : > { %v4287_v59 = vpop.eup %4286  ;;  %1354 = vmatprep.mubr.f32.mxu1 %v4285_v58  ;;  %3793 = vmatprep.subr.bf16.mxu1 %v3792_v1 }
 0x359   : > { %1355 = vmatmul.mubr.f32.gmra.mrb[10].mxu1 %v4287_v59  ;;  %3823 = vmatpush3.bf16.msra.mxu0 %v3820_v22  ;;  %v3832_v22 = vpack.c.bf16 %v1570_v21, %v1569_v20 }
 0x35a   : > { %3825 = vmatprep.subr.bf16.mxu0 %v3824_v16 }
 0x35b   : > { %v4289_v46 = vpop.eup %4288  ;;  %3795 = vmatpush3.bf16.msra.mxu1 %v3792_v1 }
 0x35c   : > { %v4291_v60 = vpop.eup %4290  ;;  %1359 = vmatprep.mubr.f32.mxu1 %v4289_v46  ;;  %3797 = vmatprep.subr.bf16.mxu1 %v3796_v4 }
 0x35d   : > { %1360 = vmatmul.mubr.f32.gmra.mrb[12].mxu1 %v4291_v60  ;;  %3827 = vmatpush3.bf16.msra.mxu0 %v3824_v16 }
 0x35e   : > { %3829 = vmatprep.subr.bf16.mxu0 %v3828_v19 }
 0x35f   : > { %v4293_v47 = vpop.eup %4292  ;;  %3799 = vmatpush3.bf16.msra.mxu1 %v3796_v4 }
 0x360   : > { %v4295_v61 = vpop.eup %4294  ;;  %1364 = vmatprep.mubr.f32.mxu1 %v4293_v47  ;;  %3801 = vmatprep.subr.bf16.mxu1 %v3800_v7 }
 0x361   : > { %1365 = vmatmul.mubr.f32.gmra.mrb[14].mxu1 %v4295_v61  ;;  %3831 = vmatpush3.bf16.msra.mxu0 %v3828_v19 }
 0x362   : > { %3833 = vmatprep.subr.bf16.mxu0 %v3832_v22 }
 0x363   : > { %3803 = vmatpush3.bf16.msra.mxu1 %v3800_v7 }
 0x364   : > { %3805 = vmatprep.subr.bf16.mxu1 %v3804_v10 }
 0x365   : > { %3835 = vmatpush3.bf16.msra.mxu0 %v3832_v22  ;;  %v1725_v22 = vld [vmem:[#allocation16 + $0x70] sm:$0xff] }
 0x367   : > { %3807 = vmatpush3.bf16.msra.mxu1 %v3804_v10 }
 0x418   : > { %v3272_v24 = vpop.f32.mrb[0].mxu1 }
 0x419   : > { %v3273_v26 = vpop.f32.mrb[1].mxu1 }
 0x41a   : > { %v3274_v27 = vadd.f32 %v3273_v26, %v3272_v24  ;;  %v1572_v24 = vld [vmem:[#allocation13 + $0x78] sm:$0xff]  ;;  %v1711_v26 = vld [vmem:[#allocation16] sm:$0xff] }
 0x41c   : > { %v1375_v29 = vmul.f32 %v3274_v27, %v1374_v25  ;;  %v3275_v30 = vpop.f32.mrb[2].mxu1  ;;  %v1712_v27 = vld [vmem:[#allocation16 + $0x8] sm:$0xff] }
 0x41d   : > { %v3276_v31 = vpop.f32.mrb[3].mxu1 }
 0x41e   : > { %v1387_v32 = vadd.f32 %v1386_v28, %v1375_v29  ;;  %v3277_v33 = vadd.f32 %v3276_v31, %v3275_v30  ;;  %v3840_v29 = vpack.c.bf16 %v1712_v27, %v1711_v26  ;;  %v1714_v30 = vld [vmem:[#allocation16 + $0x18] sm:$0xff]  ;;  %v1866_v26 = vld [vmem:[#allocation19 + $0x8] sm:$0xff] }
 0x41f   : > { %v1867_v27 = vld [vmem:[#allocation19 + $0x10] sm:$0xff] }
 0x420   : > { %4296 = vtanh.f32 %v1387_v32  ;;  %v1376_v34 = vmul.f32 %v3277_v33, %v1374_v25  ;;  %v3278_v35 = vpop.f32.mrb[4].mxu1  ;;  %v1715_v32 = vld [vmem:[#allocation16 + $0x20] sm:$0xff]  ;;  %v1716_v33 = vld [vmem:[#allocation16 + $0x28] sm:$0xff]  ;;  %3841 = vmatprep.subr.bf16.mxu1 %v3840_v29 }
 0x421   : > { %v3279_v36 = vpop.f32.mrb[5].mxu1 }
 0x422   : > { %v1388_v38 = vadd.f32 %v1386_v28, %v1376_v34  ;;  %v3280_v42 = vadd.f32 %v3279_v36, %v3278_v35  ;;  %v3848_v34 = vpack.c.bf16 %v1716_v33, %v1715_v32  ;;  %v1717_v35 = vld [vmem:[#allocation16 + $0x30] sm:$0xff]  ;;  %v1718_v36 = vld [vmem:[#allocation16 + $0x38] sm:$0xff] }
 0x423   : > { %v1870_v32 = vld [vmem:[#allocation19 + $0x28] sm:$0xff] }
 0x424   : > { %4298 = vtanh.f32 %v1388_v38  ;;  %v1377_v43 = vmul.f32 %v3280_v42, %v1374_v25  ;;  %v3281_v44 = vpop.f32.mrb[6].mxu1  ;;  %v3852_v38 = vpack.c.bf16 %v1718_v36, %v1717_v35  ;;  %v1719_v42 = vld [vmem:[#allocation16 + $0x40] sm:$0xff] }
 0x425   : > { %v3282_v45 = vpop.f32.mrb[7].mxu1  ;;  %v1872_v35 = vld [vmem:[#allocation19 + $0x38] sm:$0xff] }
 0x426   : > { %v1389_v49 = vadd.f32 %v1386_v28, %v1377_v43  ;;  %v3283_v51 = vadd.f32 %v3282_v45, %v3281_v44  ;;  %v1720_v43 = vld [vmem:[#allocation16 + $0x48] sm:$0xff]  ;;  %v1721_v45 = vld [vmem:[#allocation16 + $0x50] sm:$0xff] }
 0x427   : > { %v3856_v44 = vpack.c.bf16 %v1720_v43, %v1719_v42 }
 0x428   : > { %4300 = vtanh.f32 %v1389_v49  ;;  %v1378_v52 = vmul.f32 %v3283_v51, %v1374_v25  ;;  %v3284_v53 = vpop.f32.mrb[8].mxu1  ;;  %v1722_v49 = vld [vmem:[#allocation16 + $0x58] sm:$0xff] }
 0x429   : > { %v3285_v54 = vpop.f32.mrb[9].mxu1  ;;  %v3860_v51 = vpack.c.bf16 %v1722_v49, %v1721_v45 }
 0x42a   : > { %v4297_v55 = vpop.eup %4296  ;;  %v1390_v56 = vadd.f32 %v1386_v28, %v1378_v52  ;;  %v3286_v57 = vadd.f32 %v3285_v54, %v3284_v53  ;;  %v1723_v52 = vld [vmem:[#allocation16 + $0x60] sm:$0xff]  ;;  %v1724_v53 = vld [vmem:[#allocation16 + $0x68] sm:$0xff] }
 0x42b   : > { %3464 = vmatprep.mubr.f32.mxu1 %v4297_v55  ;;  %v3864_v54 = vpack.c.bf16 %v1724_v53, %v1723_v52  ;;  %v1524_v55 = vld [vmem:[#allocation11] sm:$0x3] }
 0x42c   : > { %4302 = vtanh.f32 %v1390_v56  ;;  %v1379_v58 = vmul.f32 %v3286_v57, %v1374_v25  ;;  %v3287_v59 = vpop.f32.mrb[10].mxu1  ;;  %v1528_v56 = vrot.slane %v1524_v55, %v5668_v37  ;;  %v1540_v57 = vrot.slane %v1524_v55, %v5672_v40 }
 0x42d   : > { %v3288_v46 = vpop.f32.mrb[11].mxu1 }
 0x42e   : > { %v4299_v60 = vpop.eup %4298  ;;  %v1391_v47 = vadd.f32 %v1386_v28, %v1379_v58  ;;  %v3289_v61 = vadd.f32 %v3288_v46, %v3287_v59 }
 0x42f   : > { %3465 = vmatmul.mubr.f32.vlgmr.msra.gmra.mrb[16].mxu1 %v4299_v60 }
 0x430   : > { %4304 = vtanh.f32 %v1391_v47  ;;  %v1380_v48 = vmul.f32 %v3289_v61, %v1374_v25  ;;  %v3290_v50 = vpop.f32.mrb[12].mxu1  ;;  %3843 = vmatpush3.bf16.msra.mxu1 %v3840_v29  ;;  %v1868_v29 = vld [vmem:[#allocation19 + $0x18] sm:$0xff] }
 0x431   : > { %v3291_v62 = vpop.f32.mrb[13].mxu1 }
 0x432   : > { %v4301_v63 = vpop.eup %4300  ;;  %v1392_v0 = vadd.f32 %v1386_v28, %v1380_v48  ;;  %v3292_v1 = vadd.f32 %v3291_v62, %v3290_v50 }
 0x433   : > { %3467 = vmatprep.mubr.f32.mxu1 %v4301_v63 }
 0x434   : > { %4306 = vtanh.f32 %v1392_v0  ;;  %v1381_v2 = vmul.f32 %v3292_v1, %v1374_v25  ;;  %v3293_v3 = vpop.f32.mrb[14].mxu1 }
 0x435   : > { %v3294_v4 = vpop.f32.mrb[15].mxu1 }
 0x436   : > { %v4303_v5 = vpop.eup %4302  ;;  %v1393_v6 = vadd.f32 %v1386_v28, %v1381_v2  ;;  %v3295_v7 = vadd.f32 %v3294_v4, %v3293_v3 }
 0x437   : > { %3468 = vmatmul.mubr.f32.gmra.mrb[18].mxu1 %v4303_v5 }
 0x438   : > { %4308 = vtanh.f32 %v1393_v6  ;;  %v1382_v8 = vmul.f32 %v3295_v7, %v1374_v25  ;;  %v3836_v25 = vpack.c.bf16 %v1572_v24, %v1571_v23  ;;  %v1726_v23 = vld [vmem:[#allocation16 + $0x78] sm:$0xff] }
 0x439   : > { %v3868_v24 = vpack.c.bf16 %v1726_v23, %v1725_v22  ;;  %v2026_v22 = vld [vmem:[#allocation22 + $0x38] sm:$0xff] }
 0x43a   : > { %v4305_v9 = vpop.eup %4304  ;;  %v1394_v10 = vadd.f32 %v1386_v28, %v1382_v8  ;;  %3837 = vmatprep.subr.bf16.mxu0 %v3836_v25  ;;  %v1713_v28 = vld [vmem:[#allocation16 + $0x10] sm:$0xff] }
 0x43b   : > { %3470 = vmatprep.mubr.f32.mxu1 %v4305_v9  ;;  %3839 = vmatpush3.bf16.msra.mxu0 %v3836_v25  ;;  %v3844_v31 = vpack.c.bf16 %v1714_v30, %v1713_v28  ;;  %v1865_v25 = vld [vmem:[#allocation19] sm:$0xff]  ;;  %v3876_v30 = vpack.c.bf16 %v1868_v29, %v1867_v27  ;;  %v2028_v27 = vld [vmem:[#allocation22 + $0x48] sm:$0xff] }
 0x43c   : > { %4310 = vtanh.f32 %v1394_v10  ;;  %v3872_v28 = vpack.c.bf16 %v1866_v26, %v1865_v25  ;;  %v2023_v25 = vld [vmem:[#allocation22 + $0x20] sm:$0xff]  ;;  %v2025_v26 = vld [vmem:[#allocation22 + $0x30] sm:$0xff] }
 0x43d   : > { %3845 = vmatprep.subr.bf16.mxu1 %v3844_v31  ;;  %v3910_v29 = vpack.c.bf16 %v2025_v26, %v2023_v25  ;;  %v2035_v26 = vld [vmem:[#allocation22 + $0x80] sm:$0xff] }
 0x43e   : > { %v4307_v11 = vpop.eup %4306  ;;  %3847 = vmatpush3.bf16.msra.mxu1 %v3844_v31  ;;  %v1869_v31 = vld [vmem:[#allocation19 + $0x20] sm:$0xff]  ;;  %3873 = vmatprep.subr.bf16.mxu0 %v3872_v28 }
 0x43f   : > { %3471 = vmatmul.mubr.f32.gmra.mrb[20].mxu1 %v4307_v11  ;;  %3849 = vmatprep.subr.bf16.mxu1 %v3848_v34  ;;  %v3880_v33 = vpack.c.bf16 %v1870_v32, %v1869_v31  ;;  %v2027_v31 = vld [vmem:[#allocation22 + $0x40] sm:$0xff]  ;;  %v2029_v32 = vld [vmem:[#allocation22 + $0x50] sm:$0xff] }
 0x442   : > { %v4309_v12 = vpop.eup %4308  ;;  %3851 = vmatpush3.bf16.msra.mxu1 %v3848_v34  ;;  %v1871_v34 = vld [vmem:[#allocation19 + $0x30] sm:$0xff] }
 0x443   : > { %3473 = vmatprep.mubr.f32.mxu1 %v4309_v12  ;;  %3853 = vmatprep.subr.bf16.mxu1 %v3852_v38  ;;  %v3884_v36 = vpack.c.bf16 %v1872_v35, %v1871_v34  ;;  %v2034_v34 = vld [vmem:[#allocation22 + $0x78] sm:$0xff]  ;;  %v3914_v35 = vpack.c.bf16 %v2029_v32, %v2027_v31  ;;  %v2039_v32 = vld [vmem:[#allocation22 + $0xa0] sm:$0xff] }
 0x446   : > { %v4311_v13 = vpop.eup %4310  ;;  %3855 = vmatpush3.bf16.msra.mxu1 %v3852_v38  ;;  %v1678_v38 = vld [vmem:[#allocation14] sm:$0x3] }
 0x447   : > { %3474 = vmatmul.mubr.f32.gmra.mrb[22].mxu1 %v4311_v13  ;;  %3857 = vmatprep.subr.bf16.mxu1 %v3856_v44  ;;  %v1682_v42 = vrot.slane %v1678_v38, %v5668_v37  ;;  %v1694_v43 = vrot.slane %v1678_v38, %v5672_v40  ;;  %v2031_v38 = vld [vmem:[#allocation22 + $0x60] sm:$0xff] }
 0x44a   : > { %3859 = vmatpush3.bf16.msra.mxu1 %v3856_v44 }
 0x44b   : > { %3861 = vmatprep.subr.bf16.mxu1 %v3860_v51 }
 0x44e   : > { %3863 = vmatpush3.bf16.msra.mxu1 %v3860_v51 }
 0x44f   : > { %3865 = vmatprep.subr.bf16.mxu1 %v3864_v54 }
 0x452   : > { %3867 = vmatpush3.bf16.msra.mxu1 %v3864_v54 }
 0x453   : > { %3869 = vmatprep.subr.bf16.mxu1 %v3868_v24 }
 0x456   : > { %3871 = vmatpush3.bf16.msra.mxu1 %v3868_v24 }
 0x502   : > { %v3466_v58 = vpop.f32.mrb[16].mxu1 }
 0x503   : > { %v1530_v59 = vmul.f32 %v3466_v58, %v1528_v56  ;;  %v1485_v46 = vpop.f32.mrb[17].mxu1 }
 0x504   : > { %v1529_v60 = vmul.f32 %v1528_v56, %v1485_v46 }
 0x505   : > { %v1542_v47 = vadd.f32 %v1540_v57, %v1530_v59 }
 0x506   : > { %v1541_v61 = vadd.f32 %v1540_v57, %v1529_v60 }
 0x508   : > { %4312 = vtanh.f32 %v1541_v61 }
 0x509   : > { %4314 = vtanh.f32 %v1542_v47 }
 0x50a   : > { %v3469_v48 = vpop.f32.mrb[18].mxu1 }
 0x50b   : > { %v1532_v50 = vmul.f32 %v3469_v48, %v1528_v56  ;;  %v1495_v62 = vpop.f32.mrb[19].mxu1 }
 0x50c   : > { %v1531_v63 = vmul.f32 %v1528_v56, %v1495_v62 }
 0x50d   : > { %v1544_v0 = vadd.f32 %v1540_v57, %v1532_v50 }
 0x50e   : > { %v1543_v1 = vadd.f32 %v1540_v57, %v1531_v63 }
 0x510   : > { %4316 = vtanh.f32 %v1543_v1 }
 0x511   : > { %4318 = vtanh.f32 %v1544_v0 }
 0x512   : > { %v4313_v2 = vpop.eup %4312  ;;  %v3472_v3 = vpop.f32.mrb[20].mxu1 }
 0x513   : > { %v4315_v4 = vpop.eup %4314  ;;  %v1534_v5 = vmul.f32 %v3472_v3, %v1528_v56  ;;  %v1505_v6 = vpop.f32.mrb[21].mxu1  ;;  %3508 = vmatprep.mubr.f32.mxu0 %v4313_v2 }
 0x514   : > { %v1533_v7 = vmul.f32 %v1528_v56, %v1505_v6  ;;  %3509 = vmatmul.mubr.f32.vlgmr.msra.gmra.mrb[16].mxu0 %v4315_v4  ;;  %v1873_v4 = vld [vmem:[#allocation19 + $0x40] sm:$0xff] }
 0x515   : > { %v1546_v8 = vadd.f32 %v1540_v57, %v1534_v5  ;;  %3875 = vmatpush3.bf16.msra.mxu0 %v3872_v28  ;;  %v1874_v5 = vld [vmem:[#allocation19 + $0x48] sm:$0xff]  ;;  %v2030_v28 = vld [vmem:[#allocation22 + $0x58] sm:$0xff] }
 0x516   : > { %v1545_v9 = vadd.f32 %v1540_v57, %v1533_v7  ;;  %3877 = vmatprep.subr.bf16.mxu0 %v3876_v30  ;;  %v3888_v6 = vpack.c.bf16 %v1874_v5, %v1873_v4  ;;  %v1875_v7 = vld [vmem:[#allocation19 + $0x50] sm:$0xff] }
 0x518   : > { %4320 = vtanh.f32 %v1545_v9 }
 0x519   : > { %4322 = vtanh.f32 %v1546_v8  ;;  %3879 = vmatpush3.bf16.msra.mxu0 %v3876_v30  ;;  %v1876_v8 = vld [vmem:[#allocation19 + $0x58] sm:$0xff]  ;;  %v3912_v30 = vpack.c.bf16 %v2030_v28, %v2028_v27 }
 0x51a   : > { %v4317_v10 = vpop.eup %4316  ;;  %v3475_v11 = vpop.f32.mrb[22].mxu1  ;;  %3881 = vmatprep.subr.bf16.mxu0 %v3880_v33  ;;  %v3892_v9 = vpack.c.bf16 %v1876_v8, %v1875_v7  ;;  %v2037_v27 = vld [vmem:[#allocation22 + $0x90] sm:$0xff] }
 0x51b   : > { %v4319_v12 = vpop.eup %4318  ;;  %v1536_v13 = vmul.f32 %v3475_v11, %v1528_v56  ;;  %v1515_v14 = vpop.f32.mrb[23].mxu1  ;;  %3511 = vmatprep.mubr.f32.mxu0 %v4317_v10  ;;  %v1877_v10 = vld [vmem:[#allocation19 + $0x60] sm:$0xff]  ;;  %v1878_v11 = vld [vmem:[#allocation19 + $0x68] sm:$0xff]  ;;  %v3922_v28 = vpack.c.bf16 %v2037_v27, %v2035_v26  ;;  %v2268_v27 = vld [vmem:[#allocation25 + $0x90] sm:$0xff] }
 0x51c   : > { %v1535_v15 = vmul.f32 %v1528_v56, %v1515_v14  ;;  %3512 = vmatmul.mubr.f32.gmra.mrb[18].mxu0 %v4319_v12  ;;  %v3896_v12 = vpack.c.bf16 %v1878_v11, %v1877_v10  ;;  %v1880_v14 = vld [vmem:[#allocation19 + $0x78] sm:$0xff]  ;;  %v2266_v26 = vld [vmem:[#allocation25 + $0x80] sm:$0xff] }
 0x51d   : > { %v1548_v16 = vadd.f32 %v1540_v57, %v1536_v13  ;;  %3883 = vmatpush3.bf16.msra.mxu0 %v3880_v33  ;;  %v1879_v13 = vld [vmem:[#allocation19 + $0x70] sm:$0xff] }
 0x51e   : > { %v1547_v17 = vadd.f32 %v1540_v57, %v1535_v15  ;;  %3885 = vmatprep.subr.bf16.mxu0 %v3884_v36  ;;  %v3900_v15 = vpack.c.bf16 %v1880_v14, %v1879_v13  ;;  %v2032_v33 = vld [vmem:[#allocation22 + $0x68] sm:$0xff] }
 0x520   : > { %4324 = vtanh.f32 %v1547_v17  ;;  %v2022_v17 = vld [vmem:[#allocation22 + $0x18] sm:$0xff] }
 0x521   : > { %4326 = vtanh.f32 %v1548_v16  ;;  %3887 = vmatpush3.bf16.msra.mxu0 %v3884_v36  ;;  %v2020_v16 = vld [vmem:[#allocation22 + $0x8] sm:$0xff]  ;;  %v3916_v36 = vpack.c.bf16 %v2034_v34, %v2032_v33  ;;  %v2041_v33 = vld [vmem:[#allocation22 + $0xb0] sm:$0xff] }
 0x522   : > { %v4321_v18 = vpop.eup %4320  ;;  %3889 = vmatprep.subr.bf16.mxu0 %v3888_v6  ;;  %v3926_v34 = vpack.c.bf16 %v2041_v33, %v2039_v32  ;;  %v2270_v32 = vld [vmem:[#allocation25 + $0xa0] sm:$0xff]  ;;  %v2272_v33 = vld [vmem:[#allocation25 + $0xb0] sm:$0xff] }
 0x523   : > { %v4323_v19 = vpop.eup %4322  ;;  %3514 = vmatprep.mubr.f32.mxu0 %v4321_v18  ;;  %v2019_v18 = vld [vmem:[#allocation22] sm:$0xff] }
 0x524   : > { %3515 = vmatmul.mubr.f32.gmra.mrb[20].mxu0 %v4323_v19  ;;  %v3904_v19 = vpack.c.bf16 %v2022_v17, %v2020_v16 }
 0x525   : > { %3891 = vmatpush3.bf16.msra.mxu0 %v3888_v6 }
 0x526   : > { %3893 = vmatprep.subr.bf16.mxu0 %v3892_v9  ;;  %3905 = vmatprep.subr.bf16.mxu1 %v3904_v19 }
 0x529   : > { %3895 = vmatpush3.bf16.msra.mxu0 %v3892_v9 }
 0x52a   : > { %v4325_v20 = vpop.eup %4324  ;;  %3897 = vmatprep.subr.bf16.mxu0 %v3896_v12 }
 0x52b   : > { %v4327_v21 = vpop.eup %4326  ;;  %3517 = vmatprep.mubr.f32.mxu0 %v4325_v20  ;;  %v2021_v20 = vld [vmem:[#allocation22 + $0x10] sm:$0xff] }
 0x52c   : > { %3518 = vmatmul.mubr.f32.gmra.mrb[22].mxu0 %v4327_v21  ;;  %v2024_v21 = vld [vmem:[#allocation22 + $0x28] sm:$0xff]  ;;  %v3906_v23 = vpack.c.bf16 %v2021_v20, %v2019_v18 }
 0x52d   : > { %3899 = vmatpush3.bf16.msra.mxu0 %v3896_v12  ;;  %v3908_v24 = vpack.c.bf16 %v2026_v22, %v2024_v21 }
 0x52e   : > { %3901 = vmatprep.subr.bf16.mxu0 %v3900_v15 }
 0x531   : > { %3903 = vmatpush3.bf16.msra.mxu0 %v3900_v15 }
 0x5e7   : > { %v3510_v44 = vpop.f32.mrb[16].mxu0 }
 0x5e8   : > { %v1684_v45 = vmul.f32 %v3510_v44, %v1682_v42  ;;  %v1639_v49 = vpop.f32.mrb[17].mxu0  ;;  %v1832_v44 = vld [vmem:[#allocation17] sm:$0x3] }
 0x5e9   : > { %v1683_v51 = vmul.f32 %v1682_v42, %v1639_v49  ;;  %v1848_v49 = vrot.slane %v1832_v44, %v5672_v40 }
 0x5ea   : > { %v5774_v52 = vadd.f32 %v1694_v43, %v1684_v45  ;;  %v1836_v45 = vrot.slane %v1832_v44, %v5668_v37 }
 0x5eb   : > { %v5776_v53 = vadd.f32 %v1694_v43, %v1683_v51 }
 0x5ec   : > { %1704 = vst [vmem:[%s5780_s29 + $0x8] sm:$0xff] %v5774_v52 }
 0x5ed   : > { %1703 = vst [vmem:[%s5780_s29] sm:$0xff] %v5776_v53  ;;  %3552 = vmatprep.mubr.f32.mxu1 %v5776_v53 }
 0x5ee   : > { %3553 = vmatmul.mubr.f32.vlgmr.msra.gmra.mrb[24].mxu1 %v5774_v52 }
 0x5ef   : > { %v3513_v54 = vpop.f32.mrb[18].mxu0  ;;  %3907 = vmatpush1.bf16.msra.mxu1 %v3906_v23  ;;  %v2036_v23 = vld [vmem:[#allocation22 + $0x88] sm:$0xff] }
 0x5f0   : > { %v1686_v55 = vmul.f32 %v3513_v54, %v1682_v42  ;;  %v1649_v56 = vpop.f32.mrb[19].mxu0  ;;  %3909 = vmatprep.subr.bf16.mxu1 %v3908_v24  ;;  %v2038_v24 = vld [vmem:[#allocation22 + $0x98] sm:$0xff] }
 0x5f1   : > { %v1685_v57 = vmul.f32 %v1682_v42, %v1649_v56  ;;  %v3920_v25 = vpack.c.bf16 %v2038_v24, %v2036_v23  ;;  %v2269_v23 = vld [vmem:[#allocation25 + $0x98] sm:$0xff] }
 0x5f2   : > { %v5788_v58 = vadd.f32 %v1694_v43, %v1686_v55 }
 0x5f3   : > { %v5790_v59 = vadd.f32 %v1694_v43, %v1685_v57  ;;  %3911 = vmatpush1.bf16.msra.mxu1 %v3910_v29  ;;  %v2040_v29 = vld [vmem:[#allocation22 + $0xa8] sm:$0xff] }
 0x5f4   : > { %1706 = vst [vmem:[%s5780_s29 + $0x18] sm:$0xff] %v5788_v58  ;;  %3913 = vmatprep.subr.bf16.mxu1 %v3912_v30  ;;  %v2042_v30 = vld [vmem:[#allocation22 + $0xb8] sm:$0xff] }
 0x5f5   : > { %1705 = vst [vmem:[%s5780_s29 + $0x10] sm:$0xff] %v5790_v59  ;;  %3555 = vmatprep.mubr.f32.mxu1 %v5790_v59  ;;  %v3924_v31 = vpack.c.bf16 %v2042_v30, %v2040_v29  ;;  %v2273_v29 = vld [vmem:[#allocation25 + $0xb8] sm:$0xff]  ;;  %v3954_v30 = vpack.c.bf16 %v2268_v27, %v2266_v26 }
 0x5f6   : > { %3556 = vmatmul.mubr.f32.gmra.mrb[26].mxu1 %v5788_v58 }
 0x5f7   : > { %v3516_v46 = vpop.f32.mrb[20].mxu0  ;;  %3915 = vmatpush1.bf16.msra.mxu1 %v3914_v35  ;;  %v2044_v35 = vld [vmem:[#allocation22 + $0xc8] sm:$0xff] }
 0x5f8   : > { %v1688_v60 = vmul.f32 %v3516_v46, %v1682_v42  ;;  %v1659_v47 = vpop.f32.mrb[21].mxu0  ;;  %3917 = vmatprep.subr.bf16.mxu1 %v3916_v36  ;;  %v2046_v36 = vld [vmem:[#allocation22 + $0xd8] sm:$0xff] }
 0x5f9   : > { %v1687_v61 = vmul.f32 %v1682_v42, %v1659_v47 }
 0x5fa   : > { %v5798_v48 = vadd.f32 %v1694_v43, %v1688_v60 }
 0x5fb   : > { %v5800_v50 = vadd.f32 %v1694_v43, %v1687_v61 }
 0x5fc   : > { %1708 = vst [vmem:[%s5780_s29 + $0x28] sm:$0xff] %v5798_v48 }
 0x5fd   : > { %1707 = vst [vmem:[%s5780_s29 + $0x20] sm:$0xff] %v5800_v50  ;;  %3558 = vmatprep.mubr.f32.mxu1 %v5800_v50 }
 0x5fe   : > { %3559 = vmatmul.mubr.f32.gmra.mrb[28].mxu1 %v5798_v48 }
 0x5ff   : > { %v3519_v62 = vpop.f32.mrb[22].mxu0 }
 0x600   : > { %v1690_v63 = vmul.f32 %v3519_v62, %v1682_v42  ;;  %v1669_v0 = vpop.f32.mrb[23].mxu0 }
 0x601   : > { %v1689_v1 = vmul.f32 %v1682_v42, %v1669_v0  ;;  %v2033_v42 = vld [vmem:[#allocation22 + $0x70] sm:$0xff] }
 0x602   : > { %v5808_v2 = vadd.f32 %v1694_v43, %v1690_v63 }
 0x603   : > { %v5810_v3 = vadd.f32 %v1694_v43, %v1689_v1  ;;  %v3918_v43 = vpack.c.bf16 %v2033_v42, %v2031_v38  ;;  %v3928_v38 = vpack.c.bf16 %v2046_v36, %v2044_v35  ;;  %v2043_v42 = vld [vmem:[#allocation22 + $0xc0] sm:$0xff]  ;;  %v3958_v36 = vpack.c.bf16 %v2272_v33, %v2270_v32 }
 0x604   : > { %1710 = vst [vmem:[%s5780_s29 + $0x38] sm:$0xff] %v5808_v2  ;;  %v2277_v35 = vld [vmem:[#allocation25 + $0xd8] sm:$0xff] }
 0x605   : > { %1709 = vst [vmem:[%s5780_s29 + $0x30] sm:$0xff] %v5810_v3  ;;  %3561 = vmatprep.mubr.f32.mxu1 %v5810_v3  ;;  %3919 = vmatpush1.bf16.msra.mxu1 %v3918_v43  ;;  %v2045_v43 = vld [vmem:[#allocation22 + $0xd0] sm:$0xff]  ;;  %s4862_s29 = sshll.u32 %s5039_s2, 4  ;;  %s4863_s29 = int_to_ptr.vmem [resolvable:$false] %s4862_s29 }
 0x606   : > { %3562 = vmatmul.mubr.f32.gmra.mrb[30].mxu1 %v5808_v2  ;;  %3921 = vmatprep.subr.bf16.mxu1 %v3920_v25  ;;  %v3930_v44 = vpack.c.bf16 %v2045_v43, %v2043_v42  ;;  %v2274_v42 = vld [vmem:[#allocation25 + $0xc0] sm:$0xff]  ;;  %v2276_v43 = vld [vmem:[#allocation25 + $0xd0] sm:$0xff]  ;;  %p4865_p2 = scmp.lt.s32.totalorder %s5977_s7, %s4863_s29 }
 0x609   : > { %3923 = vmatpush1.bf16.msra.mxu1 %v3922_v28  ;;  %v2271_v28 = vld [vmem:[#allocation25 + $0xa8] sm:$0xff] }
 0x60a   : > { %3925 = vmatprep.subr.bf16.mxu1 %v3924_v31  ;;  %v3956_v31 = vpack.c.bf16 %v2273_v29, %v2271_v28 }
 0x60d   : > { %3927 = vmatpush1.bf16.msra.mxu1 %v3926_v34  ;;  %v2275_v34 = vld [vmem:[#allocation25 + $0xc8] sm:$0xff] }
 0x60e   : > { %3929 = vmatprep.subr.bf16.mxu1 %v3928_v38  ;;  %v3960_v38 = vpack.c.bf16 %v2277_v35, %v2275_v34  ;;  %v2515_v35 = vld [vmem:[%s6313_s10 + $0x10] sm:$0xff] }
 0x611   : > { %3931 = vmatpush1.bf16.msra.mxu1 %v3930_v44  ;;  %v2279_v44 = vld [vmem:[#allocation25 + $0xe8] sm:$0xff] }
 0x6c1   : > { %v3554_v51 = vpop.f32.mrb[24].mxu1 }
 0x6c2   : > { %v1838_v54 = vmul.f32 %v3554_v51, %v1836_v45  ;;  %v1793_v55 = vpop.f32.mrb[25].mxu1 }
 0x6c3   : > { %v1837_v56 = vmul.f32 %v1836_v45, %v1793_v55  ;;  %v2049_v55 = vld [vmem:[#allocation22 + $0xf0] sm:$0xff] }
 0x6c4   : > { %v1850_v57 = vadd.f32 %v1848_v49, %v1838_v54  ;;  %v2047_v54 = vld [vmem:[#allocation22 + $0xe0] sm:$0xff] }
 0x6c5   : > { %v1849_v46 = vadd.f32 %v1848_v49, %v1837_v56  ;;  %v3934_v56 = vpack.c.bf16 %v2049_v55, %v2047_v54  ;;  %v2278_v54 = vld [vmem:[#allocation25 + $0xe0] sm:$0xff]  ;;  %v2280_v55 = vld [vmem:[#allocation25 + $0xf0] sm:$0xff] }
 0x6c7   : > { %4328 = vtanh.f32 %v1849_v46  ;;  %v2514_v46 = vld [vmem:[%s6313_s10 + $0x8] sm:$0xff] }
 0x6c8   : > { %4330 = vtanh.f32 %v1850_v57  ;;  %v2513_v57 = vld [vmem:[%s6313_s10] sm:$0xff] }
 0x6c9   : > { %v3557_v60 = vpop.f32.mrb[26].mxu1 }
 0x6ca   : > { %v1840_v47 = vmul.f32 %v3557_v60, %v1836_v45  ;;  %v1803_v61 = vpop.f32.mrb[27].mxu1  ;;  %v5826_v60 = vpack.c.bf16 %v2514_v46, %v2513_v57  ;;  %v2285_v57 = vld [vmem:[#allocation25 + $0x118] sm:$0xff]  ;;  %v3966_v46 = vpack.c.bf16 %v2280_v55, %v2278_v54 }
 0x6cb   : > { %v1839_v62 = vmul.f32 %v1836_v45, %v1803_v61  ;;  %v2251_v61 = vld [vmem:[#allocation25 + $0x8] sm:$0xff] }
 0x6cc   : > { %v1852_v63 = vadd.f32 %v1848_v49, %v1840_v47  ;;  %v5038_v47 = vmov 0.0  }
 0x6cd   : > { %v1851_v0 = vadd.f32 %v1848_v49, %v1839_v62  ;;  %2115 = vmatprep.mubr.f32.mxu1 %v5038_v47  ;;  %v2253_v62 = vld [vmem:[#allocation25 + $0x18] sm:$0xff] }
 0x6cf   : > { %4332 = vtanh.f32 %v1851_v0  ;;  %v3936_v0 = vpack.c.bf16 %v2253_v62, %v2251_v61  ;;  %v2282_v62 = vld [vmem:[#allocation25 + $0x100] sm:$0xff] }
 0x6d0   : > { %4334 = vtanh.f32 %v1852_v63  ;;  %v2250_v63 = vld [vmem:[#allocation25] sm:$0xff] }
 0x6d1   : > { %v4329_v1 = vpop.eup %4328  ;;  %v3560_v4 = vpop.f32.mrb[28].mxu1  ;;  %3937 = vmatprep.subr.bf16.mxu0 %v3936_v0  ;;  %v2287_v0 = vld [vmem:[#allocation25 + $0x128] sm:$0xff] }
 0x6d2   : > { %v4331_v5 = vpop.eup %4330  ;;  %v1842_v6 = vmul.f32 %v3560_v4, %v1836_v45  ;;  %v1813_v7 = vpop.f32.mrb[29].mxu1  ;;  %3596 = vmatprep.mubr.f32.mxu0 %v4329_v1  ;;  %v2252_v1 = vld [vmem:[#allocation25 + $0x10] sm:$0xff]  ;;  %v2255_v4 = vld [vmem:[#allocation25 + $0x28] sm:$0xff] }
 0x6d3   : > { %v1841_v8 = vmul.f32 %v1836_v45, %v1813_v7  ;;  %3597 = vmatmul.mubr.f32.vlgmr.msra.gmra.mrb[24].mxu0 %v4331_v5  ;;  %v2257_v5 = vld [vmem:[#allocation25 + $0x38] sm:$0xff] }
 0x6d4   : > { %v1854_v9 = vadd.f32 %v1848_v49, %v1842_v6  ;;  %v3938_v6 = vpack.c.bf16 %v2252_v1, %v2250_v63  ;;  %v3940_v7 = vpack.c.bf16 %v2257_v5, %v2255_v4  ;;  %v2284_v63 = vld [vmem:[#allocation25 + $0x110] sm:$0xff]  ;;  %v2289_v1 = vld [vmem:[#allocation25 + $0x138] sm:$0xff] }
 0x6d5   : > { %v1853_v10 = vadd.f32 %v1848_v49, %v1841_v8  ;;  %v2254_v8 = vld [vmem:[#allocation25 + $0x20] sm:$0xff]  ;;  %v3970_v4 = vpack.c.bf16 %v2284_v63, %v2282_v62  ;;  %v3972_v5 = vpack.c.bf16 %v2289_v1, %v2287_v0 }
 0x6d6   : > { %3939 = vmatpush1.bf16.msra.mxu0 %v3938_v6  ;;  %v2286_v6 = vld [vmem:[#allocation25 + $0x120] sm:$0xff] }
 0x6d7   : > { %4336 = vtanh.f32 %v1853_v10  ;;  %v2259_v10 = vld [vmem:[#allocation25 + $0x48] sm:$0xff]  ;;  %3941 = vmatprep.subr.bf16.mxu0 %v3940_v7  ;;  %v2288_v7 = vld [vmem:[#allocation25 + $0x130] sm:$0xff] }
 0x6d8   : > { %4338 = vtanh.f32 %v1854_v9  ;;  %v2256_v9 = vld [vmem:[#allocation25 + $0x30] sm:$0xff]  ;;  %v2520_v62 = vld [vmem:[%s6313_s10 + $0x38] sm:$0xff] }
 0x6d9   : > { %v4333_v11 = vpop.eup %4332  ;;  %v3563_v12 = vpop.f32.mrb[30].mxu1 }
 0x6da   : > { %v4335_v13 = vpop.eup %4334  ;;  %v1844_v14 = vmul.f32 %v3563_v12, %v1836_v45  ;;  %v1823_v15 = vpop.f32.mrb[31].mxu1  ;;  %3599 = vmatprep.mubr.f32.mxu0 %v4333_v11  ;;  %v2261_v11 = vld [vmem:[#allocation25 + $0x58] sm:$0xff]  ;;  %v3942_v12 = vpack.c.bf16 %v2256_v9, %v2254_v8  ;;  %v2291_v8 = vld [vmem:[#allocation25 + $0x148] sm:$0xff] }
 0x6db   : > { %v1843_v16 = vmul.f32 %v1836_v45, %v1823_v15  ;;  %3600 = vmatmul.mubr.f32.gmra.mrb[26].mxu0 %v4335_v13  ;;  %v2048_v45 = vld [vmem:[#allocation22 + $0xe8] sm:$0xff]  ;;  %v3944_v13 = vpack.c.bf16 %v2261_v11, %v2259_v10  ;;  %v2260_v15 = vld [vmem:[#allocation25 + $0x50] sm:$0xff]  ;;  %v2293_v9 = vld [vmem:[#allocation25 + $0x158] sm:$0xff]  ;;  %v3974_v10 = vpack.c.bf16 %v2288_v7, %v2286_v6 }
 0x6dc   : > { %v1856_v17 = vadd.f32 %v1848_v49, %v1844_v14  ;;  %v2258_v14 = vld [vmem:[#allocation25 + $0x40] sm:$0xff]  ;;  %3943 = vmatpush1.bf16.msra.mxu0 %v3942_v12  ;;  %v3976_v11 = vpack.c.bf16 %v2293_v9, %v2291_v8 }
 0x6dd   : > { %v1855_v18 = vadd.f32 %v1848_v49, %v1843_v16  ;;  %v2050_v49 = vld [vmem:[#allocation22 + $0xf8] sm:$0xff]  ;;  %v2263_v16 = vld [vmem:[#allocation25 + $0x68] sm:$0xff]  ;;  %3945 = vmatprep.subr.bf16.mxu0 %v3944_v13  ;;  %v2290_v12 = vld [vmem:[#allocation25 + $0x140] sm:$0xff] }
 0x6de   : > { %v3932_v51 = vpack.c.bf16 %v2050_v49, %v2048_v45  ;;  %v2281_v45 = vld [vmem:[#allocation25 + $0xf8] sm:$0xff]  ;;  %v3962_v49 = vpack.c.bf16 %v2276_v43, %v2274_v42  ;;  %v2292_v13 = vld [vmem:[#allocation25 + $0x150] sm:$0xff] }
 0x6df   : > { %4340 = vtanh.f32 %v1855_v18  ;;  %v3946_v18 = vpack.c.bf16 %v2260_v15, %v2258_v14  ;;  %v2295_v14 = vld [vmem:[#allocation25 + $0x168] sm:$0xff]  ;;  %v2297_v15 = vld [vmem:[#allocation25 + $0x178] sm:$0xff] }
 0x6e0   : > { %4342 = vtanh.f32 %v1856_v17  ;;  %3933 = vmatprep.subr.bf16.mxu1 %v3932_v51  ;;  %v2265_v17 = vld [vmem:[#allocation25 + $0x78] sm:$0xff]  ;;  %v3964_v51 = vpack.c.bf16 %v2281_v45, %v2279_v44  ;;  %v2517_v45 = vld [vmem:[%s6313_s10 + $0x20] sm:$0xff] }
 0x6e1   : > { %v4337_v19 = vpop.eup %4336  ;;  %3935 = vmatpush1.bf16.msra.mxu1 %v3934_v56  ;;  %3947 = vmatpush1.bf16.msra.mxu0 %v3946_v18  ;;  %v2283_v56 = vld [vmem:[#allocation25 + $0x108] sm:$0xff]  ;;  %v2294_v18 = vld [vmem:[#allocation25 + $0x160] sm:$0xff] }
 0x6e2   : > { %v4339_v20 = vpop.eup %4338  ;;  %3602 = vmatprep.mubr.f32.mxu0 %v4337_v19  ;;  %4001 = vmatprep.subr.bf16.mxu1 %v5826_v60  ;;  %v3948_v19 = vpack.c.bf16 %v2265_v17, %v2263_v16  ;;  %v3968_v61 = vpack.c.bf16 %v2285_v57, %v2283_v56  ;;  %v3978_v16 = vpack.c.bf16 %v2292_v13, %v2290_v12  ;;  %v2523_v12 = vld [vmem:[%s6313_s10 + $0x50] sm:$0xff]  ;;  %v2524_v13 = vld [vmem:[%s6313_s10 + $0x58] sm:$0xff] }
 0x6e3   : > { %3603 = vmatmul.mubr.f32.gmra.mrb[28].mxu0 %v4339_v20  ;;  %v2262_v20 = vld [vmem:[#allocation25 + $0x60] sm:$0xff]  ;;  %v3980_v17 = vpack.c.bf16 %v2297_v15, %v2295_v14  ;;  %v4020_v15 = vpack.c.bf16 %v2524_v13, %v2523_v12 }
 0x6e4   : > { %3949 = vmatprep.subr.bf16.mxu0 %v3948_v19  ;;  %v2296_v19 = vld [vmem:[#allocation25 + $0x170] sm:$0xff] }
 0x6e9   : > { %v4341_v21 = vpop.eup %4340 }
 0x6ea   : > { %v4343_v22 = vpop.eup %4342  ;;  %3605 = vmatprep.mubr.f32.mxu0 %v4341_v21  ;;  %v2264_v21 = vld [vmem:[#allocation25 + $0x70] sm:$0xff] }
 0x6eb   : > { %3606 = vmatmul.mubr.f32.gmra.mrb[30].mxu0 %v4343_v22  ;;  %v2267_v22 = vld [vmem:[#allocation25 + $0x88] sm:$0xff]  ;;  %v3950_v24 = vpack.c.bf16 %v2264_v21, %v2262_v20  ;;  %v3982_v20 = vpack.c.bf16 %v2296_v19, %v2294_v18  ;;  %v1986_v21 = vld [vmem:[#allocation20] sm:$0x3] }
 0x6ec   : > { %v3952_v25 = vpack.c.bf16 %v2269_v23, %v2267_v22  ;;  %v1990_v22 = vrot.slane %v1986_v21, %v5668_v37  ;;  %v2526_v18 = vld [vmem:[%s6313_s10 + $0x68] sm:$0xff] }
 0x6ed   : > { %3951 = vmatpush1.bf16.msra.mxu0 %v3950_v24  ;;  %v2002_v24 = vrot.slane %v1986_v21, %v5672_v40  ;;  %v2527_v21 = vld [vmem:[%s6313_s10 + $0x70] sm:$0xff] }
 0x6ee   : > { %3953 = vmatprep.subr.bf16.mxu0 %v3952_v25 }
 0x6f1   : > { %3955 = vmatpush1.bf16.msra.mxu0 %v3954_v30 }
 0x6f2   : > { %3957 = vmatprep.subr.bf16.mxu0 %v3956_v31 }
 0x6f5   : > { %3959 = vmatpush1.bf16.msra.mxu0 %v3958_v36  ;;  %v2516_v36 = vld [vmem:[%s6313_s10 + $0x18] sm:$0xff] }
 0x6f6   : > { %3961 = vmatprep.subr.bf16.mxu0 %v3960_v38  ;;  %v4004_v42 = vpack.c.bf16 %v2516_v36, %v2515_v35  ;;  %v2311_v35 = vld [vmem:[#allocation25 + $0x1e8] sm:$0xff]  ;;  %v2313_v36 = vld [vmem:[#allocation25 + $0x1f8] sm:$0xff] }
 0x6f9   : > { %3963 = vmatpush1.bf16.msra.mxu0 %v3962_v49  ;;  %v2518_v49 = vld [vmem:[%s6313_s10 + $0x28] sm:$0xff] }
 0x6fa   : > { %3965 = vmatprep.subr.bf16.mxu0 %v3964_v51  ;;  %v4008_v56 = vpack.c.bf16 %v2518_v49, %v2517_v45  ;;  %v2667_v45 = vld [vmem:[%s6314_s11] sm:$0xff]  ;;  %v2668_v49 = vld [vmem:[%s6314_s11 + $0x8] sm:$0xff] }
 0x6fd   : > { %3967 = vmatpush1.bf16.msra.mxu0 %v3966_v46 }
 0x6fe   : > { %3969 = vmatprep.subr.bf16.mxu0 %v3968_v61  ;;  %v2519_v61 = vld [vmem:[%s6313_s10 + $0x30] sm:$0xff] }
 0x701   : > { %3971 = vmatpush1.bf16.msra.mxu0 %v3970_v4  ;;  %v2521_v4 = vld [vmem:[%s6313_s10 + $0x40] sm:$0xff] }
 0x702   : > { %3973 = vmatprep.subr.bf16.mxu0 %v3972_v5  ;;  %v2522_v5 = vld [vmem:[%s6313_s10 + $0x48] sm:$0xff] }
 0x703   : > { %v4016_v9 = vpack.c.bf16 %v2522_v5, %v2521_v4 }
 0x705   : > { %3975 = vmatpush1.bf16.msra.mxu0 %v3974_v10 }
 0x706   : > { %3977 = vmatprep.subr.bf16.mxu0 %v3976_v11 }
 0x709   : > { %3979 = vmatpush1.bf16.msra.mxu0 %v3978_v16 }
 0x70a   : > { %3981 = vmatprep.subr.bf16.mxu0 %v3980_v17  ;;  %v2525_v17 = vld [vmem:[%s6313_s10 + $0x60] sm:$0xff] }
 0x70b   : > { %v4024_v19 = vpack.c.bf16 %v2526_v18, %v2525_v17 }
 0x70d   : > { %3983 = vmatpush1.bf16.msra.mxu0 %v3982_v20 }
 0x7a6   : > { %v3598_v23 = vpop.f32.mrb[24].mxu0 }
 0x7a7   : > { %v1947_v25 = vpop.f32.mrb[25].mxu0  ;;  %v1992_v26 = vmul.f32 %v3598_v23, %v1990_v22 }
 0x7a8   : > { %v1991_v27 = vmul.f32 %v1990_v22, %v1947_v25 }
 0x7a9   : > { %v2004_v29 = vadd.f32 %v2002_v24, %v1992_v26  ;;  %v2301_v26 = vld [vmem:[#allocation25 + $0x198] sm:$0xff] }
 0x7aa   : > { %v2003_v28 = vadd.f32 %v2002_v24, %v1991_v27 }
 0x7ac   : > { %4344 = vtanh.f32 %v2003_v28  ;;  %v2298_v28 = vld [vmem:[#allocation25 + $0x180] sm:$0xff] }
 0x7ad   : > { %4346 = vtanh.f32 %v2004_v29  ;;  %v2300_v29 = vld [vmem:[#allocation25 + $0x190] sm:$0xff] }
 0x7ae   : > { %v3601_v30 = vpop.f32.mrb[26].mxu0 }
 0x7af   : > { %v1957_v31 = vpop.f32.mrb[27].mxu0  ;;  %v1994_v32 = vmul.f32 %v3601_v30, %v1990_v22 }
 0x7b0   : > { %v1993_v33 = vmul.f32 %v1990_v22, %v1957_v31  ;;  %v2304_v31 = vld [vmem:[#allocation25 + $0x1b0] sm:$0xff] }
 0x7b1   : > { %v2006_v38 = vadd.f32 %v2002_v24, %v1994_v32 }
 0x7b2   : > { %v2005_v34 = vadd.f32 %v2002_v24, %v1993_v33  ;;  %v2308_v33 = vld [vmem:[#allocation25 + $0x1d0] sm:$0xff] }
 0x7b4   : > { %4348 = vtanh.f32 %v2005_v34 }
 0x7b5   : > { %4350 = vtanh.f32 %v2006_v38  ;;  %v3996_v38 = vpack.c.bf16 %v2313_v36, %v2311_v35 }
 0x7b6   : > { %v4345_v43 = vpop.eup %4344  ;;  %v3604_v44 = vpop.f32.mrb[28].mxu0 }
 0x7b7   : > { %v1967_v51 = vpop.f32.mrb[29].mxu0  ;;  %2116 = vmatmul.mubr.f32.vlgmr.msra.gmra.mrb[32].mxu1 %v4345_v43  ;;  %v1996_v54 = vmul.f32 %v3604_v44, %v1990_v22  ;;  %v4347_v57 = vpop.eup %4346  ;;  %v2312_v43 = vld [vmem:[#allocation25 + $0x1f0] sm:$0xff] }
 0x7b8   : > { %v1995_v55 = vmul.f32 %v1990_v22, %v1967_v51  ;;  %4003 = vmatpush3.bf16.msra.mxu1 %v5826_v60  ;;  %2121 = vmatprep.mubr.f32.mxu1 %v5038_v47  ;;  %v4012_v60 = vpack.c.bf16 %v2520_v62, %v2519_v61  ;;  %v4032_v51 = vpack.c.bf16 %v2668_v49, %v2667_v45  ;;  %v2673_v62 = vld [vmem:[%s6314_s11 + $0x30] sm:$0xff] }
 0x7b9   : > { %4005 = vmatprep.subr.bf16.mxu1 %v4004_v42  ;;  %v2008_v63 = vadd.f32 %v2002_v24, %v1996_v54  ;;  %v2669_v54 = vld [vmem:[%s6314_s11 + $0x10] sm:$0xff] }
 0x7ba   : > { %v2007_v46 = vadd.f32 %v2002_v24, %v1995_v55  ;;  %v2670_v55 = vld [vmem:[%s6314_s11 + $0x18] sm:$0xff] }
 0x7bb   : > { %2122 = vmatmul.mubr.f32.gmra.mrb[34].mxu1 %v4347_v57  ;;  %v2671_v57 = vld [vmem:[%s6314_s11 + $0x20] sm:$0xff] }
 0x7bc   : > { %4352 = vtanh.f32 %v2007_v46  ;;  %4007 = vmatpush3.bf16.msra.mxu1 %v4004_v42  ;;  %2127 = vmatprep.mubr.f32.mxu1 %v5038_v47  ;;  %v2310_v42 = vld [vmem:[#allocation25 + $0x1e0] sm:$0xff]  ;;  %v2672_v46 = vld [vmem:[%s6314_s11 + $0x28] sm:$0xff] }
 0x7bd   : > { %4009 = vmatprep.subr.bf16.mxu1 %v4008_v56  ;;  %4354 = vtanh.f32 %v2008_v63  ;;  %v3998_v44 = vpack.c.bf16 %v2312_v43, %v2310_v42  ;;  %v4040_v61 = vpack.c.bf16 %v2672_v46, %v2671_v57  ;;  %v2674_v63 = vld [vmem:[%s6314_s11 + $0x38] sm:$0xff]  ;;  %v2634_v46 = vld [vmem:[%s6315_s17] sm:$0x3]  ;;  %s4858_s17 = scalar_lea.vmem %s5977_s7, 1024 }
 0x7be   : > { %v4349_v0 = vpop.eup %4348  ;;  %v3607_v1 = vpop.f32.mrb[30].mxu0  ;;  %p4859_p4 = scmp.ne.s32.totalorder %s5977_s7, %s4858_s17 }
 0x7bf   : > { %v1977_v6 = vpop.f32.mrb[31].mxu0  ;;  %2128 = vmatmul.mubr.f32.gmra.mrb[36].mxu1 %v4349_v0  ;;  %v1998_v7 = vmul.f32 %v3607_v1, %v1990_v22  ;;  %v4351_v10 = vpop.eup %4350  ;;  %v2164_v0 = vld [vmem:[#allocation23] sm:$0xf] }
 0x7c0   : > { %v1997_v8 = vmul.f32 %v1990_v22, %v1977_v6  ;;  %4011 = vmatpush3.bf16.msra.mxu1 %v4008_v56  ;;  %2133 = vmatprep.mubr.f32.mxu1 %v5038_v47  ;;  %v2528_v22 = vld [vmem:[%s6313_s10 + $0x78] sm:$0xff]  ;;  %v4036_v56 = vpack.c.bf16 %v2670_v55, %v2669_v54  ;;  %v2169_v1 = vrot.slane %v2164_v0, %v5668_v37  ;;  %p4860_p0 = pnand %p4859_p4, %p6317_p3  ;;  %s4864_s10 = scalar_lea.vmem %s4863_s29, 2048 }
 0x7c1   : > { %4013 = vmatprep.subr.bf16.mxu1 %v4012_v60  ;;  %v2010_v14 = vadd.f32 %v2002_v24, %v1998_v7  ;;  %v4028_v23 = vpack.c.bf16 %v2528_v22, %v2527_v21  ;;  %v2173_v4 = vrot.slane %v2164_v0, %v5670_v39  ;;  %v2203_v5 = vrot.slane %v2164_v0, %v5672_v40  ;;  %p4866_p7 = scmp.lt.s32.totalorder %s4864_s10, %s4858_s17 }
 0x7c2   : > { %v2009_v11 = vadd.f32 %v2002_v24, %v1997_v8  ;;  %v2207_v6 = vrot.slane %v2164_v0, %v5674_v41  ;;  %v5919_v7 = vrot.slane %v2169_v1, %v5668_v37  ;;  %p4861_p5 = pneg %p4860_p0 }
 0x7c3   : > { %2134 = vmatmul.mubr.f32.gmra.mrb[38].mxu1 %v4351_v10  ;;  %v5922_v8 = vrot.slane %v2173_v4, %v5668_v37  ;;  %p4867_p10 = por %p4866_p7, %p4865_p2 }
 0x7c4   : > { %4356 = vtanh.f32 %v2009_v11  ;;  %4015 = vmatpush3.bf16.msra.mxu1 %v4012_v60  ;;  %2139 = vmatprep.mubr.f32.mxu1 %v5038_v47  ;;  %v4044_v60 = vpack.c.bf16 %v2674_v63, %v2673_v62  ;;  %v5928_v11 = vrot.slane %v2207_v6, %v5672_v40 }
 0x7c5   : > { %4017 = vmatprep.subr.bf16.mxu1 %v4016_v9  ;;  %4358 = vtanh.f32 %v2010_v14  ;;  %p4868_p1 = pnand %p4867_p10, %p4861_p5 }
 0x7c6   : > { %v4353_v16 = vpop.eup %4352 }
 0x7c7   : > { %2140 = vmatmul.mubr.f32.gmra.mrb[40].mxu1 %v4353_v16  ;;  %v4355_v20 = vpop.eup %4354 }
 0x7c8   : > { %4019 = vmatpush3.bf16.msra.mxu1 %v4016_v9  ;;  %2145 = vmatprep.mubr.f32.mxu1 %v5038_v47  ;;  %v5925_v9 = vrot.slane %v2203_v5, %v5672_v40  ;;  %v2638_v5 = vrot.slane %v2634_v46, %v5668_v37 }
 0x7c9   : > { %4021 = vmatprep.subr.bf16.mxu1 %v4020_v15 }
 0x7cb   : > { %2146 = vmatmul.mubr.f32.gmra.mrb[42].mxu1 %v4355_v20 }
 0x7cc   : > { %4023 = vmatpush3.bf16.msra.mxu1 %v4020_v15  ;;  %2151 = vmatprep.mubr.f32.mxu1 %v5038_v47 }
 0x7cd   : > { %4025 = vmatprep.subr.bf16.mxu1 %v4024_v19 }
 0x7ce   : > { %v4357_v24 = vpop.eup %4356 }
 0x7cf   : > { %2152 = vmatmul.mubr.f32.gmra.mrb[44].mxu1 %v4357_v24  ;;  %v4359_v25 = vpop.eup %4358 }
 0x7d0   : > { %4027 = vmatpush3.bf16.msra.mxu1 %v4024_v19  ;;  %2157 = vmatprep.mubr.f32.mxu1 %v5038_v47  ;;  %v2299_v47 = vld [vmem:[#allocation25 + $0x188] sm:$0xff] }
 0x7d1   : > { %4029 = vmatprep.subr.bf16.mxu1 %v4028_v23  ;;  %v3984_v27 = vpack.c.bf16 %v2301_v26, %v2299_v47 }
 0x7d3   : > { %2158 = vmatmul.mubr.f32.gmra.mrb[46].mxu1 %v4359_v25  ;;  %3985 = vmatprep.subr.bf16.mxu0 %v3984_v27 }
 0x7d4   : > { %4031 = vmatpush3.bf16.msra.mxu1 %v4028_v23  ;;  %3640 = vmatprep.mubr.f32.mxu1 %v5776_v53  ;;  %v3986_v53 = vpack.c.bf16 %v2300_v29, %v2298_v28 }
 0x7d5   : > { %4033 = vmatprep.subr.bf16.mxu1 %v4032_v51 }
 0x7d6   : > { %3987 = vmatpush1.bf16.msra.mxu0 %v3986_v53 }
 0x7d7   : > { %3641 = vmatmul.mubr.f32.vlgmr.msra.gmra.mrb[48].mxu1 %v5774_v52  ;;  %v2303_v52 = vld [vmem:[#allocation25 + $0x1a8] sm:$0xff] }
 0x7d8   : > { %3643 = vmatprep.mubr.f32.mxu1 %v5790_v59  ;;  %v2305_v59 = vld [vmem:[#allocation25 + $0x1b8] sm:$0xff]  ;;  %4035 = vmatpush3.bf16.msra.mxu1 %v4032_v51 }
 0x7d9   : > { %v3988_v30 = vpack.c.bf16 %v2305_v59, %v2303_v52  ;;  %4037 = vmatprep.subr.bf16.mxu1 %v4036_v56 }
 0x7db   : > { %3644 = vmatmul.mubr.f32.gmra.mrb[50].mxu1 %v5788_v58  ;;  %v2302_v58 = vld [vmem:[#allocation25 + $0x1a0] sm:$0xff]  ;;  %3989 = vmatprep.subr.bf16.mxu0 %v3988_v30 }
 0x7dc   : > { %3646 = vmatprep.mubr.f32.mxu1 %v5800_v50  ;;  %v3990_v50 = vpack.c.bf16 %v2304_v31, %v2302_v58  ;;  %4039 = vmatpush3.bf16.msra.mxu1 %v4036_v56 }
 0x7dd   : > { %4041 = vmatprep.subr.bf16.mxu1 %v4040_v61 }
 0x7de   : > { %3991 = vmatpush1.bf16.msra.mxu0 %v3990_v50 }
 0x7df   : > { %3647 = vmatmul.mubr.f32.gmra.mrb[52].mxu1 %v5798_v48  ;;  %v2307_v48 = vld [vmem:[#allocation25 + $0x1c8] sm:$0xff] }
 0x7e0   : > { %3649 = vmatprep.mubr.f32.mxu1 %v5810_v3  ;;  %v2309_v3 = vld [vmem:[#allocation25 + $0x1d8] sm:$0xff]  ;;  %4043 = vmatpush3.bf16.msra.mxu1 %v4040_v61 }
 0x7e1   : > { %v3992_v32 = vpack.c.bf16 %v2309_v3, %v2307_v48  ;;  %4045 = vmatprep.subr.bf16.mxu1 %v4044_v60 }
 0x7e3   : > { %3650 = vmatmul.mubr.f32.gmra.mrb[54].mxu1 %v5808_v2  ;;  %v2306_v2 = vld [vmem:[#allocation25 + $0x1c0] sm:$0xff]  ;;  %3993 = vmatprep.subr.bf16.mxu0 %v3992_v32 }
 0x7e4   : > { %v3994_v34 = vpack.c.bf16 %v2308_v33, %v2306_v2  ;;  %4047 = vmatpush3.bf16.msra.mxu1 %v4044_v60 }
 0x7e6   : > { %3995 = vmatpush1.bf16.msra.mxu0 %v3994_v34 }
 0x7e7   : > { %3997 = vmatprep.subr.bf16.mxu0 %v3996_v38 }
 0x7ea   : > { %3999 = vmatpush1.bf16.msra.mxu0 %v3998_v44 }
 0x88a   : > { %v2117_v10 = vpop.f32.mrb[32].mxu1 }
 0x88b   : > { %v2184_v12 = vmul.f32 %v5919_v7, %v2117_v10  ;;  %v2119_v13 = vpop.f32.mrb[33].mxu1 }
 0x88c   : > { %v2185_v14 = vmul.f32 %v5922_v8, %v2119_v13 }
 0x88d   : > { %v2218_v15 = vadd.f32 %v5925_v9, %v2184_v12  ;;  %v2650_v12 = vrot.slane %v2634_v46, %v5672_v40 }
 0x88e   : > { %v2219_v16 = vadd.f32 %v5928_v11, %v2185_v14  ;;  %v2123_v17 = vpop.f32.mrb[34].mxu1 }
 0x88f   : > { %v2186_v18 = vmul.f32 %v5919_v7, %v2123_v17  ;;  %v2125_v19 = vpop.f32.mrb[35].mxu1 }
 0x890   : > { %4360 = vtanh.f32 %v2219_v16  ;;  %v2187_v20 = vmul.f32 %v5922_v8, %v2125_v19 }
 0x891   : > { %4362 = vtanh.f32 %v2218_v15  ;;  %v2220_v21 = vadd.f32 %v5925_v9, %v2186_v18 }
 0x892   : > { %v2221_v22 = vadd.f32 %v5928_v11, %v2187_v20  ;;  %v2129_v23 = vpop.f32.mrb[36].mxu1 }
 0x893   : > { %v2188_v24 = vmul.f32 %v5919_v7, %v2129_v23  ;;  %v2131_v25 = vpop.f32.mrb[37].mxu1 }
 0x894   : > { %4364 = vtanh.f32 %v2221_v22  ;;  %v2189_v47 = vmul.f32 %v5922_v8, %v2131_v25 }
 0x895   : > { %4366 = vtanh.f32 %v2220_v21  ;;  %v2222_v26 = vadd.f32 %v5925_v9, %v2188_v24 }
 0x896   : > { %v2223_v27 = vadd.f32 %v5928_v11, %v2189_v47  ;;  %v2135_v28 = vpop.f32.mrb[38].mxu1 }
 0x897   : > { %v2190_v29 = vmul.f32 %v5919_v7, %v2135_v28  ;;  %v2137_v53 = vpop.f32.mrb[39].mxu1 }
 0x898   : > { %4368 = vtanh.f32 %v2223_v27  ;;  %v2191_v52 = vmul.f32 %v5922_v8, %v2137_v53 }
 0x899   : > { %4370 = vtanh.f32 %v2222_v26  ;;  %v2224_v59 = vadd.f32 %v5925_v9, %v2190_v29 }
 0x89a   : > { %v4361_v30 = vpop.eup %4360  ;;  %v2225_v58 = vadd.f32 %v5928_v11, %v2191_v52  ;;  %v2141_v31 = vpop.f32.mrb[40].mxu1 }
 0x89b   : > { %v4363_v50 = vpop.eup %4362  ;;  %v2192_v48 = vmul.f32 %v5919_v7, %v2141_v31  ;;  %v2143_v3 = vpop.f32.mrb[41].mxu1  ;;  %2378 = vmatprep.mubr.f32.mxu0 %v4361_v30 }
 0x89c   : > { %4372 = vtanh.f32 %v2225_v58  ;;  %v2193_v32 = vmul.f32 %v5922_v8, %v2143_v3  ;;  %2379 = vmatmul.mubr.f32.vlgmr.msra.gmra.mrb[32].mxu0 %v4363_v50 }
 0x89d   : > { %4374 = vtanh.f32 %v2224_v59  ;;  %v2226_v2 = vadd.f32 %v5925_v9, %v2192_v48 }
 0x89e   : > { %v4365_v33 = vpop.eup %4364  ;;  %v2227_v34 = vadd.f32 %v5928_v11, %v2193_v32  ;;  %v2147_v35 = vpop.f32.mrb[42].mxu1 }
 0x89f   : > { %v4367_v36 = vpop.eup %4366  ;;  %v2194_v38 = vmul.f32 %v5919_v7, %v2147_v35  ;;  %v2149_v42 = vpop.f32.mrb[43].mxu1  ;;  %2384 = vmatprep.mubr.f32.mxu0 %v4365_v33 }
 0x8a0   : > { %4376 = vtanh.f32 %v2227_v34  ;;  %v2195_v43 = vmul.f32 %v5922_v8, %v2149_v42  ;;  %2385 = vmatmul.mubr.f32.gmra.mrb[34].mxu0 %v4367_v36 }
 0x8a1   : > { %4378 = vtanh.f32 %v2226_v2  ;;  %v2228_v44 = vadd.f32 %v5925_v9, %v2194_v38 }
 0x8a2   : > { %v4369_v45 = vpop.eup %4368  ;;  %v2229_v49 = vadd.f32 %v5928_v11, %v2195_v43  ;;  %v2153_v51 = vpop.f32.mrb[44].mxu1 }
 0x8a3   : > { %v4371_v54 = vpop.eup %4370  ;;  %v2196_v55 = vmul.f32 %v5919_v7, %v2153_v51  ;;  %v2155_v56 = vpop.f32.mrb[45].mxu1  ;;  %2390 = vmatprep.mubr.f32.mxu0 %v4369_v45 }
 0x8a4   : > { %4380 = vtanh.f32 %v2229_v49  ;;  %v2197_v57 = vmul.f32 %v5922_v8, %v2155_v56  ;;  %2391 = vmatmul.mubr.f32.gmra.mrb[36].mxu0 %v4371_v54 }
 0x8a5   : > { %4382 = vtanh.f32 %v2228_v44  ;;  %v2230_v61 = vadd.f32 %v5925_v9, %v2196_v55 }
 0x8a6   : > { %v4373_v62 = vpop.eup %4372  ;;  %v2231_v63 = vadd.f32 %v5928_v11, %v2197_v57  ;;  %v2159_v60 = vpop.f32.mrb[46].mxu1 }
 0x8a7   : > { %v4375_v0 = vpop.eup %4374  ;;  %v2198_v1 = vmul.f32 %v5919_v7, %v2159_v60  ;;  %v2161_v4 = vpop.f32.mrb[47].mxu1  ;;  %2396 = vmatprep.mubr.f32.mxu0 %v4373_v62 }
 0x8a8   : > { %4384 = vtanh.f32 %v2231_v63  ;;  %v2199_v6 = vmul.f32 %v5922_v8, %v2161_v4  ;;  %2397 = vmatmul.mubr.f32.gmra.mrb[38].mxu0 %v4375_v0 }
 0x8a9   : > { %4386 = vtanh.f32 %v2230_v61  ;;  %v2232_v10 = vadd.f32 %v5925_v9, %v2198_v1 }
 0x8aa   : > { %v4377_v13 = vpop.eup %4376  ;;  %v2233_v14 = vadd.f32 %v5928_v11, %v2199_v6  ;;  %v3642_v15 = vpop.f32.mrb[48].mxu1 }
 0x8ab   : > { %v4379_v16 = vpop.eup %4378  ;;  %v2640_v17 = vmul.f32 %v3642_v15, %v2638_v5  ;;  %2402 = vmatprep.mubr.f32.mxu0 %v4377_v13  ;;  %v2595_v7 = vpop.f32.mrb[49].mxu1 }
 0x8ac   : > { %4388 = vtanh.f32 %v2233_v14  ;;  %v2639_v18 = vmul.f32 %v2638_v5, %v2595_v7  ;;  %2403 = vmatmul.mubr.f32.gmra.mrb[40].mxu0 %v4379_v16 }
 0x8ad   : > { %4390 = vtanh.f32 %v2232_v10  ;;  %v2652_v19 = vadd.f32 %v2650_v12, %v2640_v17 }
 0x8ae   : > { %v4381_v8 = vpop.eup %4380  ;;  %v2651_v20 = vadd.f32 %v2650_v12, %v2639_v18  ;;  %v3645_v21 = vpop.f32.mrb[50].mxu1 }
 0x8af   : > { %v4383_v22 = vpop.eup %4382  ;;  %v2642_v9 = vmul.f32 %v3645_v21, %v2638_v5  ;;  %2408 = vmatprep.mubr.f32.mxu0 %v4381_v8  ;;  %v2605_v23 = vpop.f32.mrb[51].mxu1 }
 0x8b0   : > { %4392 = vtanh.f32 %v2651_v20  ;;  %v2641_v24 = vmul.f32 %v2638_v5, %v2605_v23  ;;  %2409 = vmatmul.mubr.f32.gmra.mrb[42].mxu0 %v4383_v22 }
 0x8b1   : > { %4394 = vtanh.f32 %v2652_v19  ;;  %v2654_v11 = vadd.f32 %v2650_v12, %v2642_v9 }
 0x8b2   : > { %v4385_v25 = vpop.eup %4384  ;;  %v2653_v47 = vadd.f32 %v2650_v12, %v2641_v24  ;;  %v3648_v26 = vpop.f32.mrb[52].mxu1 }
 0x8b3   : > { %v4387_v27 = vpop.eup %4386  ;;  %v2644_v28 = vmul.f32 %v3648_v26, %v2638_v5  ;;  %2414 = vmatprep.mubr.f32.mxu0 %v4385_v25  ;;  %v2615_v29 = vpop.f32.mrb[53].mxu1 }
 0x8b4   : > { %4396 = vtanh.f32 %v2653_v47  ;;  %v2643_v53 = vmul.f32 %v2638_v5, %v2615_v29  ;;  %2415 = vmatmul.mubr.f32.gmra.mrb[44].mxu0 %v4387_v27 }
 0x8b5   : > { %4398 = vtanh.f32 %v2654_v11  ;;  %v2656_v52 = vadd.f32 %v2650_v12, %v2644_v28 }
 0x8b6   : > { %v4389_v59 = vpop.eup %4388  ;;  %v2655_v30 = vadd.f32 %v2650_v12, %v2643_v53  ;;  %v3651_v58 = vpop.f32.mrb[54].mxu1 }
 0x8b7   : > { %v4391_v31 = vpop.eup %4390  ;;  %v2646_v50 = vmul.f32 %v3651_v58, %v2638_v5  ;;  %2420 = vmatprep.mubr.f32.mxu0 %v4389_v59  ;;  %v2625_v48 = vpop.f32.mrb[55].mxu1 }
 0x8b8   : > { %4400 = vtanh.f32 %v2655_v30  ;;  %v2645_v3 = vmul.f32 %v2638_v5, %v2625_v48  ;;  %2421 = vmatmul.mubr.f32.gmra.mrb[46].mxu0 %v4391_v31 }
 0x8b9   : > { %4402 = vtanh.f32 %v2656_v52  ;;  %v2658_v32 = vadd.f32 %v2650_v12, %v2646_v50 }
 0x8ba   : > { %v4393_v2 = vpop.eup %4392  ;;  %v2657_v33 = vadd.f32 %v2650_v12, %v2645_v3 }
 0x8bb   : > { %v4395_v34 = vpop.eup %4394  ;;  %3668 = vmatprep.mubr.msk.f32.mxu1 %vm2675_vm0, %v4393_v2 }
 0x8bc   : > { %4404 = vtanh.f32 %v2657_v33  ;;  %3669 = vmatmul.mubr.msk.f32.vlgmr.msra.gmra.mrb[56].mxu1 %vm2675_vm0, %v4395_v34 }
 0x8bd   : > { %4406 = vtanh.f32 %v2658_v32 }
 0x8be   : > { %v4397_v35 = vpop.eup %4396 }
 0x8bf   : > { %v4399_v36 = vpop.eup %4398  ;;  %3671 = vmatprep.mubr.msk.f32.mxu1 %vm2675_vm0, %v4397_v35 }
 0x8c0   : > { %3672 = vmatmul.mubr.msk.f32.gmra.mrb[58].mxu1 %vm2675_vm0, %v4399_v36 }
 0x8c2   : > { %v4401_v38 = vpop.eup %4400 }
 0x8c3   : > { %v4403_v42 = vpop.eup %4402  ;;  %3674 = vmatprep.mubr.msk.f32.mxu1 %vm2675_vm0, %v4401_v38 }
 0x8c4   : > { %3675 = vmatmul.mubr.msk.f32.gmra.mrb[60].mxu1 %vm2675_vm0, %v4403_v42 }
 0x8c6   : > { %v4405_v43 = vpop.eup %4404 }
 0x8c7   : > { %v4407_v44 = vpop.eup %4406  ;;  %3677 = vmatprep.mubr.msk.f32.mxu1 %vm2675_vm0, %v4405_v43 }
 0x8c8   : > { %3678 = vmatmul.mubr.msk.f32.gmra.mrb[62].mxu1 %vm2675_vm0, %v4407_v44 }
 0x8c9   : > { %4871 = shalt.err (!%p4868_p1)
}
 0x8ca   : > { %s4872_s3 = scalar_lea.hbm %s5984_s5, 1024  ;;  %s4876_s2 = scalar_lea.hbm %s6316_s6, 2048 }
 0x8cb   : > { %p4873_p11 = scmp.ne.s32.totalorder %s5984_s5, %s4872_s3  ;;  %p4877_p8 = scmp.lt.u32.totalorder %s5984_s5, %s6316_s6 }
 0x8cc   : > { %p4878_p6 = scmp.lt.u32.totalorder %s4876_s2, %s4872_s3  ;;  %p4880_p4 = scmp.lt.u32.totalorder %s4872_s3, %s5984_s5 }
 0x8cd   : > { %p4874_p12 = pnand %p4873_p11, %p6317_p3 }
 0x8ce   : > { %p4879_p9 = por %p4878_p6, %p4877_p8 }
 0x8cf   : > { %p4875_p13 = pneg %p4874_p12 }
 0x8d0   : > { %p4881_p0 = por %p4880_p4, %p4879_p9 }
 0x8d2   : > { %p4882_p5 = pnand %p4881_p0, %p4875_p13 }
 0x8d4   : > { %4885 = shalt.err (!%p4882_p5)
}
 0x8d5   : > { %s6238_s10 = smov 128   ;;  %s6239_s17 = smov 8   ;;  %v2427_v45 = vld [vmem:[#allocation26] sm:$0xf] }
 0x8d6   : > { %s6318_s1 = scalar_lea.sflag [#allocation4], %s5599_s26  ;;  %v2432_v49 = vrot.slane %v2427_v45, %v5668_v37  ;;  %v2436_v51 = vrot.slane %v2427_v45, %v5670_v39  ;;  %v2466_v54 = vrot.slane %v2427_v45, %v5672_v40  ;;  %v2470_v55 = vrot.slane %v2427_v45, %v5674_v41  ;;  %s6320_s8 = sld [smem:[#allocation63_spill]] }
 0x8d7   : > { %4110 = dma.vmem_to_hbm [thread:$0]  (%p6317_p3), %s5977_s7, 1024, %s5984_s5, %s6318_s1, %s6238_s10, %s6238_s10, %s6239_s17  }
 0x8d8   : > { %v2442_v56 = vrot.slane %v2432_v49, %v5668_v37  ;;  %v6019_v57 = vrot.slane %v2436_v51, %v5668_v37  ;;  %v6022_v46 = vrot.slane %v2466_v54, %v5672_v40  ;;  %v6025_v62 = vrot.slane %v2470_v55, %v5672_v40  ;;  %s6319_s7 = sshll.u32 %s5599_s26, 7  ;;  %s6321_s2 = sshll.u32 %s5599_s26, 6 }
 0x8d9   : > { %s6032_s5 = scalar_lea.vmem [#allocation31], %s6319_s7  ;;  %s6078_s29 = scalar_lea.vmem [#allocation29], %s6321_s2 }
 0x8da   : > { %s2878_s26 = sshll.u32 %s6078_s29, 4  ;;  %s2843_s1 = sand.u32 1, %s6295_s9   ;;  %s6089_s26 = int_to_ptr.vmem [resolvable:$true] %s2878_s26 }
 0x8db   : > { %s3239_s7 = sshll.u32 %s6295_s9, 11  ;;  %s2895_s0 = sshll.u32 %s6032_s5, 4  ;;  %s6104_s0 = int_to_ptr.vmem [resolvable:$true] %s2895_s0 }
 0x8dc   : > { %v2805_v50 = vld [vmem:[%s6320_s8] sm:$0x3]  ;;  %s6322_s3 = sshll.u32 %s6295_s9, 10  ;;  %s6323_s10 = sld [smem:[#allocation65_spill]] }
 0x8dd   : > { %v2809_v34 = vrot.slane %v2805_v50, %v5668_v37  ;;  %v2821_v38 = vrot.slane %v2805_v50, %v5672_v40  ;;  %s6324_s12 = sld [smem:[#allocation66_spill]]  ;;  %s4886_s14 = scalar_lea.vmem %s6089_s26, 1024 }
 0x8de   : > { %p4887_p2 = scmp.ne.s32.totalorder %s6089_s26, %s4886_s14  ;;  %s5042_s9 = smov [#allocation29]  }
 0x8e0   : > { %p4888_p7 = pnand %p4887_p2, %p6317_p3 }
 0x8e2   : > { %s6097_s17 = scalar_lea.hbm %s6323_s10, %s6322_s3  ;;  %p4889_p10 = pneg %p4888_p7 }
 0x8e3   : > { %s6102_s13 = scalar_lea.hbm %s6324_s12, %s3239_s7  ;;  %s4890_s3 = sshll.u32 %s5042_s9, 4  ;;  %s4891_s3 = int_to_ptr.vmem [resolvable:$false] %s4890_s3 }
 0x8e4   : > { %s4892_s8 = scalar_lea.vmem %s4891_s3, 2048  ;;  %p4893_p1 = scmp.lt.s32.totalorder %s6089_s26, %s4891_s3 }
 0x8e5   : > { %p4894_p11 = scmp.lt.s32.totalorder %s4892_s8, %s4886_s14 }
 0x8e7   : > { %p4895_p12 = por %p4894_p11, %p4893_p1 }
 0x8e9   : > { %p4896_p13 = pnand %p4895_p12, %p4889_p10 }
 0x96f   : > { %v2380_v61 = vpop.f32.mrb[32].mxu0 }
 0x970   : > { %v2447_v63 = vmul.f32 %v2442_v56, %v2380_v61  ;;  %v2382_v60 = vpop.f32.mrb[33].mxu0 }
 0x971   : > { %v2448_v39 = vmul.f32 %v6019_v57, %v2382_v60 }
 0x972   : > { %v2481_v0 = vadd.f32 %v6022_v46, %v2447_v63 }
 0x973   : > { %v2482_v41 = vadd.f32 %v6025_v62, %v2448_v39  ;;  %v2386_v1 = vpop.f32.mrb[34].mxu0 }
 0x974   : > { %2497 = vst [vmem:[%s6032_s5] sm:$0xff] %v2481_v0  ;;  %v2449_v4 = vmul.f32 %v2442_v56, %v2386_v1  ;;  %v2388_v5 = vpop.f32.mrb[35].mxu0 }
 0x975   : > { %2498 = vst [vmem:[%s6032_s5 + $0x8] sm:$0xff] %v2482_v41  ;;  %v2450_v6 = vmul.f32 %v6019_v57, %v2388_v5 }
 0x976   : > { %v2483_v10 = vadd.f32 %v6022_v46, %v2449_v4 }
 0x977   : > { %v2484_v12 = vadd.f32 %v6025_v62, %v2450_v6  ;;  %v2392_v13 = vpop.f32.mrb[36].mxu0 }
 0x978   : > { %2499 = vst [vmem:[%s6032_s5 + $0x10] sm:$0xff] %v2483_v10  ;;  %v2451_v14 = vmul.f32 %v2442_v56, %v2392_v13  ;;  %v2394_v15 = vpop.f32.mrb[37].mxu0 }
 0x979   : > { %2500 = vst [vmem:[%s6032_s5 + $0x18] sm:$0xff] %v2484_v12  ;;  %v2452_v16 = vmul.f32 %v6019_v57, %v2394_v15 }
 0x97a   : > { %v2485_v17 = vadd.f32 %v6022_v46, %v2451_v14 }
 0x97b   : > { %v2486_v7 = vadd.f32 %v6025_v62, %v2452_v16  ;;  %v2398_v18 = vpop.f32.mrb[38].mxu0 }
 0x97c   : > { %2501 = vst [vmem:[%s6032_s5 + $0x20] sm:$0xff] %v2485_v17  ;;  %v2453_v19 = vmul.f32 %v2442_v56, %v2398_v18  ;;  %v2400_v8 = vpop.f32.mrb[39].mxu0 }
 0x97d   : > { %2502 = vst [vmem:[%s6032_s5 + $0x28] sm:$0xff] %v2486_v7  ;;  %v2454_v20 = vmul.f32 %v6019_v57, %v2400_v8 }
 0x97e   : > { %v2487_v21 = vadd.f32 %v6022_v46, %v2453_v19 }
 0x97f   : > { %v2488_v22 = vadd.f32 %v6025_v62, %v2454_v20  ;;  %v2404_v9 = vpop.f32.mrb[40].mxu0 }
 0x980   : > { %2503 = vst [vmem:[%s6032_s5 + $0x30] sm:$0xff] %v2487_v21  ;;  %v2455_v23 = vmul.f32 %v2442_v56, %v2404_v9  ;;  %v2406_v24 = vpop.f32.mrb[41].mxu0 }
 0x981   : > { %2504 = vst [vmem:[%s6032_s5 + $0x38] sm:$0xff] %v2488_v22  ;;  %v2456_v11 = vmul.f32 %v6019_v57, %v2406_v24 }
 0x982   : > { %v2489_v25 = vadd.f32 %v6022_v46, %v2455_v23 }
 0x983   : > { %v2490_v47 = vadd.f32 %v6025_v62, %v2456_v11  ;;  %v2410_v26 = vpop.f32.mrb[42].mxu0 }
 0x984   : > { %2505 = vst [vmem:[%s6032_s5 + $0x40] sm:$0xff] %v2489_v25  ;;  %v2457_v27 = vmul.f32 %v2442_v56, %v2410_v26  ;;  %v2412_v28 = vpop.f32.mrb[43].mxu0 }
 0x985   : > { %2506 = vst [vmem:[%s6032_s5 + $0x48] sm:$0xff] %v2490_v47  ;;  %v2458_v29 = vmul.f32 %v6019_v57, %v2412_v28 }
 0x986   : > { %v2491_v53 = vadd.f32 %v6022_v46, %v2457_v27 }
 0x987   : > { %v2492_v52 = vadd.f32 %v6025_v62, %v2458_v29  ;;  %v2416_v59 = vpop.f32.mrb[44].mxu0 }
 0x988   : > { %2507 = vst [vmem:[%s6032_s5 + $0x50] sm:$0xff] %v2491_v53  ;;  %v2459_v30 = vmul.f32 %v2442_v56, %v2416_v59  ;;  %v2418_v58 = vpop.f32.mrb[45].mxu0 }
 0x989   : > { %2508 = vst [vmem:[%s6032_s5 + $0x58] sm:$0xff] %v2492_v52  ;;  %v2460_v31 = vmul.f32 %v6019_v57, %v2418_v58 }
 0x98a   : > { %v2493_v48 = vadd.f32 %v6022_v46, %v2459_v30 }
 0x98b   : > { %v2494_v3 = vadd.f32 %v6025_v62, %v2460_v31  ;;  %v2422_v32 = vpop.f32.mrb[46].mxu0 }
 0x98c   : > { %2509 = vst [vmem:[%s6032_s5 + $0x60] sm:$0xff] %v2493_v48  ;;  %v2461_v2 = vmul.f32 %v2442_v56, %v2422_v32  ;;  %v2424_v33 = vpop.f32.mrb[47].mxu0 }
 0x98d   : > { %2510 = vst [vmem:[%s6032_s5 + $0x68] sm:$0xff] %v2494_v3  ;;  %v2462_v35 = vmul.f32 %v6019_v57, %v2424_v33 }
 0x98e   : > { %v2495_v36 = vadd.f32 %v6022_v46, %v2461_v2 }
 0x98f   : > { %v2496_v42 = vadd.f32 %v6025_v62, %v2462_v35  ;;  %v3670_v43 = vpop.f32.mrb[56].mxu1 }
 0x990   : > { %2511 = vst [vmem:[%s6032_s5 + $0x70] sm:$0xff] %v2495_v36  ;;  %v2811_v44 = vmul.f32 %v3670_v43, %v2809_v34  ;;  %v2766_v45 = vpop.f32.mrb[57].mxu1 }
 0x991   : > { %2512 = vst [vmem:[%s6032_s5 + $0x78] sm:$0xff] %v2496_v42  ;;  %v2810_v49 = vmul.f32 %v2809_v34, %v2766_v45  ;;  %s6108_s5 = scalar_lea.sflag [#allocation30], %s2843_s1 }
 0x992   : > { %v2823_v51 = vadd.f32 %v2821_v38, %v2811_v44 }
 0x993   : > { %v2822_v54 = vadd.f32 %v2821_v38, %v2810_v49  ;;  %v3673_v55 = vpop.f32.mrb[58].mxu1 }
 0x994   : > { %2831 = vst [vmem:[%s6078_s29 + $0x8] sm:$0xff] %v2823_v51  ;;  %v2813_v37 = vmul.f32 %v3673_v55, %v2809_v34  ;;  %v2776_v40 = vpop.f32.mrb[59].mxu1 }
 0x995   : > { %2830 = vst [vmem:[%s6078_s29] sm:$0xff] %v2822_v54  ;;  %v2812_v56 = vmul.f32 %v2809_v34, %v2776_v40 }
 0x996   : > { %v2825_v57 = vadd.f32 %v2821_v38, %v2813_v37 }
 0x997   : > { %v2824_v46 = vadd.f32 %v2821_v38, %v2812_v56  ;;  %v3676_v61 = vpop.f32.mrb[60].mxu1 }
 0x998   : > { %2833 = vst [vmem:[%s6078_s29 + $0x18] sm:$0xff] %v2825_v57  ;;  %v2815_v62 = vmul.f32 %v3676_v61, %v2809_v34  ;;  %v2786_v63 = vpop.f32.mrb[61].mxu1 }
 0x999   : > { %2832 = vst [vmem:[%s6078_s29 + $0x10] sm:$0xff] %v2824_v46  ;;  %v2814_v60 = vmul.f32 %v2809_v34, %v2786_v63 }
 0x99a   : > { %v2827_v39 = vadd.f32 %v2821_v38, %v2815_v62 }
 0x99b   : > { %v2826_v0 = vadd.f32 %v2821_v38, %v2814_v60  ;;  %v3679_v41 = vpop.f32.mrb[62].mxu1 }
 0x99c   : > { %2835 = vst [vmem:[%s6078_s29 + $0x28] sm:$0xff] %v2827_v39  ;;  %v2817_v1 = vmul.f32 %v3679_v41, %v2809_v34  ;;  %v2796_v4 = vpop.f32.mrb[63].mxu1 }
 0x99d   : > { %2834 = vst [vmem:[%s6078_s29 + $0x20] sm:$0xff] %v2826_v0  ;;  %v2816_v5 = vmul.f32 %v2809_v34, %v2796_v4 }
 0x99e   : > { %v2829_v6 = vadd.f32 %v2821_v38, %v2817_v1 }
 0x99f   : > { %v2828_v10 = vadd.f32 %v2821_v38, %v2816_v5 }
 0x9a0   : > { %2837 = vst [vmem:[%s6078_s29 + $0x38] sm:$0xff] %v2829_v6 }
 0x9a1   : > { %2836 = vst [vmem:[%s6078_s29 + $0x30] sm:$0xff] %v2828_v10 }
 0x9a2   : > { %4899 = shalt.err (!%p4896_p13)
}
 0x9a3   : > { %s4900_s11 = scalar_lea.hbm %s6097_s17, 1024  ;;  %s4904_s1 = scalar_lea.hbm %s6323_s10, 2048 }
 0x9a4   : > { %p4901_p8 = scmp.ne.s32.totalorder %s6097_s17, %s4900_s11  ;;  %p4905_p4 = scmp.lt.u32.totalorder %s6097_s17, %s6323_s10 }
 0x9a5   : > { %p4906_p0 = scmp.lt.u32.totalorder %s4904_s1, %s4900_s11  ;;  %p4908_p2 = scmp.lt.u32.totalorder %s4900_s11, %s6097_s17 }
 0x9a6   : > { %p4902_p6 = pnand %p4901_p8, %p6317_p3 }
 0x9a7   : > { %p4907_p5 = por %p4906_p0, %p4905_p4 }
 0x9a8   : > { %p4903_p9 = pneg %p4902_p6 }
 0x9a9   : > { %p4909_p7 = por %p4908_p2, %p4907_p5 }
 0x9ab   : > { %p4910_p10 = pnand %p4909_p7, %p4903_p9 }
 0x9ad   : > { %4913 = shalt.err (!%p4910_p10)
}
 0x9ae   : > { %s6325_s14 = smov 8   ;;  %s6326_s9 = smov 128  }
 0x9af   : > { %4111 = dma.vmem_to_hbm [thread:$0]  (%p6317_p3), %s6089_s26, 1024, %s6097_s17, %s6108_s5, %s6326_s9, %s6326_s9, %s6325_s14  }
 0x9b0   : > { %s4914_s3 = scalar_lea.vmem %s6104_s0, 2048  ;;  %s5043_s8 = smov [#allocation31]  }
 0x9b1   : > { %p4915_p1 = scmp.ne.s32.totalorder %s6104_s0, %s4914_s3  ;;  %s4918_s11 = sshll.u32 %s5043_s8, 4  ;;  %s4919_s11 = int_to_ptr.vmem [resolvable:$false] %s4918_s11 }
 0x9b2   : > { %s4920_s6 = scalar_lea.vmem %s4919_s11, 4096  ;;  %p4921_p13 = scmp.lt.s32.totalorder %s6104_s0, %s4919_s11 }
 0x9b3   : > { %p4916_p11 = pnand %p4915_p1, %p6317_p3  ;;  %p4922_p8 = scmp.lt.s32.totalorder %s4920_s6, %s4914_s3 }
 0x9b5   : > { %p4917_p12 = pneg %p4916_p11  ;;  %p4923_p6 = por %p4922_p8, %p4921_p13 }
 0x9b7   : > { %p4924_p9 = pnand %p4923_p6, %p4917_p12 }
 0x9b9   : > { %4927 = shalt.err (!%p4924_p9)
}
 0x9ba   : > { %s4928_s17 = scalar_lea.hbm %s6102_s13, 2048  ;;  %s4932_s1 = scalar_lea.hbm %s6324_s12, 4096 }
 0x9bb   : > { %p4929_p4 = scmp.ne.s32.totalorder %s6102_s13, %s4928_s17  ;;  %p4933_p2 = scmp.lt.u32.totalorder %s6102_s13, %s6324_s12 }
 0x9bc   : > { %p4934_p7 = scmp.lt.u32.totalorder %s4932_s1, %s4928_s17  ;;  %p4936_p1 = scmp.lt.u32.totalorder %s4928_s17, %s6102_s13 }
 0x9bd   : > { %p4930_p0 = pnand %p4929_p4, %p6317_p3 }
 0x9be   : > { %p4935_p10 = por %p4934_p7, %p4933_p2 }
 0x9bf   : > { %p4931_p5 = pneg %p4930_p0 }
 0x9c0   : > { %p4937_p11 = por %p4936_p1, %p4935_p10 }
 0x9c2   : > { %p4938_p12 = pnand %p4937_p11, %p4931_p5 }
 0x9c4   : > { %4941 = shalt.err (!%p4938_p12)
}
 0x9c5   : > { %s5044_s14 = smov 256   ;;  %s5045_s9 = smov 16  }
 0x9c6   : > { %4112 = dma.vmem_to_hbm [thread:$0]  (%p6317_p3), %s6104_s0, 2048, %s6102_s13, %s6108_s5, %s5044_s14, %s5044_s14, %s5045_s9  }
 0x9c7 PF: > { %s2910_s3 = sand.u32 1, %s5004_s4   ;;  %p6327_p13 = scmp.ne.s32.totalorder %s6290_s23, 0 }
 0x9c8   : > { %p6328_p8 = scmp.ge.s32.totalorder %s5016_s25, 2  ;;  %s2911_s8 = scalar_lea.sflag [#allocation4], %s2910_s3 }
 0x9ca   : > { %p4167_p6 = pnand %p6328_p8, %p6327_p13 }
 0x9cc   : > { %4995 = dma.done.wait (!%p4167_p6), %s2911_s8, 1024  }
 0x9cd   : > { %4997 = vsyncadd (!%p4167_p6), %s2911_s8, 4294966272  ;;  %s6329_s11 = sadd.s32 4294967294, %s5016_s25  }
 0x9ce   : > { %s2919_s6 = sand.u32 1, %s6329_s11  }
 0x9cf   : > { %s2920_s17 = scalar_lea.sflag [#allocation30], %s2919_s6 }
 0x9d0   : > { %4999 = dma.done.wait (!%p4167_p6), %s2920_s17, 3072  }
 0x9d1   : > { %5001 = vsyncadd (!%p4167_p6), %s2920_s17, 4294964224  ;;  %p48_p3 = scmp.ge.s32.totalorder %s5521_s20, 4   ;;  %s6330_s4 = smov %s5008_s30 }
 0x9d2   : > { %s6331_s30 = smov %s5012_s24  ;;  %s6332_s24 = smov %s5533_s27 }
 0x9d3   : > { %s6333_s25 = smov %s5521_s20  ;;  %50 = sbr.rel (!%p48_p3) target bundleno = 38 (0x26), region = 241 }
 0x9da   :  { %2934 = vsyncpa [#allocation3], 1 }
 0x9db   :  { %2936 = vsyncpa [#allocation3 + $0x1], 1 }
 0x9dc   :  { %2937 = vsyncpa [#allocation6], 1 }
 0x9dd   :  { %2938 = vsyncpa [#allocation9], 1 }
 0x9de   :  { %2939 = vsyncpa [#allocation12], 1 }
 0x9df   :  { %2940 = vsyncpa [#allocation15], 1 }
 0x9e0   :  { %2941 = vsyncpa [#allocation18], 1 }
 0x9e1   :  { %2942 = vsyncpa [#allocation21], 1 }
 0x9e2   :  { %2943 = vsyncpa [#allocation24], 1 }
 0x9e3   :  { %2944 = vsyncpa [#allocation27], 1 }
 0x9e4   :  { %2945 = vsyncpa [#allocation4], 1 }
 0x9e5   :  { %2947 = vsyncpa [#allocation4 + $0x1], 1 }
 0x9e6   :  { %2948 = vsyncpa [#allocation30], 1 }
 0x9e7   :  { %2950 = vsyncpa [#allocation30 + $0x1], 1 }

</bundles_post_ra>
